<compile_context>
chip_gen: v6e
topology: v6e:2x2x1
jax: 0.10.0
libtpu: 0.0.40
codegen_flags: <defaults>
</compile_context>

<pallas_src>
import functools

import jax
import jax.numpy as jnp
from jax import lax
from jax.experimental import pallas as pl
from jax.experimental.pallas import tpu as pltpu


# ----------------------------------------------------------------------------
# Pallas kernel: one fused conv-as-matmul + bias + gates + LSTM state update
# ----------------------------------------------------------------------------
def _lstm_cell_kernel(p_ref, w_ref, b_ref, c_ref, out_ref, *, hidden_channels):
    hc = hidden_channels

    # Single fused matmul on the MXU: bf16 x bf16 -> f32 accumulate.
    pre = jnp.dot(p_ref[...], w_ref[...], preferred_element_type=jnp.float32)
    pre = pre + b_ref[...]           # f32 bias add; bias is a constant VMEM block

    # Gate math / state update in f32 (v5e has no bf16 VPU/EUP).
    f = jax.nn.sigmoid(pre[:, 0 * hc:1 * hc])
    i = jax.nn.sigmoid(pre[:, 1 * hc:2 * hc])
    o = jax.nn.sigmoid(pre[:, 2 * hc:3 * hc])
    g = jnp.tanh(pre[:, 3 * hc:4 * hc])

    new_c = f * c_ref[...] + i * g
    new_h = o * jnp.tanh(new_c)

    # Single lane-denser [tile_m, 2*Hc] store; wrapper splits h / c.
    out_ref[...] = jnp.concatenate([new_h, new_c], axis=-1)


# ----------------------------------------------------------------------------
# Glue: padding + im2col (channels-last), fused weight construction
# ----------------------------------------------------------------------------
def _pad_same(x_cl, kW, kD, kH):
    """x_cl: [B, W, D, H, C]. circular pad on W, D; zero pad on H (vertical)."""
    pw, pd, ph = (kW - 1) // 2, (kD - 1) // 2, (kH - 1) // 2
    xp = jnp.pad(x_cl, ((0, 0), (pw, pw), (0, 0), (0, 0), (0, 0)), mode='wrap')
    xp = jnp.pad(xp, ((0, 0), (0, 0), (pd, pd), (0, 0), (0, 0)), mode='wrap')
    xp = jnp.pad(xp, ((0, 0), (0, 0), (0, 0), (ph, ph), (0, 0)), mode='constant')
    return xp


def _im2col(x_cl, kW, kD, kH):
    """x_cl: [B, W, D, H, C] -> [B*W*D*H, kW*kD*kH*C] with 'same' padding."""
    B, W, D, H, C = x_cl.shape
    xp = _pad_same(x_cl, kW, kD, kH)
    cols = []
    for kw in range(kW):
        for kd in range(kD):
            for kh in range(kH):
                cols.append(xp[:, kw:kw + W, kd:kd + D, kh:kh + H, :])
    patches = jnp.concatenate(cols, axis=-1)       # [B, W, D, H, kW*kD*kH*C]
    return patches.reshape(B * W * D * H, -1)


def _build_fused_weight(gate_w, update_w, hidden_channels):
    """Fuse gate weight [3Hc, Cin+2Hc, kW,kD,kH] and update weight
    [Hc, Cin+Hc, kW,kD,kH] into one [kW*kD*kH*(Cin+2Hc), 4*Hc] matrix that
    matches the gate-input im2col K-ordering (update weight gets zero rows
    over the cell-state channels)."""
    Hc = hidden_channels
    zeros_c = jnp.zeros((Hc, Hc) + update_w.shape[2:], update_w.dtype)
    upd_full = jnp.concatenate([update_w, zeros_c], axis=1)    # [Hc, Cin+2Hc, ...]
    w_all = jnp.concatenate([gate_w, upd_full], axis=0)        # [4Hc, Cin+2Hc, ...]
    w = jnp.transpose(w_all, (2, 3, 4, 1, 0))                  # [kW,kD,kH,Cin_g,4Hc]
    return w.reshape(-1, 4 * Hc)


# ----------------------------------------------------------------------------
# Wrapper: RB3DConvLSTMCell forward
# ----------------------------------------------------------------------------
def rb3d_conv_lstm_cell(x, hidden_state, cell_state, params, *,
                        hidden_channels, v_kernel_size, h_kernel_size,
                        tile_m=256):
    """
    x, hidden_state, cell_state: [B, C, W, D, H]   (PyTorch NCWDH layout)
    params: 'gate_w' [3*Hc, Cin+2*Hc, kW, kD, kH], 'gate_b' [3*Hc],
            'update_w' [Hc, Cin+Hc, kW, kD, kH], 'update_b' [Hc]
    returns (new_hidden_state, new_cell_state) in [B, C, W, D, H].
    """
    B, Cin, W, D, H = x.shape
    Hc = hidden_channels
    kW = kD = h_kernel_size
    kH = v_kernel_size

    to_cl = lambda t: jnp.transpose(t, (0, 2, 3, 4, 1))   # -> [B, W, D, H, C]
    x_cl, h_cl, c_cl = to_cl(x), to_cl(hidden_state), to_cl(cell_state)

    # Single im2col over the gate input [x | h | c] (peephole conv channels).
    gate_in = jnp.concatenate([x_cl, h_cl, c_cl], axis=-1)
    patches = _im2col(gate_in, kW, kD, kH)                 # [M, K1], f32
    c_flat = c_cl.reshape(-1, Hc)                          # [M, Hc], f32

    fused_w = _build_fused_weight(params['gate_w'], params['update_w'], Hc)
    fused_b = jnp.concatenate([params['gate_b'], params['update_b']])
    fused_b = fused_b.reshape(1, 4 * Hc).astype(jnp.float32)

    M, K1 = patches.shape
    N = 4 * Hc

    # Pad contraction dim to a multiple of 128 (clean lane/sublane layout,
    # clean MXU cadence) -- <5% extra bytes at these channel counts.
    K_pad = ((K1 + 127) // 128) * 128
    if K_pad != K1:
        patches = jnp.pad(patches, ((0, 0), (0, K_pad - K1)))
        fused_w = jnp.pad(fused_w, ((0, K_pad - K1), (0, 0)))

    # bf16 operands for the MXU (f32 accumulation inside the kernel).
    patches = patches.astype(jnp.bfloat16)
    fused_w = fused_w.astype(jnp.bfloat16)

    # Tile size: multiple of 8 sublanes; shrink so double-buffered patch tiles
    # + resident weight stay well inside a scoped-VMEM budget safe on v7x.
    tile_m = max(8, (tile_m // 8) * 8)
    vmem_budget = 24 * 1024 * 1024

    def _vmem_bytes(tm):
        return (2 * tm * K_pad * 2        # double-buffered bf16 patch tiles
                + 2 * K_pad * N * 2       # fused weight buffers (resident)
                + 2 * tm * Hc * 4         # cell-state tiles
                + 2 * tm * 2 * Hc * 4)    # packed output tiles

    while tile_m > 8 and _vmem_bytes(tile_m) > vmem_budget:
        tile_m //= 2

    # Pad M to a multiple of tile_m (no hard divisibility requirement).
    M_pad = ((M + tile_m - 1) // tile_m) * tile_m
    if M_pad != M:
        patches = jnp.pad(patches, ((0, M_pad - M), (0, 0)))
        c_flat = jnp.pad(c_flat, ((0, M_pad - M), (0, 0)))

    grid = (M_pad // tile_m,)
    kernel = functools.partial(_lstm_cell_kernel, hidden_channels=Hc)

    cost = pl.CostEstimate(
        flops=2 * M_pad * K_pad * N,
        transcendentals=5 * M_pad * Hc,
        bytes_accessed=(M_pad * K_pad * 2 + K_pad * N * 2 + N * 4
                        + M_pad * Hc * 4 + M_pad * 2 * Hc * 4))

    out = pl.pallas_call(
        kernel,
        out_shape=jax.ShapeDtypeStruct((M_pad, 2 * Hc), jnp.float32),
        grid_spec=pltpu.PrefetchScalarGridSpec(
            num_scalar_prefetch=0,
            grid=grid,
            in_specs=[
                pl.BlockSpec((tile_m, K_pad), lambda i: (i, 0)),  # im2col patches (bf16)
                pl.BlockSpec((K_pad, N), lambda i: (0, 0)),       # fused weight (bf16, resident)
                pl.BlockSpec((1, N), lambda i: (0, 0)),           # fused bias (f32, resident)
                pl.BlockSpec((tile_m, Hc), lambda i: (i, 0)),     # cell state (f32)
            ],
            out_specs=pl.BlockSpec((tile_m, 2 * Hc), lambda i: (i, 0)),
        ),
        compiler_params=pltpu.CompilerParams(
            dimension_semantics=("parallel",),
            vmem_limit_bytes=32 * 1024 * 1024),
        cost_estimate=cost,
    )(patches, fused_w, fused_b, c_flat)

    out = out[:M]
    new_h = out[:, :Hc].reshape(B, W, D, H, Hc)
    new_c = out[:, Hc:].reshape(B, W, D, H, Hc)
    from_cl = lambda t: jnp.transpose(t, (0, 4, 1, 2, 3))   # -> [B, C, W, D, H]
    return from_cl(new_h), from_cl(new_c)


# ----------------------------------------------------------------------------
# Pure-JAX reference (bf16-quantized conv operands to mirror the kernel)
# ----------------------------------------------------------------------------
def _ref_conv(x_cl, w_torch, b, kW, kD, kH):
    """x_cl: [B,W,D,H,Cin], w_torch: [Cout,Cin,kW,kD,kH] -> [B,W,D,H,Cout]."""
    xp = _pad_same(x_cl, kW, kD, kH)
    w = jnp.transpose(w_torch, (2, 3, 4, 1, 0))  # [kW,kD,kH,Cin,Cout]
    out = lax.conv_general_dilated(
        xp, w, window_strides=(1, 1, 1), padding='VALID',
        dimension_numbers=('NDHWC', 'DHWIO', 'NDHWC'),
        precision=lax.Precision.HIGHEST)
    return out + b.reshape(1, 1, 1, 1, -1)


def _ref_cell(x, h, c, params, hidden_channels, kV, kHh):
    to_cl = lambda t: jnp.transpose(t, (0, 2, 3, 4, 1))
    x_cl, h_cl, c_cl = to_cl(x), to_cl(h), to_cl(c)
    Hc = hidden_channels
    # Mirror the kernel's bf16 MXU operands (weights + activations); all
    # accumulation / bias / gate math stays in f32, like the kernel.
    q = lambda t: t.astype(jnp.bfloat16).astype(jnp.float32)
    gate_in = q(jnp.concatenate([x_cl, h_cl, c_cl], axis=-1))
    gates = _ref_conv(gate_in, q(params['gate_w']), params['gate_b'], kHh, kHh, kV)
    fz, iz, oz = gates[..., :Hc], gates[..., Hc:2 * Hc], gates[..., 2 * Hc:]
    f, i, o = jax.nn.sigmoid(fz), jax.nn.sigmoid(iz), jax.nn.sigmoid(oz)
    upd_in = q(jnp.concatenate([x_cl, h_cl], axis=-1))
    cu = jnp.tanh(_ref_conv(upd_in, q(params['update_w']), params['update_b'],
                            kHh, kHh, kV))
    new_c = f * c_cl + i * cu
    new_h = o * jnp.tanh(new_c)
    from_cl = lambda t: jnp.transpose(t, (0, 4, 1, 2, 3))
    return from_cl(new_h), from_cl(new_c)


# ----------------------------------------------------------------------------
# Main
# ----------------------------------------------------------------------------
if __name__ == "__main__":
    # Small shapes consistent with the module's forward ([B, C, W, D, H]).
    B, Cin, W, D, H = 2, 4, 8, 8, 4
    Hc = 32                               # hidden_channels
    v_kernel_size = 3
    h_kernel_size = 3

    key = jax.random.PRNGKey(0)
    kx, kh, kc, kg, kgb, ku, kub = jax.random.split(key, 7)

    x = jax.random.normal(kx, (B, Cin, W, D, H), dtype=jnp.float32)
    hidden_state = jax.random.normal(kh, (B, Hc, W, D, H), dtype=jnp.float32) * 0.1
    cell_state = jax.random.normal(kc, (B, Hc, W, D, H), dtype=jnp.float32) * 0.1

    # Deterministic synthetic parameters (PyTorch conv weight layout
    # [Cout, Cin, kW, kD, kH]); peephole_connection=True, conv_peephole=True.
    gate_in_ch = Cin + Hc + Hc
    upd_in_ch = Cin + Hc
    params = {
        'gate_w': jax.random.normal(
            kg, (3 * Hc, gate_in_ch, h_kernel_size, h_kernel_size, v_kernel_size),
            dtype=jnp.float32) * 0.05,
        'gate_b': jax.random.normal(kgb, (3 * Hc,), dtype=jnp.float32) * 0.05,
        'update_w': jax.random.normal(
            ku, (Hc, upd_in_ch, h_kernel_size, h_kernel_size, v_kernel_size),
            dtype=jnp.float32) * 0.05,
        'update_b': jax.random.normal(kub, (Hc,), dtype=jnp.float32) * 0.05,
    }

    new_h, new_c = rb3d_conv_lstm_cell(
        x, hidden_state, cell_state, params,
        hidden_channels=Hc,
        v_kernel_size=v_kernel_size,
        h_kernel_size=h_kernel_size,
        tile_m=256)
    jax.block_until_ready((new_h, new_c))

    # Correctness check vs. the (bf16-operand) pure-JAX reference.
    ref_h, ref_c = _ref_cell(x, hidden_state, cell_state, params,
                             Hc, v_kernel_size, h_kernel_size)
    assert jnp.allclose(new_h, ref_h, atol=1e-3, rtol=1e-3), "hidden mismatch"
    assert jnp.allclose(new_c, ref_c, atol=1e-3, rtol=1e-3), "cell mismatch"

    print("KERNEL_OK")
</pallas_src>

<mosaic_0001>
module attributes {stable_mosaic.version = 11 : i64} {
  func.func @_lstm_cell_kernel(%arg0: i32, %arg1: memref<256x1920xbf16, #tpu.memory_space<vmem>>, %arg2: memref<1920x128xbf16, #tpu.memory_space<vmem>>, %arg3: memref<1x128xf32, #tpu.memory_space<vmem>>, %arg4: memref<256x32xf32, #tpu.memory_space<vmem>>, %arg5: memref<256x64xf32, #tpu.memory_space<vmem>>) attributes {dimension_semantics = [#tpu.dimension_semantics<parallel>], iteration_bounds = array<i64: 2>, scalar_prefetch = 0 : i64, scratch_operands = 0 : i64, tpu.core_type = #tpu.core_type<tc>, window_params = [{transform_indices = @transform_0, window_bounds = array<i64: 256, 1920>}, {pipeline_mode = #tpu.pipeline_mode<synchronous>, transform_indices = @transform_1, window_bounds = array<i64: 1920, 128>}, {pipeline_mode = #tpu.pipeline_mode<synchronous>, transform_indices = @transform_2, window_bounds = array<i64: 1, 128>}, {transform_indices = @transform_3, window_bounds = array<i64: 256, 32>}, {transform_indices = @transform_4, window_bounds = array<i64: 256, 64>}]} {
    %c0 = arith.constant 0 : index
    %c0_0 = arith.constant 0 : index
    %0 = vector.load %arg1[%c0, %c0_0] : memref<256x1920xbf16, #tpu.memory_space<vmem>>, vector<256x1920xbf16>
    %c0_1 = arith.constant 0 : index
    %c0_2 = arith.constant 0 : index
    %1 = vector.load %arg2[%c0_1, %c0_2] : memref<1920x128xbf16, #tpu.memory_space<vmem>>, vector<1920x128xbf16>
    %cst = arith.constant dense<0.000000e+00> : vector<256x128xf32>
    %2 = tpu.matmul %0, %1, %cst {dimension_numbers = #tpu.dot_dimension_numbers<[1], [0], [0], [1], [0, 0, 1, 1], [], []>} : vector<256x1920xbf16>, vector<1920x128xbf16>, vector<256x128xf32> -> vector<256x128xf32>
    %c0_3 = arith.constant 0 : index
    %c0_4 = arith.constant 0 : index
    %3 = vector.load %arg3[%c0_3, %c0_4] : memref<1x128xf32, #tpu.memory_space<vmem>>, vector<1x128xf32>
    %4 = vector.broadcast %3 : vector<1x128xf32> to vector<256x128xf32>
    %5 = arith.addf %2, %4 : vector<256x128xf32>
    %6 = vector.extract_strided_slice %5 {offsets = [0, 0], sizes = [256, 32], strides = [1, 1]} : vector<256x128xf32> to vector<256x32xf32>
    %7 = arith.negf %6 : vector<256x32xf32>
    %8 = math.exp %7 : vector<256x32xf32>
    %cst_5 = arith.constant 1.000000e+00 : f32
    %9 = vector.broadcast %cst_5 : f32 to vector<256x32xf32>
    %10 = arith.addf %9, %8 : vector<256x32xf32>
    %11 = arith.divf %9, %10 : vector<256x32xf32>
    %12 = vector.extract_strided_slice %5 {offsets = [0, 32], sizes = [256, 32], strides = [1, 1]} : vector<256x128xf32> to vector<256x32xf32>
    %13 = arith.negf %12 : vector<256x32xf32>
    %14 = math.exp %13 : vector<256x32xf32>
    %cst_6 = arith.constant 1.000000e+00 : f32
    %15 = vector.broadcast %cst_6 : f32 to vector<256x32xf32>
    %16 = arith.addf %15, %14 : vector<256x32xf32>
    %17 = arith.divf %15, %16 : vector<256x32xf32>
    %18 = vector.extract_strided_slice %5 {offsets = [0, 64], sizes = [256, 32], strides = [1, 1]} : vector<256x128xf32> to vector<256x32xf32>
    %19 = arith.negf %18 : vector<256x32xf32>
    %20 = math.exp %19 : vector<256x32xf32>
    %cst_7 = arith.constant 1.000000e+00 : f32
    %21 = vector.broadcast %cst_7 : f32 to vector<256x32xf32>
    %22 = arith.addf %21, %20 : vector<256x32xf32>
    %23 = arith.divf %21, %22 : vector<256x32xf32>
    %24 = vector.extract_strided_slice %5 {offsets = [0, 96], sizes = [256, 32], strides = [1, 1]} : vector<256x128xf32> to vector<256x32xf32>
    %25 = math.tanh %24 : vector<256x32xf32>
    %c0_8 = arith.constant 0 : index
    %c0_9 = arith.constant 0 : index
    %26 = vector.load %arg4[%c0_8, %c0_9] : memref<256x32xf32, #tpu.memory_space<vmem>>, vector<256x32xf32>
    %27 = arith.mulf %11, %26 : vector<256x32xf32>
    %28 = arith.mulf %17, %25 : vector<256x32xf32>
    %29 = arith.addf %27, %28 : vector<256x32xf32>
    %30 = math.tanh %29 : vector<256x32xf32>
    %31 = arith.mulf %23, %30 : vector<256x32xf32>
    %32 = tpu.concatenate %31, %29 in 1 : vector<256x32xf32>, vector<256x32xf32> -> vector<256x64xf32>
    %c0_10 = arith.constant 0 : index
    %c0_11 = arith.constant 0 : index
    %33 = vector.load %arg5[%c0_10, %c0_11] : memref<256x64xf32, #tpu.memory_space<vmem>>, vector<256x64xf32>
    tpu.vector_store %arg5[%c0_10, %c0_11], %32 {strides = array<i32>} : memref<256x64xf32, #tpu.memory_space<vmem>>, vector<256x64xf32>,
    return
  }
  func.func @transform_0(%arg0: i32) -> (i32, i32) {
    %c0_i32 = arith.constant 0 : i32
    %c0_i32_0 = arith.constant 0 : i32
    return %arg0, %c0_i32 : i32, i32
  }
  func.func @transform_1(%arg0: i32) -> (i32, i32) {
    %c0_i32 = arith.constant 0 : i32
    %c0_i32_0 = arith.constant 0 : i32
    %c0_i32_1 = arith.constant 0 : i32
    return %c0_i32, %c0_i32_0 : i32, i32
  }
  func.func @transform_2(%arg0: i32) -> (i32, i32) {
    %c0_i32 = arith.constant 0 : i32
    %c0_i32_0 = arith.constant 0 : i32
    %c0_i32_1 = arith.constant 0 : i32
    return %c0_i32, %c0_i32_0 : i32, i32
  }
  func.func @transform_3(%arg0: i32) -> (i32, i32) {
    %c0_i32 = arith.constant 0 : i32
    %c0_i32_0 = arith.constant 0 : i32
    return %arg0, %c0_i32 : i32, i32
  }
  func.func @transform_4(%arg0: i32) -> (i32, i32) {
    %c0_i32 = arith.constant 0 : i32
    %c0_i32_0 = arith.constant 0 : i32
    return %arg0, %c0_i32 : i32, i32
  }
}

</mosaic_0001>

<bundles_post_ra>
// kernel: tpu_custom_call.1
= control target key start
LH: loop header
LB: loop body
LE: loop exit
PB: predicated region body
PF: predicated region fallthrough
CT: control target
= control target key end

     0   :  { %9 = vsyncpa [#allocation3], 0  ;;  %s9294_s0 = inlined_call_operand.hbm [shape: bf16[512,1920], index: 0, kind: input, shape index: {}]   ;;  %s9295_s1 = inlined_call_operand.hbm [shape: bf16[1920,128], index: 1, kind: input, shape index: {}]   ;;  %s9296_s2 = inlined_call_operand.hbm [shape: f32[1,128], index: 2, kind: input, shape index: {}]   ;;  %s9297_s3 = inlined_call_operand.vmem [shape: f32[512,32], index: 3, kind: input, shape index: {}]   ;;  %s9298_s4 = inlined_call_operand.vmem [shape: f32[512,64], index: 4, kind: output, shape index: {}]  }
   0x1   :  { %11 = vsyncpa [#allocation3 + $0x1], 0 }
   0x2   :  { %12 = vsyncpa [#allocation5], 0  ;;  %s7454_s15 = smov 0   ;;  %s7456_s16 = smov 0  }
   0x3   :  { %s7458_s17 = smov 0   ;;  %s7460_s18 = smov 0  }
   0x4 LB: > { %s5218_s19 = sadd.s32 4294967295, %s7417_s18   ;;  %p38_p0 = scmp.ne.s32.totalorder %s7409_s16, %s7405_s15  ;;  %s7417_s18 = sphi %s7460_s18, %s9337_s18   ;;  %s7413_s17 = sphi %s7458_s17, %s9336_s17   ;;  %s7409_s16 = sphi %s7456_s16, %s9335_s16   ;;  %s7405_s15 = sphi %s7454_s15, %s9334_s15  }
   0x5   : > { %p7476_p1 = scmp.eq.s32.totalorder %s5218_s19, 0  ;;  %p5220_p2 = scmp.ge.s32.totalorder %s7417_s18, 1 }
   0x6   : > { %p143_p3 = scmp.lt.s32.totalorder %s7417_s18, 3  ;;  %s7419_s23 = smov [#allocation4]  }
   0x7   : > { %s9303_s20 = scalar_select %p7476_p1, 1, 0 }
   0x8   : > { %p7484_p4 = por %p7476_p1, %p38_p0  ;;  %p7488_p5 = pnand %p5220_p2, %p143_p3 }
   0x9   : > { %s155_s24 = sshll.u32 %s7419_s23, 4  ;;  %s7420_s26 = smov [#allocation6]   ;;  %s156_s24 = int_to_ptr.vmem [resolvable:$true] %s155_s24 }
   0xa   : > { %s9304_s21 = scalar_select %p7484_p4, 1, 0 }
   0xb   : > { %s9305_s22 = scalar_select %p7488_p5, 1, 0 }
   0xc   : > { %p6514_p6 = pneg %p7488_p5  ;;  %s169_s27 = sshll.u32 %s7420_s26, 4  ;;  %s170_s27 = int_to_ptr.vmem [resolvable:$true] %s169_s27 }
   0xd   : > { %s7310_s28 = scalar_lea.vmem %s156_s24, 15360  ;;  %p7318_p12 = scmp.lt.s32.totalorder %s156_s24, %s156_s24 }
   0xe   : > { %p7496_p7 = pnand %p6514_p6, %p7476_p1  ;;  %p7311_p9 = scmp.ne.s32.totalorder %s156_s24, %s7310_s28 }
   0xf   : > { %p7319_p13 = scmp.lt.s32.totalorder %s7310_s28, %s7310_s28 }
  0x10   : > { %p7301_p8 = pneg %p7496_p7 }
  0x11   : > { %p7320_p0 = por %p7319_p13, %p7318_p12 }
  0x12   : > { %p7313_p10 = pnand %p7311_p9, %p7301_p8 }
  0x14   : > { %p7314_p11 = pneg %p7313_p10 }
  0x16   : > { %p7321_p2 = pnand %p7320_p0, %p7314_p11 }
  0x18   : > { %7324 = shalt.err (!%p7321_p2)
}
  0x19   : > { %s7421_s29 = smov 64   ;;  %s7422_s30 = smov 4  }
  0x1a   : > { %6517 = dma.hbm_to_vmem [thread:$0]  (!%p7496_p7), %s9295_s1, 15360, %s156_s24, [#allocation5], %s7421_s29, %s7421_s29, %s7422_s30  }
  0x1b   : > { %s7336_s7 = scalar_lea.vmem %s170_s27, 16  ;;  %s7343_s8 = scalar_lea.vmem %s170_s27, 32 }
  0x1c   : > { %p7337_p3 = scmp.ne.s32.totalorder %s170_s27, %s7336_s7  ;;  %p7344_p10 = scmp.lt.s32.totalorder %s170_s27, %s170_s27 }
  0x1d   : > { %p7345_p12 = scmp.lt.s32.totalorder %s7343_s8, %s7336_s7 }
  0x1e   : > { %p7339_p6 = pnand %p7337_p3, %p7301_p8 }
  0x1f   : > { %p7346_p11 = por %p7345_p12, %p7344_p10 }
  0x20   : > { %p7340_p9 = pneg %p7339_p6 }
  0x22   : > { %p7347_p13 = pnand %p7346_p11, %p7340_p9 }
  0x24   : > { %7350 = shalt.err (!%p7347_p13)
}
  0x25   : > { %6520 = dma.hbm_to_vmem [thread:$0]  (!%p7496_p7), %s9296_s2, 16, %s170_s27, [#allocation5]  }
  0x26   : > { %s7519_s11 = sadd.s32 1, %s7417_s18   ;;  %s25_s12 = sadd.s32 1, %s7413_s17 }
  0x27   : > { %s22_s13 = ssub.s32 %s7417_s18, %s7519_s11  ;;  %p32_p8 = scmp.ne.s32.totalorder %s7413_s17, %s7409_s16 }
  0x28   : > { %p23_p0 = scmp.eq.s32.totalorder %s22_s13, 0  ;;  %p33_p2 = scmp.eq.s32.totalorder %s7417_s18, 0 }
  0x29   : > { %p6527_p3 = scmp.lt.s32.totalorder %s7417_s18, 2  ;;  %s180_s14 = sand.u32 1, %s7413_s17  }
  0x2a   : > { %s7530_s15 = scalar_select %p23_p0, %s7413_s17, %s25_s12  }
  0x2b   : > { %p34_p6 = por %p33_p2, %p32_p8  ;;  %s6501_s23 = smul.u32 1920, %s180_s14 }
  0x2c   : > { %s6502_s24 = smul.u32 30720, %s7417_s18  ;;  %s7544_s5 = scalar_lea.sflag [#allocation3], %s180_s14 }
  0x2d   : > { %p7533_p9 = pnand %p6527_p3, %p34_p6  ;;  %s184_s29 = scalar_lea.vmem [#allocation2], %s6501_s23 }
  0x2e   : > { %s7540_s28 = scalar_lea.hbm %s9294_s0, %s6502_s24  ;;  %s192_s30 = sshll.u32 %s184_s29, 4  ;;  %s7542_s30 = int_to_ptr.vmem [resolvable:$true] %s192_s30 }
  0x2f   : > { %s7351_s6 = scalar_lea.hbm %s7540_s28, 30720  ;;  %p7353_p10 = pneg %p7533_p9 }
  0x30   : > { %p7352_p7 = scmp.ne.s32.totalorder %s7540_s28, %s7351_s6  ;;  %s7356_s9 = scalar_lea.hbm %s9294_s0, 61440 }
  0x31   : > { %p7357_p13 = scmp.lt.s32.totalorder %s7540_s28, %s9294_s0  ;;  %p7358_p8 = scmp.lt.s32.totalorder %s7356_s9, %s7351_s6 }
  0x32   : > { %p7354_p12 = pnand %p7353_p10, %p7352_p7 }
  0x33   : > { %p7359_p0 = por %p7358_p8, %p7357_p13 }
  0x34   : > { %p7355_p11 = pneg %p7354_p12 }
  0x36   : > { %p7360_p2 = pnand %p7359_p0, %p7355_p11 }
  0x38   : > { %7363 = shalt.err (!%p7360_p2)
}
  0x39   : > { %s7364_s13 = scalar_lea.vmem %s7542_s30, 30720  ;;  %s7423_s14 = smov [#allocation2]  }
  0x3a   : > { %p7365_p3 = scmp.ne.s32.totalorder %s7542_s30, %s7364_s13  ;;  %s7369_s23 = sshll.u32 %s7423_s14, 4  ;;  %s7370_s23 = int_to_ptr.vmem [resolvable:$false] %s7369_s23 }
  0x3b   : > { %s7371_s24 = scalar_lea.vmem %s7370_s23, 61440  ;;  %p7372_p12 = scmp.lt.s32.totalorder %s7542_s30, %s7370_s23 }
  0x3c   : > { %p7367_p6 = pnand %p7365_p3, %p7353_p10  ;;  %p7373_p1 = scmp.lt.s32.totalorder %s7371_s24, %s7364_s13 }
  0x3e   : > { %p7368_p7 = pneg %p7367_p6  ;;  %p7374_p4 = por %p7373_p1, %p7372_p12 }
  0x40   : > { %p7375_p5 = pnand %p7374_p4, %p7368_p7 }
  0x42   : > { %7378 = shalt.err (!%p7375_p5)
}
  0x43   : > { %s7424_s26 = smov 960   ;;  %s7425_s27 = smov 60  }
  0x44   : > { %6524 = dma.hbm_to_vmem [thread:$0]  (!%p7533_p9), %s7540_s28, 30720, %s7542_s30, %s7544_s5, %s7424_s26, %s7424_s26, %s7425_s27  }
  0x45   : > { %p9308_p10 = scmp.ne.s32.totalorder %s9305_s22, 0 }
  0x47   : > { %213 = sbr.rel (%p9308_p10) target bundleno = 1338 (0x53a), region = 36 }
  0x4c   : > { %s215_s29 = sand.u32 1, %s7409_s16   ;;  %p9309_p1 = scmp.ne.s32.totalorder %s9304_s21, 0 }
  0x4d   : > { %s6503_s6 = smul.u32 1920, %s215_s29  ;;  %s216_s7 = scalar_lea.sflag [#allocation3], %s215_s29 }
  0x4f   : > { %s7568_s8 = scalar_lea.vmem [#allocation2], %s6503_s6 }
  0x50   : > { %7396 = dma.done.wait (%p9309_p1), %s216_s7, 30720  }
  0x51   : > { %7398 = vsyncadd (%p9309_p1), %s216_s7, 4294936576  ;;  %p9310_p4 = scmp.ne.s32.totalorder %s9303_s20, 0 }
  0x53   : > { %7400 = dma.done.wait (%p9310_p4), [#allocation5], 15376  }
  0x54   : > { %7402 = vsyncadd (%p9310_p4), [#allocation5], 4294951920  ;;  %v6571_v0 = vld [vmem:[#allocation4 + $0x78] sm:$0xff]   ;;  %v6573_v2 = vld [vmem:[#allocation4 + $0x70] sm:$0xff]   ;;  %s7426_s20 = smov 64   ;;  %s7427_s21 = smov 96  }
  0x55   : > { %v6572_v1 = vld [vmem:[#allocation4 + $0x38] sm:$0xff]   ;;  %5629 = vmatprep.subr.bf16.mxu0 %v6571_v0  ;;  %6485 = vmatprep.subr.bf16.mxu1 %v6571_v0  ;;  %v6574_v3 = vld [vmem:[#allocation4 + $0x30] sm:$0xff]   ;;  %v6575_v4 = vld [vmem:[#allocation4 + $0x68] sm:$0xff]   ;;  %s5230_s22 = sshll.u32 %s5218_s19, 5  ;;  %s7428_s18 = smov 32   ;;  %vm5054_vm0 = vcmask 261120  }
  0x56   : > { %5630 = vmatpush3.bf16.msra.mxu0 %v6572_v1  ;;  %6493 = vmatpush3.bf16.msra.mxu1 %v6572_v1  ;;  %v6576_v5 = vld [vmem:[#allocation4 + $0x28] sm:$0xff]   ;;  %v6577_v6 = vld [vmem:[#allocation4 + $0x60] sm:$0xff]   ;;  %v6579_v8 = vld [vmem:[#allocation4 + $0x58] sm:$0xff]   ;;  %p259_p5 = scmp.lt.s32.totalorder %s5230_s22, 63  ;;  %vm5087_vm1 = vcmask 523264  }
  0x57   : > { %5631 = vmatprep.subr.bf16.mxu0 %v6573_v2  ;;  %6486 = vmatprep.subr.bf16.mxu1 %v6573_v2  ;;  %v6578_v7 = vld [vmem:[#allocation4 + $0x20] sm:$0xff]   ;;  %v6580_v9 = vld [vmem:[#allocation4 + $0x18] sm:$0xff]   ;;  %v6581_v10 = vld [vmem:[#allocation4 + $0x50] sm:$0xff]  }
  0x58   : > { %v6589_v11 = vld [vmem:[%s7568_s8 + $0x4] ss:$60 sps:$4 sm:$0xff]   ;;  %v6582_v13 = vld [vmem:[#allocation4 + $0x10] sm:$0xff]   ;;  %v6583_v14 = vld [vmem:[#allocation4 + $0x48] sm:$0xff]   ;;  %s9339_s22 = smov (!%p259_p5, %s5230_s22), 63 }
  0x59   : > { %v6592_v12 = vld [vmem:[%s7568_s8 + $0x5a4] ss:$60 sps:$4 sm:$0xff]   ;;  %2742 = vmatprep.mubr.bf16.mxu0 %v6589_v11  ;;  %v6584_v15 = vld [vmem:[#allocation4 + $0x8] sm:$0xff]   ;;  %v6593_v18 = vld [vmem:[#allocation4 + $0xf8] sm:$0xff]   ;;  %s5231_s25 = sshll.u32 %s9339_s22, 3 }
  0x5a   : > { %5632 = vmatpush3.bf16.msra.mxu0 %v6574_v3  ;;  %6494 = vmatpush3.bf16.msra.mxu1 %v6574_v3  ;;  %v6585_v16 = vld [vmem:[#allocation4 + $0x40] sm:$0xff]   ;;  %v6594_v21 = vld [vmem:[#allocation4 + $0xb8] sm:$0xff]   ;;  %v6595_v22 = vld [vmem:[#allocation4 + $0xf0] sm:$0xff]   ;;  %s8886_s5 = scalar_lea.vmem %s9297_s3, %s5231_s25  ;;  %s9153_s10 = scalar_lea.vmem %s9298_s4, %s5231_s25 }
  0x5b   : > { %5633 = vmatprep.subr.bf16.mxu0 %v6575_v4  ;;  %6487 = vmatprep.subr.bf16.mxu1 %v6575_v4  ;;  %v6586_v17 = vld [vmem:[#allocation4] sm:$0xff]   ;;  %v6597_v23 = vld [vmem:[%s7568_s8 + $0x7c] ss:$60 sps:$4 sm:$0xff]   ;;  %v6596_v25 = vld [vmem:[#allocation4 + $0xb0] sm:$0xff]  }
  0x5c   : > { %2838 = vmatprep.mubr.bf16.mxu1 %v6592_v12  ;;  %v6587_v19 = vld [vmem:[%s7568_s8] ss:$60 sps:$4 sm:$0xff]   ;;  %v6601_v26 = vld [vmem:[%s7568_s8 + $0x78] ss:$60 sps:$4 sm:$0xff]   ;;  %v6603_v27 = vld [vmem:[#allocation4 + $0xe8] sm:$0xff]  }
  0x5d   : > { %v6590_v20 = vld [vmem:[%s7568_s8 + $0x5a0] ss:$60 sps:$4 sm:$0xff]   ;;  %v6602_v28 = vld [vmem:[%s7568_s8 + $0x618] ss:$60 sps:$4 sm:$0xff]   ;;  %v6604_v29 = vld [vmem:[#allocation4 + $0xa8] sm:$0xff]  }
  0x5e   : > { %5634 = vmatpush3.bf16.msra.mxu0 %v6576_v5  ;;  %6495 = vmatpush3.bf16.msra.mxu1 %v6576_v5  ;;  %v6599_v24 = vld [vmem:[%s7568_s8 + $0x61c] ss:$60 sps:$4 sm:$0xff]   ;;  %v6605_v30 = vld [vmem:[#allocation4 + $0xe0] sm:$0xff]   ;;  %v6607_v31 = vld [vmem:[%s7568_s8 + $0xf4] ss:$60 sps:$4 sm:$0xff]  }
  0x5f   : > { %5635 = vmatprep.subr.bf16.mxu0 %v6577_v6  ;;  %6488 = vmatprep.subr.bf16.mxu1 %v6577_v6  ;;  %v6609_v32 = vld [vmem:[%s7568_s8 + $0x694] ss:$60 sps:$4 sm:$0xff]   ;;  %v6606_v33 = vld [vmem:[#allocation4 + $0xa0] sm:$0xff]   ;;  %v6613_v36 = vld [vmem:[#allocation4 + $0xd8] sm:$0xff]  }
  0x60   : > { %v6611_v34 = vld [vmem:[%s7568_s8 + $0xf0] ss:$60 sps:$4 sm:$0xff]   ;;  %v6614_v37 = vld [vmem:[#allocation4 + $0x98] sm:$0xff]   ;;  %v6621_v44 = vld [vmem:[%s7568_s8 + $0x168] ss:$60 sps:$4 sm:$0xff]  }
  0x61   : > { %v6612_v35 = vld [vmem:[%s7568_s8 + $0x690] ss:$60 sps:$4 sm:$0xff]   ;;  %v6641_v42 = vld [vmem:[#allocation4 + $0x178] sm:$0xff]   ;;  %v6622_v46 = vld [vmem:[%s7568_s8 + $0x708] ss:$60 sps:$4 sm:$0xff]  }
  0x62   : > { %5636 = vmatpush3.bf16.msra.mxu0 %v6578_v7  ;;  %6496 = vmatpush3.bf16.msra.mxu1 %v6578_v7  ;;  %v6615_v38 = vld [vmem:[#allocation4 + $0xd0] sm:$0xff]   ;;  %v6617_v39 = vld [vmem:[%s7568_s8 + $0x16c] ss:$60 sps:$4 sm:$0xff]   ;;  %v6642_v43 = vld [vmem:[#allocation4 + $0x138] sm:$0xff]  }
  0x63   : > { %5637 = vmatprep.subr.bf16.mxu0 %v6579_v8  ;;  %6489 = vmatprep.subr.bf16.mxu1 %v6579_v8  ;;  %v6619_v40 = vld [vmem:[%s7568_s8 + $0x70c] ss:$60 sps:$4 sm:$0xff]   ;;  %v6616_v41 = vld [vmem:[#allocation4 + $0x90] sm:$0xff]   ;;  %v6625_v48 = vld [vmem:[#allocation4 + $0xc0] sm:$0xff]  }
  0x64   : > { %v6623_v45 = vld [vmem:[#allocation4 + $0xc8] sm:$0xff]   ;;  %v6627_v49 = vld [vmem:[%s7568_s8 + $0x1e4] ss:$60 sps:$4 sm:$0xff]   ;;  %v6651_v51 = vld [vmem:[#allocation4 + $0x170] sm:$0xff]  }
  0x65   : > { %v6624_v47 = vld [vmem:[#allocation4 + $0x88] sm:$0xff]   ;;  %v6626_v52 = vld [vmem:[#allocation4 + $0x80] sm:$0xff]   ;;  %v6633_v53 = vld [vmem:[#allocation4 + $0x1f8] sm:$0xff]  }
  0x66   : > { %5638 = vmatpush3.bf16.msra.mxu0 %v6580_v9  ;;  %6497 = vmatpush3.bf16.msra.mxu1 %v6580_v9  ;;  %v6631_v50 = vld [vmem:[%s7568_s8 + $0xc] ss:$60 sps:$4 sm:$0xff]   ;;  %v6656_v54 = vld [vmem:[#allocation4 + $0x130] sm:$0xff]   ;;  %v6632_v56 = vld [vmem:[%s7568_s8 + $0x1e0] ss:$60 sps:$4 sm:$0xff]  }
  0x67   : > { %5639 = vmatprep.subr.bf16.mxu0 %v6581_v10  ;;  %6490 = vmatprep.subr.bf16.mxu1 %v6581_v10  ;;  %v6629_v55 = vld [vmem:[%s7568_s8 + $0x8] ss:$60 sps:$4 sm:$0xff]   ;;  %v6634_v57 = vld [vmem:[#allocation4 + $0x1b8] sm:$0xff]   ;;  %v6649_v60 = vld [vmem:[#allocation4 + $0x1f0] sm:$0xff]  }
  0x68   : > { %v6635_v58 = vld [vmem:[%s7568_s8 + $0x25c] ss:$60 sps:$4 sm:$0xff]   ;;  %v6637_v59 = vld [vmem:[%s7568_s8 + $0x84] ss:$60 sps:$4 sm:$0xff]   ;;  %v6650_v61 = vld [vmem:[#allocation4 + $0x1b0] sm:$0xff]  }
  0x69   : > { %v6667_v62 = vld [vmem:[#allocation4 + $0x168] sm:$0xff]   ;;  %v6639_v0 = vld [vmem:[%s7568_s8 + $0x258] ss:$60 sps:$4 sm:$0xff]   ;;  %v6640_v1 = vld [vmem:[%s7568_s8 + $0x80] ss:$60 sps:$4 sm:$0xff]  }
  0x6a   : > { %5640 = vmatpush3.bf16.msra.mxu0 %v6582_v13  ;;  %6498 = vmatpush3.bf16.msra.mxu1 %v6582_v13  ;;  %v6668_v63 = vld [vmem:[#allocation4 + $0x128] sm:$0xff]   ;;  %v6643_v3 = vld [vmem:[%s7568_s8 + $0x2d4] ss:$60 sps:$4 sm:$0xff]   ;;  %v6645_v4 = vld [vmem:[%s7568_s8 + $0xfc] ss:$60 sps:$4 sm:$0xff]  }
  0x6b   : > { %5641 = vmatprep.subr.bf16.mxu0 %v6583_v14  ;;  %6491 = vmatprep.subr.bf16.mxu1 %v6583_v14  ;;  %v6665_v2 = vld [vmem:[#allocation4 + $0x1e8] sm:$0xff]   ;;  %v6675_v6 = vld [vmem:[#allocation4 + $0x160] sm:$0xff]   ;;  %v6648_v9 = vld [vmem:[%s7568_s8 + $0xf8] ss:$60 sps:$4 sm:$0xff]  }
  0x6c   : > { %v6666_v5 = vld [vmem:[#allocation4 + $0x1a8] sm:$0xff]   ;;  %v6676_v7 = vld [vmem:[#allocation4 + $0x120] sm:$0xff]   ;;  %v6683_v10 = vld [vmem:[#allocation4 + $0x158] sm:$0xff]  }
  0x6d   : > { %v6647_v8 = vld [vmem:[%s7568_s8 + $0x2d0] ss:$60 sps:$4 sm:$0xff]   ;;  %v6684_v13 = vld [vmem:[#allocation4 + $0x1e0] sm:$0xff]   ;;  %v6685_v14 = vld [vmem:[#allocation4 + $0x118] sm:$0xff]  }
  0x6e   : > { %5642 = vmatpush3.bf16.msra.mxu0 %v6584_v15  ;;  %6499 = vmatpush3.bf16.msra.mxu1 %v6584_v15  ;;  %v6652_v11 = vld [vmem:[%s7568_s8 + $0x34c] ss:$60 sps:$4 sm:$0xff]   ;;  %v6654_v12 = vld [vmem:[%s7568_s8 + $0x174] ss:$60 sps:$4 sm:$0xff]   ;;  %v6686_v15 = vld [vmem:[#allocation4 + $0x1a0] sm:$0xff]  }
  0x6f   : > { %5643 = vmatprep.subr.bf16.mxu0 %v6585_v16  ;;  %6492 = vmatprep.subr.bf16.mxu1 %v6585_v16  ;;  %v6687_v16 = vld [vmem:[#allocation4 + $0x150] sm:$0xff]  }
  0x72   : > { %5644 = vmatpush3.bf16.msra.mxu0 %v6586_v17  ;;  %6500 = vmatpush3.bf16.msra.mxu1 %v6586_v17  ;;  %v6688_v17 = vld [vmem:[#allocation4 + $0x110] sm:$0xff]  }
  0x73   : > { %5741 = vmatprep.subr.bf16.mxu1 %v6593_v18  ;;  %5853 = vmatprep.subr.bf16.mxu0 %v6641_v42  ;;  %v6657_v18 = vld [vmem:[%s7568_s8 + $0x348] ss:$60 sps:$4 sm:$0xff]  }
  0x74   : > { %v6689_v42 = vld [vmem:[%s7568_s8 + $0x52c] ss:$60 sps:$4 sm:$0xff]  }
  0x75   : > { %2743 = vmatmul.mubr.bf16.vlgmr.msra.gmra.mxu0 %v6587_v19  ;;  %2839 = vmatmul.mubr.bf16.vlgmr.msra.gmra.mxu1 %v6590_v20  ;;  %v6658_v19 = vld [vmem:[%s7568_s8 + $0x170] ss:$60 sps:$4 sm:$0xff]  }
  0x76   : > { %5742 = vmatpush3.bf16.msra.mxu1 %v6594_v21  ;;  %2750 = vmatprep.mubr.bf16.mxu0 %v6597_v23  ;;  %v6695_v20 = vld [vmem:[#allocation4 + $0x148] sm:$0xff]  }
  0x77   : > { %5743 = vmatprep.subr.bf16.mxu1 %v6595_v22  ;;  %2846 = vmatprep.mubr.bf16.mxu1 %v6599_v24  ;;  %v6696_v21 = vld [vmem:[#allocation4 + $0x108] sm:$0xff]   ;;  %v6659_v22 = vld [vmem:[%s7568_s8 + $0x3c4] ss:$60 sps:$4 sm:$0xff]  }
  0x78   : > { %5854 = vmatpush3.bf16.msra.mxu0 %v6642_v43  ;;  %v6661_v23 = vld [vmem:[%s7568_s8 + $0x1ec] ss:$60 sps:$4 sm:$0xff]   ;;  %v6697_v24 = vld [vmem:[#allocation4 + $0x140] sm:$0xff]   ;;  %v6741_v43 = vld [vmem:[#allocation4 + $0x278] sm:$0xff]  }
  0x79   : > { %5855 = vmatprep.subr.bf16.mxu0 %v6651_v51  ;;  %v6701_v51 = vld [vmem:[%s7568_s8 + $0x10] ss:$60 sps:$4 sm:$0xff]  }
  0x7a   : > { %5744 = vmatpush3.bf16.msra.mxu1 %v6596_v25  ;;  %v6698_v25 = vld [vmem:[#allocation4 + $0x100] sm:$0xff]  }
  0x7b   : > { %5745 = vmatprep.subr.bf16.mxu1 %v6603_v27  ;;  %v6706_v27 = vld [vmem:[#allocation4 + $0x198] sm:$0xff]  }
  0x7c   : > { %5856 = vmatpush3.bf16.msra.mxu0 %v6656_v54  ;;  %v6707_v54 = vld [vmem:[%s7568_s8 + $0x444] ss:$60 sps:$4 sm:$0xff]  }
  0x7d   : > { %2751 = vmatmul.mubr.bf16.gmra.mxu0 %v6601_v26  ;;  %2847 = vmatmul.mubr.bf16.gmra.mxu1 %v6602_v28  ;;  %v6705_v26 = vld [vmem:[#allocation4 + $0x1d8] sm:$0xff]  }
  0x7e   : > { %5746 = vmatpush3.bf16.msra.mxu1 %v6604_v29  ;;  %2758 = vmatprep.mubr.bf16.mxu0 %v6607_v31  ;;  %v6663_v28 = vld [vmem:[%s7568_s8 + $0x3c0] ss:$60 sps:$4 sm:$0xff]   ;;  %v6664_v29 = vld [vmem:[%s7568_s8 + $0x1e8] ss:$60 sps:$4 sm:$0xff]  }
  0x7f   : > { %5747 = vmatprep.subr.bf16.mxu1 %v6605_v30  ;;  %2854 = vmatprep.mubr.bf16.mxu1 %v6609_v32  ;;  %v6669_v30 = vld [vmem:[%s7568_s8 + $0x43c] ss:$60 sps:$4 sm:$0xff]   ;;  %v6671_v31 = vld [vmem:[%s7568_s8 + $0x264] ss:$60 sps:$4 sm:$0xff]   ;;  %v6719_v32 = vld [vmem:[#allocation4 + $0x1d0] sm:$0xff]  }
  0x80   : > { %5857 = vmatprep.subr.bf16.mxu0 %v6667_v62  ;;  %v6713_v62 = vld [vmem:[%s7568_s8 + $0x4bc] ss:$60 sps:$4 sm:$0xff]  }
  0x81   : > { %5858 = vmatpush3.bf16.msra.mxu0 %v6668_v63  ;;  %v6715_v63 = vld [vmem:[%s7568_s8 + $0x104] ss:$60 sps:$4 sm:$0xff]  }
  0x82   : > { %5748 = vmatpush3.bf16.msra.mxu1 %v6606_v33  ;;  %5859 = vmatprep.subr.bf16.mxu0 %v6675_v6  ;;  %v6720_v33 = vld [vmem:[#allocation4 + $0x190] sm:$0xff]   ;;  %v6723_v6 = vld [vmem:[%s7568_s8 + $0x17c] ss:$60 sps:$4 sm:$0xff]  }
  0x83   : > { %5749 = vmatprep.subr.bf16.mxu1 %v6613_v36  ;;  %v6677_v36 = vld [vmem:[%s7568_s8 + $0x4b4] ss:$60 sps:$4 sm:$0xff]  }
  0x85   : > { %2759 = vmatmul.mubr.bf16.gmra.mxu0 %v6611_v34  ;;  %2855 = vmatmul.mubr.bf16.gmra.mxu1 %v6612_v35  ;;  %v6673_v34 = vld [vmem:[%s7568_s8 + $0x438] ss:$60 sps:$4 sm:$0xff]   ;;  %v6674_v35 = vld [vmem:[%s7568_s8 + $0x260] ss:$60 sps:$4 sm:$0xff]  }
  0x86   : > { %5750 = vmatpush3.bf16.msra.mxu1 %v6614_v37  ;;  %2766 = vmatprep.mubr.bf16.mxu0 %v6617_v39  ;;  %v6679_v37 = vld [vmem:[%s7568_s8 + $0x2dc] ss:$60 sps:$4 sm:$0xff]   ;;  %v6734_v39 = vld [vmem:[#allocation4 + $0x188] sm:$0xff]  }
  0x87   : > { %5751 = vmatprep.subr.bf16.mxu1 %v6615_v38  ;;  %2862 = vmatprep.mubr.bf16.mxu1 %v6619_v40  ;;  %v6733_v38 = vld [vmem:[#allocation4 + $0x1c8] sm:$0xff]  }
  0x88   : > { %5860 = vmatpush3.bf16.msra.mxu0 %v6676_v7  ;;  %v6681_v40 = vld [vmem:[%s7568_s8 + $0x4b0] ss:$60 sps:$4 sm:$0xff]  }
  0x89   : > { %5861 = vmatprep.subr.bf16.mxu0 %v6683_v10  ;;  %v6725_v7 = vld [vmem:[%s7568_s8 + $0x530] ss:$60 sps:$4 sm:$0xff]   ;;  %v6726_v10 = vld [vmem:[%s7568_s8 + $0x178] ss:$60 sps:$4 sm:$0xff]  }
  0x8a   : > { %5752 = vmatpush3.bf16.msra.mxu1 %v6616_v41  ;;  %v6682_v41 = vld [vmem:[%s7568_s8 + $0x2d8] ss:$60 sps:$4 sm:$0xff]  }
  0x8b   : > { %5753 = vmatprep.subr.bf16.mxu1 %v6623_v45  ;;  %v6749_v45 = vld [vmem:[#allocation4 + $0x1c0] sm:$0xff]  }
  0x8c   : > { %5862 = vmatpush3.bf16.msra.mxu0 %v6685_v14  ;;  %v6816_v14 = vld [vmem:[#allocation4 + $0x210] sm:$0xff]  }
  0x8d   : > { %2767 = vmatmul.mubr.bf16.gmra.mxu0 %v6621_v44  ;;  %2863 = vmatmul.mubr.bf16.gmra.mxu1 %v6622_v46  ;;  %v6691_v44 = vld [vmem:[%s7568_s8 + $0x354] ss:$60 sps:$4 sm:$0xff]   ;;  %v6750_v46 = vld [vmem:[#allocation4 + $0x180] sm:$0xff]  }
  0x8e   : > { %5754 = vmatpush3.bf16.msra.mxu1 %v6624_v47  ;;  %2774 = vmatprep.mubr.bf16.mxu0 %v6627_v49  ;;  %v6693_v47 = vld [vmem:[%s7568_s8 + $0x528] ss:$60 sps:$4 sm:$0xff]  }
  0x8f   : > { %5755 = vmatprep.subr.bf16.mxu1 %v6625_v48  ;;  %2903 = vmatprep.mubr.bf16.mxu1 %v6631_v50  ;;  %v6694_v48 = vld [vmem:[%s7568_s8 + $0x350] ss:$60 sps:$4 sm:$0xff]  }
  0x90   : > { %5863 = vmatprep.subr.bf16.mxu0 %v6687_v16  ;;  %v6699_v49 = vld [vmem:[%s7568_s8 + $0x3cc] ss:$60 sps:$4 sm:$0xff]   ;;  %v6703_v50 = vld [vmem:[%s7568_s8 + $0x14] ss:$60 sps:$4 sm:$0xff]  }
  0x91   : > { %5864 = vmatpush3.bf16.msra.mxu0 %v6688_v17  ;;  %v6732_v16 = vld [vmem:[%s7568_s8 + $0x1f0] ss:$60 sps:$4 sm:$0xff]   ;;  %v6735_v17 = vld [vmem:[%s7568_s8 + $0x624] ss:$60 sps:$4 sm:$0xff]  }
  0x92   : > { %5756 = vmatpush3.bf16.msra.mxu1 %v6626_v52  ;;  %5865 = vmatprep.subr.bf16.mxu0 %v6695_v20  ;;  %v6765_v52 = vld [vmem:[#allocation4 + $0x2f8] sm:$0xff]   ;;  %v6824_v20 = vld [vmem:[#allocation4 + $0x208] sm:$0xff]  }
  0x93   : > { %5965 = vmatprep.subr.bf16.mxu1 %v6633_v53  ;;  %v6704_v53 = vld [vmem:[%s7568_s8 + $0x3c8] ss:$60 sps:$4 sm:$0xff]  }
  0x95   : > { %2775 = vmatmul.mubr.bf16.gmra.mxu0 %v6632_v56  ;;  %2904 = vmatmul.mubr.bf16.vlgmr.msra.gmra.mxu1 %v6629_v55  ;;  %v6709_v55 = vld [vmem:[%s7568_s8 + $0x8c] ss:$60 sps:$4 sm:$0xff]   ;;  %v6742_v56 = vld [vmem:[#allocation4 + $0x238] sm:$0xff]  }
  0x96   : > { %5966 = vmatpush3.bf16.msra.mxu1 %v6634_v57  ;;  %2782 = vmatprep.mubr.bf16.mxu0 %v6635_v58  ;;  %v6757_v57 = vld [vmem:[#allocation4 + $0x270] sm:$0xff]   ;;  %v6711_v58 = vld [vmem:[%s7568_s8 + $0x440] ss:$60 sps:$4 sm:$0xff]  }
  0x97   : > { %2911 = vmatprep.mubr.bf16.mxu1 %v6637_v59  ;;  %5967 = vmatprep.subr.bf16.mxu1 %v6649_v60  ;;  %v6712_v59 = vld [vmem:[%s7568_s8 + $0x88] ss:$60 sps:$4 sm:$0xff]   ;;  %v6758_v60 = vld [vmem:[#allocation4 + $0x230] sm:$0xff]  }
  0x98   : > { %5866 = vmatpush3.bf16.msra.mxu0 %v6696_v21  ;;  %v6825_v21 = vld [vmem:[#allocation4 + $0x240] sm:$0xff]  }
  0x99   : > { %5867 = vmatprep.subr.bf16.mxu0 %v6697_v24  ;;  %v6740_v24 = vld [vmem:[%s7568_s8 + $0x268] ss:$60 sps:$4 sm:$0xff]  }
  0x9a   : > { %5968 = vmatpush3.bf16.msra.mxu1 %v6650_v61  ;;  %v6773_v61 = vld [vmem:[#allocation4 + $0x268] sm:$0xff]  }
  0x9b   : > { %5969 = vmatprep.subr.bf16.mxu1 %v6665_v2  ;;  %v6790_v2 = vld [vmem:[#allocation4 + $0x220] sm:$0xff]  }
  0x9c   : > { %5868 = vmatpush3.bf16.msra.mxu0 %v6698_v25  ;;  %v6743_v25 = vld [vmem:[%s7568_s8 + $0x69c] ss:$60 sps:$4 sm:$0xff]  }
  0x9d   : > { %2783 = vmatmul.mubr.bf16.gmra.mxu0 %v6639_v0  ;;  %2912 = vmatmul.mubr.bf16.gmra.mxu1 %v6640_v1  ;;  %v6774_v0 = vld [vmem:[#allocation4 + $0x228] sm:$0xff]   ;;  %v6789_v1 = vld [vmem:[#allocation4 + $0x260] sm:$0xff]  }
  0x9e   : > { %2790 = vmatprep.mubr.bf16.mxu0 %v6643_v3  ;;  %2919 = vmatprep.mubr.bf16.mxu1 %v6645_v4  ;;  %v6717_v3 = vld [vmem:[%s7568_s8 + $0x4b8] ss:$60 sps:$4 sm:$0xff]   ;;  %v6718_v4 = vld [vmem:[%s7568_s8 + $0x100] ss:$60 sps:$4 sm:$0xff]  }
  0x9f   : > { %5970 = vmatpush3.bf16.msra.mxu1 %v6666_v5  ;;  %6077 = vmatprep.subr.bf16.mxu0 %v6741_v43  ;;  %v6721_v5 = vld [vmem:[%s7568_s8 + $0x534] ss:$60 sps:$4 sm:$0xff]   ;;  %v6797_v43 = vld [vmem:[#allocation4 + $0x2e8] sm:$0xff]  }
  0xa0   : > { %5971 = vmatprep.subr.bf16.mxu1 %v6684_v13  ;;  %v6815_v13 = vld [vmem:[#allocation4 + $0x250] sm:$0xff]  }
  0xa3   : > { %5972 = vmatpush3.bf16.msra.mxu1 %v6686_v15  ;;  %v6731_v15 = vld [vmem:[%s7568_s8 + $0x5a8] ss:$60 sps:$4 sm:$0xff]  }
  0xa4   : > { %5973 = vmatprep.subr.bf16.mxu1 %v6705_v26  ;;  %v6745_v26 = vld [vmem:[%s7568_s8 + $0x2e4] ss:$60 sps:$4 sm:$0xff]  }
  0xa5   : > { %2791 = vmatmul.mubr.bf16.gmra.mxu0 %v6647_v8  ;;  %2920 = vmatmul.mubr.bf16.gmra.mxu1 %v6648_v9  ;;  %v6805_v8 = vld [vmem:[#allocation4 + $0x258] sm:$0xff]  }
  0xa6   : > { %2798 = vmatprep.mubr.bf16.mxu0 %v6652_v11  ;;  %2927 = vmatprep.mubr.bf16.mxu1 %v6654_v12  ;;  %v6806_v9 = vld [vmem:[#allocation4 + $0x218] sm:$0xff]   ;;  %v6727_v11 = vld [vmem:[%s7568_s8 + $0x5ac] ss:$60 sps:$4 sm:$0xff]   ;;  %v6729_v12 = vld [vmem:[%s7568_s8 + $0x1f4] ss:$60 sps:$4 sm:$0xff]  }
  0xa7   : > { %5974 = vmatpush3.bf16.msra.mxu1 %v6706_v27  ;;  %v6747_v27 = vld [vmem:[%s7568_s8 + $0x698] ss:$60 sps:$4 sm:$0xff]  }
  0xa8   : > { %5975 = vmatprep.subr.bf16.mxu1 %v6719_v32  ;;  %v6756_v32 = vld [vmem:[%s7568_s8 + $0x358] ss:$60 sps:$4 sm:$0xff]  }
  0xab   : > { %5976 = vmatpush3.bf16.msra.mxu1 %v6720_v33  ;;  %v6759_v33 = vld [vmem:[%s7568_s8 + $0x3d4] ss:$60 sps:$4 sm:$0xff]  }
  0xac   : > { %5977 = vmatprep.subr.bf16.mxu1 %v6733_v38  ;;  %v6766_v38 = vld [vmem:[#allocation4 + $0x2b8] sm:$0xff]  }
  0xad   : > { %2799 = vmatmul.mubr.bf16.gmra.mxu0 %v6657_v18  ;;  %2928 = vmatmul.mubr.bf16.gmra.mxu1 %v6658_v19  ;;  %v6737_v18 = vld [vmem:[%s7568_s8 + $0x26c] ss:$60 sps:$4 sm:$0xff]  }
  0xae   : > { %2806 = vmatprep.mubr.bf16.mxu0 %v6659_v22  ;;  %2935 = vmatprep.mubr.bf16.mxu1 %v6661_v23  ;;  %v6823_v19 = vld [vmem:[#allocation4 + $0x248] sm:$0xff]   ;;  %v6826_v22 = vld [vmem:[#allocation4 + $0x200] sm:$0xff]  }
  0xaf   : > { %5978 = vmatpush3.bf16.msra.mxu1 %v6734_v39  ;;  %v6739_v23 = vld [vmem:[%s7568_s8 + $0x620] ss:$60 sps:$4 sm:$0xff]   ;;  %v6767_v39 = vld [vmem:[%s7568_s8 + $0x44c] ss:$60 sps:$4 sm:$0xff]  }
  0xb0   : > { %5979 = vmatprep.subr.bf16.mxu1 %v6749_v45  ;;  %v6772_v45 = vld [vmem:[%s7568_s8 + $0x90] ss:$60 sps:$4 sm:$0xff]  }
  0xb3   : > { %5980 = vmatpush3.bf16.msra.mxu1 %v6750_v46  ;;  %v6775_v46 = vld [vmem:[%s7568_s8 + $0x4c4] ss:$60 sps:$4 sm:$0xff]  }
  0xb4   : > { %6189 = vmatprep.subr.bf16.mxu1 %v6765_v52  ;;  %v6779_v52 = vld [vmem:[%s7568_s8 + $0x4c0] ss:$60 sps:$4 sm:$0xff]  }
  0xb5   : > { %2807 = vmatmul.mubr.bf16.gmra.mxu0 %v6663_v28  ;;  %2936 = vmatmul.mubr.bf16.gmra.mxu1 %v6664_v29  ;;  %v6748_v28 = vld [vmem:[%s7568_s8 + $0x2e0] ss:$60 sps:$4 sm:$0xff]   ;;  %v6751_v29 = vld [vmem:[%s7568_s8 + $0x714] ss:$60 sps:$4 sm:$0xff]  }
  0xb6   : > { %2814 = vmatprep.mubr.bf16.mxu0 %v6669_v30  ;;  %2943 = vmatprep.mubr.bf16.mxu1 %v6671_v31  ;;  %v6753_v30 = vld [vmem:[%s7568_s8 + $0x35c] ss:$60 sps:$4 sm:$0xff]   ;;  %v6755_v31 = vld [vmem:[%s7568_s8 + $0x710] ss:$60 sps:$4 sm:$0xff]  }
  0xbd   : > { %2815 = vmatmul.mubr.bf16.gmra.mxu0 %v6673_v34  ;;  %2944 = vmatmul.mubr.bf16.gmra.mxu1 %v6674_v35  ;;  %v6763_v34 = vld [vmem:[%s7568_s8 + $0x1c] ss:$60 sps:$4 sm:$0xff]  }
  0xbe   : > { %2822 = vmatprep.mubr.bf16.mxu0 %v6677_v36  ;;  %2951 = vmatprep.mubr.bf16.mxu1 %v6679_v37  ;;  %v6869_v35 = vld [vmem:[#allocation4 + $0x378] sm:$0xff]   ;;  %v6764_v37 = vld [vmem:[%s7568_s8 + $0x3d0] ss:$60 sps:$4 sm:$0xff]  }
  0xbf   : > { %v6761_v36 = vld [vmem:[%s7568_s8 + $0x18] ss:$60 sps:$4 sm:$0xff]  }
  0xc5   : > { %2823 = vmatmul.mubr.bf16.gmra.mxu0 %v6681_v40  ;;  %2952 = vmatmul.mubr.bf16.gmra.mxu1 %v6682_v41  ;;  %v6769_v40 = vld [vmem:[%s7568_s8 + $0x94] ss:$60 sps:$4 sm:$0xff]  }
  0xc6   : > { %2830 = vmatprep.mubr.bf16.mxu0 %v6689_v42  ;;  %2959 = vmatprep.mubr.bf16.mxu1 %v6691_v44  ;;  %v6781_v41 = vld [vmem:[#allocation4 + $0x2f0] sm:$0xff]   ;;  %v6771_v44 = vld [vmem:[%s7568_s8 + $0x448] ss:$60 sps:$4 sm:$0xff]  }
  0xc7   : > { %v6782_v42 = vld [vmem:[#allocation4 + $0x2b0] sm:$0xff]  }
  0xcd   : > { %2831 = vmatmul.mubr.bf16.gmra.mxu0 %v6693_v47  ;;  %2960 = vmatmul.mubr.bf16.gmra.mxu1 %v6694_v48  ;;  %v6777_v47 = vld [vmem:[%s7568_s8 + $0x10c] ss:$60 sps:$4 sm:$0xff]  }
  0xce   : > { %2967 = vmatprep.mubr.bf16.mxu1 %v6699_v49  ;;  %3064 = vmatprep.mubr.bf16.mxu0 %v6703_v50  ;;  %v6798_v48 = vld [vmem:[#allocation4 + $0x2a8] sm:$0xff]   ;;  %v6813_v49 = vld [vmem:[#allocation4 + $0x2e0] sm:$0xff]  }
  0xcf   : > { %v6814_v50 = vld [vmem:[#allocation4 + $0x2a0] sm:$0xff]  }
  0xd5   : > { %2968 = vmatmul.mubr.bf16.gmra.mxu1 %v6704_v53  ;;  %3065 = vmatmul.mubr.bf16.vlgmr.msra.gmra.mxu0 %v6701_v51  ;;  %v6833_v51 = vld [vmem:[#allocation4 + $0x2d8] sm:$0xff]   ;;  %v6780_v53 = vld [vmem:[%s7568_s8 + $0x108] ss:$60 sps:$4 sm:$0xff]  }
  0xd6   : > { %2975 = vmatprep.mubr.bf16.mxu1 %v6707_v54  ;;  %3072 = vmatprep.mubr.bf16.mxu0 %v6709_v55  ;;  %v6783_v54 = vld [vmem:[%s7568_s8 + $0x53c] ss:$60 sps:$4 sm:$0xff]   ;;  %v6785_v55 = vld [vmem:[%s7568_s8 + $0x184] ss:$60 sps:$4 sm:$0xff]  }
  0xd7   : > { %6078 = vmatpush3.bf16.msra.mxu0 %v6742_v56  ;;  %v6834_v56 = vld [vmem:[#allocation4 + $0x298] sm:$0xff]  }
  0xd8   : > { %6079 = vmatprep.subr.bf16.mxu0 %v6757_v57  ;;  %v6847_v57 = vld [vmem:[#allocation4 + $0x2d0] sm:$0xff]  }
  0xdb   : > { %6080 = vmatpush3.bf16.msra.mxu0 %v6758_v60  ;;  %v6787_v60 = vld [vmem:[%s7568_s8 + $0x538] ss:$60 sps:$4 sm:$0xff]  }
  0xdc   : > { %6081 = vmatprep.subr.bf16.mxu0 %v6773_v61  ;;  %v6788_v61 = vld [vmem:[%s7568_s8 + $0x180] ss:$60 sps:$4 sm:$0xff]  }
  0xdd   : > { %2976 = vmatmul.mubr.bf16.gmra.mxu1 %v6711_v58  ;;  %3073 = vmatmul.mubr.bf16.gmra.mxu0 %v6712_v59  ;;  %v6848_v58 = vld [vmem:[#allocation4 + $0x290] sm:$0xff]   ;;  %v6861_v59 = vld [vmem:[#allocation4 + $0x2c8] sm:$0xff]  }
  0xde   : > { %2983 = vmatprep.mubr.bf16.mxu1 %v6713_v62  ;;  %3080 = vmatprep.mubr.bf16.mxu0 %v6715_v63  ;;  %v6791_v62 = vld [vmem:[%s7568_s8 + $0x5b4] ss:$60 sps:$4 sm:$0xff]   ;;  %v6793_v63 = vld [vmem:[%s7568_s8 + $0x1fc] ss:$60 sps:$4 sm:$0xff]  }
  0xdf   : > { %6082 = vmatpush3.bf16.msra.mxu0 %v6774_v0  ;;  %v6862_v0 = vld [vmem:[#allocation4 + $0x288] sm:$0xff]  }
  0xe0   : > { %6083 = vmatprep.subr.bf16.mxu0 %v6789_v1  ;;  %v6877_v1 = vld [vmem:[#allocation4 + $0x2c0] sm:$0xff]  }
  0xe3   : > { %6084 = vmatpush3.bf16.msra.mxu0 %v6790_v2  ;;  %v6878_v2 = vld [vmem:[#allocation4 + $0x280] sm:$0xff]  }
  0xe4   : > { %6085 = vmatprep.subr.bf16.mxu0 %v6805_v8 }
  0xe5   : > { %2984 = vmatmul.mubr.bf16.gmra.mxu1 %v6717_v3  ;;  %3081 = vmatmul.mubr.bf16.gmra.mxu0 %v6718_v4  ;;  %v7676_v3 = vld [vmem:[#allocation4 + $0x3b8] sm:$0xff]   ;;  %v6795_v4 = vld [vmem:[%s7568_s8 + $0x5b0] ss:$60 sps:$4 sm:$0xff]  }
  0xe6   : > { %2991 = vmatprep.mubr.bf16.mxu1 %v6721_v5  ;;  %3088 = vmatprep.mubr.bf16.mxu0 %v6723_v6  ;;  %v6796_v5 = vld [vmem:[%s7568_s8 + $0x1f8] ss:$60 sps:$4 sm:$0xff]   ;;  %v6799_v6 = vld [vmem:[%s7568_s8 + $0x62c] ss:$60 sps:$4 sm:$0xff]  }
  0xe7   : > { %6086 = vmatpush3.bf16.msra.mxu0 %v6806_v9 }
  0xe8   : > { %6087 = vmatprep.subr.bf16.mxu0 %v6815_v13  ;;  %v6804_v13 = vld [vmem:[%s7568_s8 + $0x270] ss:$60 sps:$4 sm:$0xff]  }
  0xeb   : > { %6088 = vmatpush3.bf16.msra.mxu0 %v6816_v14 }
  0xec   : > { %6089 = vmatprep.subr.bf16.mxu0 %v6823_v19  ;;  %v6809_v19 = vld [vmem:[%s7568_s8 + $0x2ec] ss:$60 sps:$4 sm:$0xff]  }
  0xed   : > { %2992 = vmatmul.mubr.bf16.gmra.mxu1 %v6725_v7  ;;  %3089 = vmatmul.mubr.bf16.gmra.mxu0 %v6726_v10  ;;  %v6801_v7 = vld [vmem:[%s7568_s8 + $0x274] ss:$60 sps:$4 sm:$0xff]  }
  0xee   : > { %2999 = vmatprep.mubr.bf16.mxu1 %v6727_v11  ;;  %3096 = vmatprep.mubr.bf16.mxu0 %v6729_v12  ;;  %v6803_v12 = vld [vmem:[%s7568_s8 + $0x628] ss:$60 sps:$4 sm:$0xff]  }
  0xef   : > { %6090 = vmatpush3.bf16.msra.mxu0 %v6824_v20 }
  0xf0   : > { %6091 = vmatprep.subr.bf16.mxu0 %v6825_v21 }
  0xf3   : > { %6092 = vmatpush3.bf16.msra.mxu0 %v6826_v22 }
  0xf4   : > { %6301 = vmatprep.subr.bf16.mxu0 %v6869_v35  ;;  %v6819_v35 = vld [vmem:[%s7568_s8 + $0x364] ss:$60 sps:$4 sm:$0xff]  }
  0xf5   : > { %3000 = vmatmul.mubr.bf16.gmra.mxu1 %v6731_v15  ;;  %3097 = vmatmul.mubr.bf16.gmra.mxu0 %v6732_v16 }
  0xf6   : > { %3007 = vmatprep.mubr.bf16.mxu1 %v6735_v17  ;;  %3104 = vmatprep.mubr.bf16.mxu0 %v6737_v18  ;;  %v6807_v18 = vld [vmem:[%s7568_s8 + $0x6a4] ss:$60 sps:$4 sm:$0xff]  }
  0xfd   : > { %3008 = vmatmul.mubr.bf16.gmra.mxu1 %v6739_v23  ;;  %3105 = vmatmul.mubr.bf16.gmra.mxu0 %v6740_v24 }
  0xfe   : > { %3015 = vmatprep.mubr.bf16.mxu1 %v6743_v25  ;;  %3112 = vmatprep.mubr.bf16.mxu0 %v6745_v26 }
 0x105   : > { %3016 = vmatmul.mubr.bf16.gmra.mxu1 %v6747_v27  ;;  %3113 = vmatmul.mubr.bf16.gmra.mxu0 %v6748_v28  ;;  %v6811_v28 = vld [vmem:[%s7568_s8 + $0x6a0] ss:$60 sps:$4 sm:$0xff]  }
 0x106   : > { %3023 = vmatprep.mubr.bf16.mxu1 %v6751_v29  ;;  %3120 = vmatprep.mubr.bf16.mxu0 %v6753_v30  ;;  %v6812_v29 = vld [vmem:[%s7568_s8 + $0x2e8] ss:$60 sps:$4 sm:$0xff]  }
 0x10d   : > { %3024 = vmatmul.mubr.bf16.gmra.mxu1 %v6755_v31  ;;  %3121 = vmatmul.mubr.bf16.gmra.mxu0 %v6756_v32 }
 0x10e   : > { %3128 = vmatprep.mubr.bf16.mxu0 %v6759_v33  ;;  %3225 = vmatprep.mubr.bf16.mxu1 %v6763_v34  ;;  %v6817_v34 = vld [vmem:[%s7568_s8 + $0x71c] ss:$60 sps:$4 sm:$0xff]  }
 0x115   : > { %3129 = vmatmul.mubr.bf16.gmra.mxu0 %v6764_v37  ;;  %3226 = vmatmul.mubr.bf16.vlgmr.msra.gmra.mxu1 %v6761_v36 }
 0x116   : > { %6190 = vmatpush3.bf16.msra.mxu1 %v6766_v38  ;;  %3136 = vmatprep.mubr.bf16.mxu0 %v6767_v39 }
 0x117   : > { %3233 = vmatprep.mubr.bf16.mxu1 %v6769_v40  ;;  %6191 = vmatprep.subr.bf16.mxu1 %v6781_v41 }
 0x11a   : > { %6192 = vmatpush3.bf16.msra.mxu1 %v6782_v42 }
 0x11b   : > { %6193 = vmatprep.subr.bf16.mxu1 %v6797_v43 }
 0x11d   : > { %3137 = vmatmul.mubr.bf16.gmra.mxu0 %v6771_v44  ;;  %3234 = vmatmul.mubr.bf16.gmra.mxu1 %v6772_v45  ;;  %v6821_v44 = vld [vmem:[%s7568_s8 + $0x718] ss:$60 sps:$4 sm:$0xff]  }
 0x11e   : > { %3144 = vmatprep.mubr.bf16.mxu0 %v6775_v46  ;;  %3241 = vmatprep.mubr.bf16.mxu1 %v6777_v47  ;;  %v6822_v47 = vld [vmem:[%s7568_s8 + $0x360] ss:$60 sps:$4 sm:$0xff]  }
 0x11f   : > { %6194 = vmatpush3.bf16.msra.mxu1 %v6798_v48 }
 0x120   : > { %6195 = vmatprep.subr.bf16.mxu1 %v6813_v49 }
 0x123   : > { %6196 = vmatpush3.bf16.msra.mxu1 %v6814_v50  ;;  %v6829_v50 = vld [vmem:[%s7568_s8 + $0x3dc] ss:$60 sps:$4 sm:$0xff]  }
 0x124   : > { %6197 = vmatprep.subr.bf16.mxu1 %v6833_v51  ;;  %v6832_v51 = vld [vmem:[%s7568_s8 + $0x24] ss:$60 sps:$4 sm:$0xff]  }
 0x125   : > { %3145 = vmatmul.mubr.bf16.gmra.mxu0 %v6779_v52  ;;  %3242 = vmatmul.mubr.bf16.gmra.mxu1 %v6780_v53 }
 0x126   : > { %3152 = vmatprep.mubr.bf16.mxu0 %v6783_v54  ;;  %3249 = vmatprep.mubr.bf16.mxu1 %v6785_v55 }
 0x127   : > { %6198 = vmatpush3.bf16.msra.mxu1 %v6834_v56 }
 0x128   : > { %6199 = vmatprep.subr.bf16.mxu1 %v6847_v57 }
 0x12b   : > { %6200 = vmatpush3.bf16.msra.mxu1 %v6848_v58 }
 0x12c   : > { %6201 = vmatprep.subr.bf16.mxu1 %v6861_v59 }
 0x12d   : > { %3153 = vmatmul.mubr.bf16.gmra.mxu0 %v6787_v60  ;;  %3250 = vmatmul.mubr.bf16.gmra.mxu1 %v6788_v61  ;;  %v6827_v60 = vld [vmem:[%s7568_s8 + $0x3d8] ss:$60 sps:$4 sm:$0xff]  }
 0x12e   : > { %3160 = vmatprep.mubr.bf16.mxu0 %v6791_v62  ;;  %3257 = vmatprep.mubr.bf16.mxu1 %v6793_v63  ;;  %v6830_v63 = vld [vmem:[%s7568_s8 + $0x20] ss:$60 sps:$4 sm:$0xff]  }
 0x12f   : > { %6202 = vmatpush3.bf16.msra.mxu1 %v6862_v0 }
 0x130   : > { %6203 = vmatprep.subr.bf16.mxu1 %v6877_v1 }
 0x133   : > { %6204 = vmatpush3.bf16.msra.mxu1 %v6878_v2  ;;  %v6837_v2 = vld [vmem:[%s7568_s8 + $0x454] ss:$60 sps:$4 sm:$0xff]  }
 0x134   : > { %6437 = vmatprep.subr.bf16.mxu1 %v7676_v3 }
 0x135   : > { %v5645_v8 = vpop.f32.mrf.mxu0  ;;  %v5717_v9 = vpop.f32.mrf.mxu1  ;;  %3161 = vmatmul.mubr.bf16.gmra.mxu0 %v6795_v4  ;;  %3258 = vmatmul.mubr.bf16.gmra.mxu1 %v6796_v5  ;;  %v6840_v4 = vld [vmem:[%s7568_s8 + $0x9c] ss:$60 sps:$4 sm:$0xff]   ;;  %v7727_v5 = vld [vmem:[#allocation6] ss:$0 sm:$0xff] }
 0x136   : > { %3168 = vmatprep.mubr.bf16.mxu0 %v6799_v6  ;;  %3265 = vmatprep.mubr.bf16.mxu1 %v6801_v7 }
 0x137   : > { %v5646_v10 = vpop.f32.mrf.mxu0  ;;  %v5718_v11 = vpop.f32.mrf.mxu1 }
 0x138   : > { %v7685_v14 = vadd.f32 %v5646_v10, %v5645_v8  ;;  %v7687_v15 = vadd.f32 %v5718_v11, %v5717_v9  ;;  %v6870_v8 = vld [vmem:[#allocation4 + $0x338] sm:$0xff]   ;;  %v6885_v9 = vld [vmem:[#allocation4 + $0x370] sm:$0xff]  }
 0x139   : > { %v5648_v16 = vpop.f32.mrf.mxu0  ;;  %v5720_v17 = vpop.f32.mrf.mxu1 }
 0x13b   : > { %v5649_v20 = vpop.f32.mrf.mxu0  ;;  %v5721_v21 = vpop.f32.mrf.mxu1 }
 0x13c   : > { %v7691_v22 = vadd.f32 %v5649_v20, %v5648_v16  ;;  %v7693_v23 = vadd.f32 %v5721_v21, %v5720_v17  ;;  %v6886_v16 = vld [vmem:[#allocation4 + $0x330] sm:$0xff]   ;;  %v2745_v17 = vadd.f32 %v7685_v14, %v7727_v5 }
 0x13d   : > { %v5651_v24 = vpop.f32.mrf.mxu0  ;;  %v5723_v25 = vpop.f32.mrf.mxu1  ;;  %3169 = vmatmul.mubr.bf16.gmra.mxu0 %v6803_v12  ;;  %3266 = vmatmul.mubr.bf16.gmra.mxu1 %v6804_v13  ;;  %v6835_v21 = vld [vmem:[%s7568_s8 + $0x450] ss:$60 sps:$4 sm:$0xff]  }
 0x13e   : > { %3176 = vmatprep.mubr.bf16.mxu0 %v6807_v18  ;;  %3273 = vmatprep.mubr.bf16.mxu1 %v6809_v19  ;;  %v6900_v18 = vld [vmem:[#allocation4 + $0x368] sm:$0xff]  }
 0x13f   : > { %v5652_v26 = vpop.f32.mrf.mxu0  ;;  %v5724_v27 = vpop.f32.mrf.mxu1 }
 0x140   : > { %v7697_v30 = vadd.f32 %v5652_v26, %v5651_v24  ;;  %v7699_v31 = vadd.f32 %v5724_v27, %v5723_v25  ;;  %v6838_v24 = vld [vmem:[%s7568_s8 + $0x98] ss:$60 sps:$4 sm:$0xff]  }
 0x141   : > { %v5654_v32 = vpop.f32.mrf.mxu0  ;;  %v5726_v33 = vpop.f32.mrf.mxu1 }
 0x143   : > { %v5655_v36 = vpop.f32.mrf.mxu0  ;;  %v5727_v37 = vpop.f32.mrf.mxu1 }
 0x144   : > { %v7703_v38 = vadd.f32 %v5655_v36, %v5654_v32  ;;  %v7705_v39 = vadd.f32 %v5727_v37, %v5726_v33  ;;  %v6843_v32 = vld [vmem:[%s7568_s8 + $0x4cc] ss:$60 sps:$4 sm:$0xff]   ;;  %v6846_v33 = vld [vmem:[%s7568_s8 + $0x114] ss:$60 sps:$4 sm:$0xff]   ;;  %v6915_v37 = vld [vmem:[#allocation4 + $0x360] sm:$0xff]  }
 0x145   : > { %v5657_v40 = vpop.f32.mrf.mxu0  ;;  %v5729_v41 = vpop.f32.mrf.mxu1  ;;  %3177 = vmatmul.mubr.bf16.gmra.mxu0 %v6811_v28  ;;  %3274 = vmatmul.mubr.bf16.gmra.mxu1 %v6812_v29  ;;  %v2748_v29 = vadd.f32 %v7691_v22, %v7727_v5  ;;  %v6901_v36 = vld [vmem:[#allocation4 + $0x328] sm:$0xff]   ;;  %v2753_v22 = vadd.f32 %v7697_v30, %v7727_v5 }
 0x146   : > { %3184 = vmatprep.mubr.bf16.mxu0 %v6817_v34  ;;  %3281 = vmatprep.mubr.bf16.mxu1 %v6819_v35  ;;  %v2756_v30 = vadd.f32 %v7703_v38, %v7727_v5 }
 0x147   : > { %v5658_v42 = vpop.f32.mrf.mxu0  ;;  %v5730_v43 = vpop.f32.mrf.mxu1 }
 0x148   : > { %v7708_v45 = vadd.f32 %v5658_v42, %v5657_v40  ;;  %v7710_v46 = vadd.f32 %v5730_v43, %v5729_v41 }
 0x149   : > { %v5660_v48 = vpop.f32.mrf.mxu0  ;;  %v5732_v49 = vpop.f32.mrf.mxu1 }
 0x14a   : > { %v2761_v38 = vadd.f32 %v7708_v45, %v7727_v5 }
 0x14b   : > { %v5661_v52 = vpop.f32.mrf.mxu0  ;;  %v5733_v53 = vpop.f32.mrf.mxu1 }
 0x14c   : > { %v7715_v54 = vadd.f32 %v5661_v52, %v5660_v48  ;;  %v7717_v55 = vadd.f32 %v5733_v53, %v5732_v49  ;;  %v6916_v49 = vld [vmem:[#allocation4 + $0x320] sm:$0xff]   ;;  %v6930_v52 = vld [vmem:[#allocation4 + $0x358] sm:$0xff]  }
 0x14d   : > { %v5663_v56 = vpop.f32.mrf.mxu0  ;;  %v5735_v57 = vpop.f32.mrf.mxu1  ;;  %3185 = vmatmul.mubr.bf16.gmra.mxu0 %v6821_v44  ;;  %3282 = vmatmul.mubr.bf16.gmra.mxu1 %v6822_v47 }
 0x14e   : > { %3289 = vmatprep.mubr.bf16.mxu1 %v6829_v50  ;;  %3386 = vmatprep.mubr.bf16.mxu0 %v6832_v51  ;;  %v2764_v45 = vadd.f32 %v7715_v54, %v7727_v5 }
 0x14f   : > { %v5664_v58 = vpop.f32.mrf.mxu0  ;;  %v5736_v59 = vpop.f32.mrf.mxu1 }
 0x150   : > { %v7720_v61 = vadd.f32 %v5664_v58, %v5663_v56  ;;  %v7722_v62 = vadd.f32 %v5736_v59, %v5735_v57  ;;  %v6841_v57 = vld [vmem:[%s7568_s8 + $0x4c8] ss:$60 sps:$4 sm:$0xff]   ;;  %v6844_v58 = vld [vmem:[%s7568_s8 + $0x110] ss:$60 sps:$4 sm:$0xff]  }
 0x151   : > { %v5666_v0 = vpop.f32.mrf.mxu0  ;;  %v5738_v1 = vpop.f32.mrf.mxu1 }
 0x152   : > { %v2769_v54 = vadd.f32 %v7720_v61, %v7727_v5 }
 0x153   : > { %v5667_v6 = vpop.f32.mrf.mxu0  ;;  %v5739_v7 = vpop.f32.mrf.mxu1 }
 0x154   : > { %v7729_v10 = vadd.f32 %v5667_v6, %v5666_v0  ;;  %v7731_v11 = vadd.f32 %v5739_v7, %v5738_v1  ;;  %v6939_v7 = vld [vmem:[#allocation4 + $0x350] sm:$0xff]  }
 0x155   : > { %v5669_v12 = vpop.f32.mrf.mxu0  ;;  %v5757_v13 = vpop.f32.mrf.mxu1  ;;  %3290 = vmatmul.mubr.bf16.gmra.mxu1 %v6827_v60  ;;  %3387 = vmatmul.mubr.bf16.vlgmr.msra.gmra.mxu0 %v6830_v63  ;;  %v6851_v60 = vld [vmem:[%s7568_s8 + $0x544] ss:$60 sps:$4 sm:$0xff]   ;;  %v6854_v63 = vld [vmem:[%s7568_s8 + $0x18c] ss:$60 sps:$4 sm:$0xff]  }
 0x156   : > { %3297 = vmatprep.mubr.bf16.mxu1 %v6837_v2  ;;  %3394 = vmatprep.mubr.bf16.mxu0 %v6840_v4  ;;  %v6931_v2 = vld [vmem:[#allocation4 + $0x318] sm:$0xff]   ;;  %v2772_v61 = vadd.f32 %v7729_v10, %v7727_v5 }
 0x157   : > { %v5670_v19 = vpop.f32.mrf.mxu0  ;;  %v5758_v20 = vpop.f32.mrf.mxu1  ;;  %6302 = vmatpush3.bf16.msra.mxu0 %v6870_v8 }
 0x158   : > { %v7737_v25 = vadd.f32 %v5670_v19, %v5669_v12  ;;  %v5759_v26 = vadd.f32 %v5758_v20, %v5757_v13  ;;  %6303 = vmatprep.subr.bf16.mxu0 %v6885_v9  ;;  %v6947_v20 = vld [vmem:[#allocation4 + $0x348] sm:$0xff]  }
 0x159   : > { %v5672_v27 = vpop.f32.mrf.mxu0  ;;  %v5760_v28 = vpop.f32.mrf.mxu1 }
 0x15a   : > { %v7741_v14 = vadd.f32 %v5759_v26, %v2745_v17  ;;  %v6940_v17 = vld [vmem:[#allocation4 + $0x310] sm:$0xff]   ;;  %v6849_v26 = vld [vmem:[%s7568_s8 + $0x540] ss:$60 sps:$4 sm:$0xff]   ;;  %v2777_v10 = vadd.f32 %v7737_v25, %v7727_v5 }
 0x15b   : > { %v5673_v34 = vpop.f32.mrf.mxu0  ;;  %v5761_v35 = vpop.f32.mrf.mxu1  ;;  %6304 = vmatpush3.bf16.msra.mxu0 %v6886_v16  ;;  %v6876_v25 = vld [vmem:[%s7568_s8 + $0x2f4] ss:$60 sps:$4 sm:$0xff]  }
 0x15c   : > { %v7745_v40 = vadd.f32 %v5673_v34, %v5672_v27  ;;  %v5762_v41 = vadd.f32 %v5761_v35, %v5760_v28  ;;  %6305 = vmatprep.subr.bf16.mxu0 %v6900_v18  ;;  %v6852_v27 = vld [vmem:[%s7568_s8 + $0x188] ss:$60 sps:$4 sm:$0xff]  }
 0x15d   : > { %v5675_v42 = vpop.f32.mrf.mxu0  ;;  %v5763_v43 = vpop.f32.mrf.mxu1  ;;  %3298 = vmatmul.mubr.bf16.gmra.mxu1 %v6835_v21  ;;  %3395 = vmatmul.mubr.bf16.gmra.mxu0 %v6838_v24  ;;  %v6948_v35 = vld [vmem:[#allocation4 + $0x308] sm:$0xff]  }
 0x15e   : > { %v7749_v44 = vadd.f32 %v5762_v41, %v2748_v29  ;;  %3305 = vmatprep.mubr.bf16.mxu1 %v6843_v32  ;;  %3402 = vmatprep.mubr.bf16.mxu0 %v6846_v33  ;;  %v6857_v29 = vld [vmem:[%s7568_s8 + $0x5bc] ss:$60 sps:$4 sm:$0xff]   ;;  %v6860_v32 = vld [vmem:[%s7568_s8 + $0x204] ss:$60 sps:$4 sm:$0xff]  }
 0x15f   : > { %v5676_v47 = vpop.f32.mrf.mxu0  ;;  %v5764_v48 = vpop.f32.mrf.mxu1  ;;  %6306 = vmatpush3.bf16.msra.mxu0 %v6901_v36  ;;  %v6949_v41 = vld [vmem:[#allocation4 + $0x340] sm:$0xff]  }
 0x160   : > { %v7751_v50 = vadd.f32 %v5676_v47, %v5675_v42  ;;  %v5765_v51 = vadd.f32 %v5764_v48, %v5763_v43  ;;  %6307 = vmatprep.subr.bf16.mxu0 %v6915_v37 }
 0x161   : > { %v5678_v53 = vpop.f32.mrf.mxu0  ;;  %v5766_v56 = vpop.f32.mrf.mxu1 }
 0x162   : > { %v7757_v59 = vadd.f32 %v5765_v51, %v2753_v22 }
 0x163   : > { %v5679_v0 = vpop.f32.mrf.mxu0  ;;  %v5767_v1 = vpop.f32.mrf.mxu1  ;;  %6308 = vmatpush3.bf16.msra.mxu0 %v6916_v49  ;;  %v6950_v49 = vld [vmem:[#allocation4 + $0x300] sm:$0xff]  }
 0x164   : > { %v7761_v4 = vadd.f32 %v5679_v0, %v5678_v53  ;;  %v5768_v6 = vadd.f32 %v5767_v1, %v5766_v56  ;;  %6309 = vmatprep.subr.bf16.mxu0 %v6930_v52 }
 0x165   : > { %v5681_v8 = vpop.f32.mrf.mxu0  ;;  %v5769_v9 = vpop.f32.mrf.mxu1  ;;  %3306 = vmatmul.mubr.bf16.gmra.mxu1 %v6841_v57  ;;  %3403 = vmatmul.mubr.bf16.gmra.mxu0 %v6844_v58  ;;  %v6855_v57 = vld [vmem:[%s7568_s8 + $0x5b8] ss:$60 sps:$4 sm:$0xff]   ;;  %v6858_v58 = vld [vmem:[%s7568_s8 + $0x200] ss:$60 sps:$4 sm:$0xff]  }
 0x166   : > { %v7765_v12 = vadd.f32 %v5768_v6, %v2756_v30  ;;  %3313 = vmatprep.mubr.bf16.mxu1 %v6851_v60  ;;  %3410 = vmatprep.mubr.bf16.mxu0 %v6854_v63  ;;  %v6865_v60 = vld [vmem:[%s7568_s8 + $0x634] ss:$60 sps:$4 sm:$0xff]   ;;  %v6868_v63 = vld [vmem:[%s7568_s8 + $0x27c] ss:$60 sps:$4 sm:$0xff]  }
 0x167   : > { %v5682_v13 = vpop.f32.mrf.mxu0  ;;  %v5770_v16 = vpop.f32.mrf.mxu1  ;;  %6310 = vmatpush3.bf16.msra.mxu0 %v6931_v2 }
 0x168   : > { %v7767_v18 = vadd.f32 %v5682_v13, %v5681_v8  ;;  %v5771_v19 = vadd.f32 %v5770_v16, %v5769_v9  ;;  %6311 = vmatprep.subr.bf16.mxu0 %v6939_v7 }
 0x169   : > { %v5684_v21 = vpop.f32.mrf.mxu0  ;;  %v5772_v24 = vpop.f32.mrf.mxu1 }
 0x16a   : > { %v7773_v28 = vadd.f32 %v5771_v19, %v2761_v38 }
 0x16b   : > { %v5685_v33 = vpop.f32.mrf.mxu0  ;;  %v5773_v34 = vpop.f32.mrf.mxu1  ;;  %6312 = vmatpush3.bf16.msra.mxu0 %v6940_v17 }
 0x16c   : > { %v7777_v36 = vadd.f32 %v5685_v33, %v5684_v21  ;;  %v5774_v37 = vadd.f32 %v5773_v34, %v5772_v24  ;;  %6313 = vmatprep.subr.bf16.mxu0 %v6947_v20  ;;  %v6863_v21 = vld [vmem:[%s7568_s8 + $0x630] ss:$60 sps:$4 sm:$0xff]   ;;  %v6866_v24 = vld [vmem:[%s7568_s8 + $0x278] ss:$60 sps:$4 sm:$0xff]  }
 0x16d   : > { %v5687_v42 = vpop.f32.mrf.mxu0  ;;  %v5775_v43 = vpop.f32.mrf.mxu1  ;;  %3314 = vmatmul.mubr.bf16.gmra.mxu1 %v6849_v26  ;;  %3411 = vmatmul.mubr.bf16.gmra.mxu0 %v6852_v27  ;;  %v2780_v26 = vadd.f32 %v7745_v40, %v7727_v5  ;;  %v2785_v40 = vadd.f32 %v7751_v50, %v7727_v5  ;;  %v6884_v50 = vld [vmem:[%s7568_s8 + $0x36c] ss:$60 sps:$4 sm:$0xff]  }
 0x16e   : > { %v7781_v22 = vadd.f32 %v5774_v37, %v2764_v45  ;;  %3321 = vmatprep.mubr.bf16.mxu1 %v6857_v29  ;;  %3418 = vmatprep.mubr.bf16.mxu0 %v6860_v32  ;;  %v6873_v45 = vld [vmem:[%s7568_s8 + $0x6ac] ss:$60 sps:$4 sm:$0xff]  }
 0x16f   : > { %v5688_v47 = vpop.f32.mrf.mxu0  ;;  %v5776_v48 = vpop.f32.mrf.mxu1  ;;  %6314 = vmatpush3.bf16.msra.mxu0 %v6948_v35 }
 0x170   : > { %v7783_v51 = vadd.f32 %v5688_v47, %v5687_v42  ;;  %v5777_v52 = vadd.f32 %v5776_v48, %v5775_v43  ;;  %6315 = vmatprep.subr.bf16.mxu0 %v6949_v41 }
 0x171   : > { %v5690_v53 = vpop.f32.mrf.mxu0  ;;  %v5778_v56 = vpop.f32.mrf.mxu1 }
 0x172   : > { %v7789_v30 = vadd.f32 %v5777_v52, %v2769_v54  ;;  %v6871_v52 = vld [vmem:[%s7568_s8 + $0x6a8] ss:$60 sps:$4 sm:$0xff]  }
 0x173   : > { %v5691_v0 = vpop.f32.mrf.mxu0  ;;  %v5779_v1 = vpop.f32.mrf.mxu1  ;;  %6316 = vmatpush3.bf16.msra.mxu0 %v6950_v49 }
 0x174   : > { %v7793_v2 = vadd.f32 %v5691_v0, %v5690_v53  ;;  %v5780_v6 = vadd.f32 %v5779_v1, %v5778_v56  ;;  %v6874_v53 = vld [vmem:[%s7568_s8 + $0x2f0] ss:$60 sps:$4 sm:$0xff]   ;;  %v2788_v56 = vadd.f32 %v7761_v4, %v7727_v5  ;;  %v2793_v4 = vadd.f32 %v7767_v18, %v7727_v5 }
 0x175   : > { %v5693_v7 = vpop.f32.mrf.mxu0  ;;  %v5781_v8 = vpop.f32.mrf.mxu1  ;;  %3322 = vmatmul.mubr.bf16.gmra.mxu1 %v6855_v57  ;;  %3419 = vmatmul.mubr.bf16.gmra.mxu0 %v6858_v58  ;;  %v6881_v58 = vld [vmem:[%s7568_s8 + $0x724] ss:$60 sps:$4 sm:$0xff]   ;;  %v6892_v18 = vld [vmem:[%s7568_s8 + $0x2c] ss:$60 sps:$4 sm:$0xff]  }
 0x176   : > { %v7797_v9 = vadd.f32 %v5780_v6, %v2772_v61  ;;  %3329 = vmatprep.mubr.bf16.mxu1 %v6865_v60  ;;  %3426 = vmatprep.mubr.bf16.mxu0 %v6868_v63 }
 0x177   : > { %v5694_v38 = vpop.f32.mrf.mxu0  ;;  %v5782_v13 = vpop.f32.mrf.mxu1 }
 0x178   : > { %v7799_v16 = vadd.f32 %v5694_v38, %v5693_v7  ;;  %v5783_v17 = vadd.f32 %v5782_v13, %v5781_v8 }
 0x179   : > { %v5696_v19 = vpop.f32.mrf.mxu0  ;;  %v5784_v20 = vpop.f32.mrf.mxu1 }
 0x17a   : > { %v7805_v27 = vadd.f32 %v5783_v17, %v2777_v10 }
 0x17b   : > { %v5697_v29 = vpop.f32.mrf.mxu0  ;;  %v5785_v32 = vpop.f32.mrf.mxu1 }
 0x17c   : > { %v7809_v33 = vadd.f32 %v5697_v29, %v5696_v19  ;;  %v5786_v34 = vadd.f32 %v5785_v32, %v5784_v20  ;;  %v6879_v20 = vld [vmem:[%s7568_s8 + $0x720] ss:$60 sps:$4 sm:$0xff]  }
 0x17d   : > { %v5699_v35 = vpop.f32.mrf.mxu0  ;;  %v5787_v37 = vpop.f32.mrf.mxu1  ;;  %3330 = vmatmul.mubr.bf16.gmra.mxu1 %v6863_v21  ;;  %3427 = vmatmul.mubr.bf16.gmra.mxu0 %v6866_v24  ;;  %v6882_v21 = vld [vmem:[%s7568_s8 + $0x368] ss:$60 sps:$4 sm:$0xff]   ;;  %v2796_v24 = vadd.f32 %v7777_v36, %v7727_v5 }
 0x17e   : > { %v7813_v41 = vadd.f32 %v5786_v34, %v2780_v26  ;;  %3337 = vmatprep.mubr.bf16.mxu1 %v6873_v45  ;;  %3434 = vmatprep.mubr.bf16.mxu0 %v6876_v25  ;;  %v6889_v45 = vld [vmem:[%s7568_s8 + $0x3e4] ss:$60 sps:$4 sm:$0xff]  }
 0x17f   : > { %v5700_v42 = vpop.f32.mrf.mxu0  ;;  %v5788_v43 = vpop.f32.mrf.mxu1 }
 0x180   : > { %v7815_v54 = vadd.f32 %v5700_v42, %v5699_v35  ;;  %v5789_v47 = vadd.f32 %v5788_v43, %v5787_v37 }
 0x181   : > { %v5702_v48 = vpop.f32.mrf.mxu0  ;;  %v5790_v49 = vpop.f32.mrf.mxu1 }
 0x182   : > { %v7821_v57 = vadd.f32 %v5789_v47, %v2785_v40  ;;  %v2801_v40 = vadd.f32 %v7783_v51, %v7727_v5  ;;  %v6896_v51 = vld [vmem:[%s7568_s8 + $0x45c] ss:$60 sps:$4 sm:$0xff]  }
 0x183   : > { %v5703_v61 = vpop.f32.mrf.mxu0  ;;  %v5791_v60 = vpop.f32.mrf.mxu1 }
 0x184   : > { %v7825_v63 = vadd.f32 %v5703_v61, %v5702_v48  ;;  %v5792_v0 = vadd.f32 %v5791_v60, %v5790_v49 }
 0x185   : > { %v5705_v1 = vpop.f32.mrf.mxu0  ;;  %v5793_v6 = vpop.f32.mrf.mxu1  ;;  %3338 = vmatmul.mubr.bf16.gmra.mxu1 %v6871_v52  ;;  %3435 = vmatmul.mubr.bf16.gmra.mxu0 %v6874_v53  ;;  %v6887_v53 = vld [vmem:[%s7568_s8 + $0x3e0] ss:$60 sps:$4 sm:$0xff]  }
 0x186   : > { %v7829_v7 = vadd.f32 %v5792_v0, %v2788_v56  ;;  %3345 = vmatprep.mubr.bf16.mxu1 %v6881_v58  ;;  %3442 = vmatprep.mubr.bf16.mxu0 %v6884_v50  ;;  %v6890_v56 = vld [vmem:[%s7568_s8 + $0x28] ss:$60 sps:$4 sm:$0xff]   ;;  %v2804_v58 = vadd.f32 %v7793_v2, %v7727_v5 }
 0x187   : > { %v5706_v8 = vpop.f32.mrf.mxu0  ;;  %v5794_v10 = vpop.f32.mrf.mxu1  ;;  %v6899_v0 = vld [vmem:[%s7568_s8 + $0xa4] ss:$60 sps:$4 sm:$0xff]  }
 0x188   : > { %v7831_v38 = vadd.f32 %v5706_v8, %v5705_v1  ;;  %v5795_v13 = vadd.f32 %v5794_v10, %v5793_v6  ;;  %v6908_v1 = vld [vmem:[#allocation4 + $0x3b0] sm:$0xff]  }
 0x189   : > { %v5708_v17 = vpop.f32.mrf.mxu0  ;;  %v5796_v19 = vpop.f32.mrf.mxu1 }
 0x18a   : > { %v7837_v26 = vadd.f32 %v5795_v13, %v2793_v4  ;;  %v2809_v13 = vadd.f32 %v7799_v16, %v7727_v5  ;;  %v2812_v16 = vadd.f32 %v7809_v33, %v7727_v5  ;;  %v2817_v33 = vadd.f32 %v7815_v54, %v7727_v5  ;;  %v6905_v54 = vld [vmem:[%s7568_s8 + $0x118] ss:$60 sps:$4 sm:$0xff]  }
 0x18b   : > { %v5709_v25 = vpop.f32.mrf.mxu0  ;;  %v5797_v29 = vpop.f32.mrf.mxu1 }
 0x18c   : > { %v7841_v32 = vadd.f32 %v5709_v25, %v5708_v17  ;;  %v5798_v34 = vadd.f32 %v5797_v29, %v5796_v19  ;;  %v6894_v25 = vld [vmem:[%s7568_s8 + $0x458] ss:$60 sps:$4 sm:$0xff]   ;;  %v6897_v29 = vld [vmem:[%s7568_s8 + $0xa0] ss:$60 sps:$4 sm:$0xff]  }
 0x18d   : > { %v5711_v35 = vpop.f32.mrf.mxu0  ;;  %v5799_v37 = vpop.f32.mrf.mxu1  ;;  %3346 = vmatmul.mubr.bf16.gmra.mxu1 %v6879_v20  ;;  %3443 = vmatmul.mubr.bf16.gmra.mxu0 %v6882_v21  ;;  %v6923_v20 = vld [vmem:[#allocation4 + $0x3a8] sm:$0xff]  }
 0x18e   : > { %v7845_v36 = vadd.f32 %v5798_v34, %v2796_v24  ;;  %3450 = vmatprep.mubr.bf16.mxu0 %v6889_v45  ;;  %3547 = vmatprep.mubr.bf16.mxu1 %v6892_v18 }
 0x18f   : > { %v5712_v42 = vpop.f32.mrf.mxu0  ;;  %v5800_v43 = vpop.f32.mrf.mxu1 }
 0x190   : > { %v7847_v47 = vadd.f32 %v5712_v42, %v5711_v35  ;;  %v5801_v48 = vadd.f32 %v5800_v43, %v5799_v37  ;;  %v6904_v35 = vld [vmem:[%s7568_s8 + $0x4d4] ss:$60 sps:$4 sm:$0xff]   ;;  %v6907_v37 = vld [vmem:[%s7568_s8 + $0x11c] ss:$60 sps:$4 sm:$0xff]  }
 0x191   : > { %v5714_v49 = vpop.f32.mrf.mxu0  ;;  %v5802_v52 = vpop.f32.mrf.mxu1 }
 0x192   : > { %v7853_v50 = vadd.f32 %v5801_v48, %v2801_v40 }
 0x193   : > { %v5715_v61 = vpop.f32.mrf.mxu0  ;;  %v5803_v60 = vpop.f32.mrf.mxu1 }
 0x194   : > { %v7857_v6 = vadd.f32 %v5715_v61, %v5714_v49  ;;  %v5804_v4 = vadd.f32 %v5803_v60, %v5802_v52  ;;  %v6938_v49 = vld [vmem:[#allocation4 + $0x3a0] sm:$0xff]  }
 0x195   : > { %v5805_v8 = vpop.f32.mrf.mxu1  ;;  %v5869_v10 = vpop.f32.mrf.mxu0  ;;  %3451 = vmatmul.mubr.bf16.gmra.mxu0 %v6887_v53  ;;  %3548 = vmatmul.mubr.bf16.vlgmr.msra.gmra.mxu1 %v6890_v56 }
 0x196   : > { %v7861_v2 = vadd.f32 %v5804_v4, %v2804_v58  ;;  %6438 = vmatpush3.bf16.msra.mxu1 %v7676_v3  ;;  %3458 = vmatprep.mubr.bf16.mxu0 %v6896_v51 }
 0x197   : > { %v5806_v17 = vpop.f32.mrf.mxu1  ;;  %v5870_v19 = vpop.f32.mrf.mxu0  ;;  %3555 = vmatprep.mubr.bf16.mxu1 %v6899_v0  ;;  %6439 = vmatprep.subr.bf16.mxu1 %v6908_v1  ;;  %v6957_v0 = vld [vmem:[#allocation4 + $0x398] sm:$0xff]  }
 0x198   : > { %v5807_v21 = vadd.f32 %v5806_v17, %v5805_v8  ;;  %v5871_v24 = vadd.f32 %v5870_v19, %v5869_v10  ;;  %v6902_v8 = vld [vmem:[%s7568_s8 + $0x4d0] ss:$60 sps:$4 sm:$0xff]   ;;  %v2820_v10 = vadd.f32 %v7825_v63, %v7727_v5  ;;  %v2825_v63 = vadd.f32 %v7831_v38, %v7727_v5 }
 0x199   : > { %v5808_v45 = vpop.f32.mrf.mxu1  ;;  %v5872_v18 = vpop.f32.mrf.mxu0  ;;  %v6911_v17 = vld [vmem:[%s7568_s8 + $0x54c] ss:$60 sps:$4 sm:$0xff]   ;;  %v6914_v19 = vld [vmem:[%s7568_s8 + $0x194] ss:$60 sps:$4 sm:$0xff]  }
 0x19a   : > { %v7868_v34 = vadd.f32 %v5807_v21, %v2809_v13  ;;  %v7871_v3 = vadd.f32 %v5871_v24, %v7741_v14  ;;  %6440 = vmatpush3.bf16.msra.mxu1 %v6908_v1  ;;  %v6912_v38 = vld [vmem:[%s7568_s8 + $0x190] ss:$60 sps:$4 sm:$0xff]  }
 0x19b   : > { %v5809_v40 = vpop.f32.mrf.mxu1  ;;  %v5873_v42 = vpop.f32.mrf.mxu0  ;;  %6441 = vmatprep.subr.bf16.mxu1 %v6923_v20 }
 0x19c   : > { %v5810_v43 = vadd.f32 %v5809_v40, %v5808_v45  ;;  %v5874_v48 = vadd.f32 %v5873_v42, %v5872_v18  ;;  %v6970_v18 = vld [vmem:[#allocation4 + $0x390] sm:$0xff]  }
 0x19d   : > { %v5811_v52 = vpop.f32.mrf.mxu1  ;;  %v5875_v53 = vpop.f32.mrf.mxu0  ;;  %3459 = vmatmul.mubr.bf16.gmra.mxu0 %v6894_v25  ;;  %3556 = vmatmul.mubr.bf16.gmra.mxu1 %v6897_v29 }
 0x19e   : > { %v7877_v14 = vadd.f32 %v5810_v43, %v2812_v16  ;;  %v7880_v56 = vadd.f32 %v5874_v48, %v7749_v44  ;;  %3466 = vmatprep.mubr.bf16.mxu0 %v6904_v35  ;;  %3563 = vmatprep.mubr.bf16.mxu1 %v6907_v37  ;;  %v6983_v43 = vld [vmem:[#allocation4 + $0x388] sm:$0xff]  }
 0x19f   : > { %v5812_v58 = vpop.f32.mrf.mxu1  ;;  %v5876_v51 = vpop.f32.mrf.mxu0  ;;  %6442 = vmatpush3.bf16.msra.mxu1 %v6923_v20 }
 0x1a0   : > { %v5813_v61 = vadd.f32 %v5812_v58, %v5811_v52  ;;  %v5877_v60 = vadd.f32 %v5876_v51, %v5875_v53  ;;  %6443 = vmatprep.subr.bf16.mxu1 %v6938_v49  ;;  %v6909_v52 = vld [vmem:[%s7568_s8 + $0x548] ss:$60 sps:$4 sm:$0xff]   ;;  %v2828_v53 = vadd.f32 %v7841_v32, %v7727_v5  ;;  %v2833_v32 = vadd.f32 %v7847_v47, %v7727_v5 }
 0x1a1   : > { %v5814_v1 = vpop.f32.mrf.mxu1  ;;  %v5878_v4 = vpop.f32.mrf.mxu0  ;;  %v6919_v58 = vld [vmem:[%s7568_s8 + $0x5c4] ss:$60 sps:$4 sm:$0xff]   ;;  %v6922_v51 = vld [vmem:[%s7568_s8 + $0x20c] ss:$60 sps:$4 sm:$0xff]   ;;  %v2836_v47 = vadd.f32 %v7857_v6, %v7727_v5 }
 0x1a2   : > { %v7886_v44 = vadd.f32 %v5813_v61, %v2817_v33  ;;  %v7889_v13 = vadd.f32 %v5877_v60, %v7757_v59 }
 0x1a3   : > { %v5815_v21 = vpop.f32.mrf.mxu1  ;;  %v5879_v20 = vpop.f32.mrf.mxu0  ;;  %6444 = vmatpush3.bf16.msra.mxu1 %v6938_v49 }
 0x1a4   : > { %v5816_v24 = vadd.f32 %v5815_v21, %v5814_v1  ;;  %v5880_v45 = vadd.f32 %v5879_v20, %v5878_v4  ;;  %6445 = vmatprep.subr.bf16.mxu1 %v6957_v0  ;;  %v6996_v4 = vld [vmem:[#allocation4 + $0x380] sm:$0xff]  }
 0x1a5   : > { %v5817_v25 = vpop.f32.mrf.mxu1  ;;  %v5881_v29 = vpop.f32.mrf.mxu0  ;;  %3467 = vmatmul.mubr.bf16.gmra.mxu0 %v6902_v8  ;;  %3564 = vmatmul.mubr.bf16.gmra.mxu1 %v6905_v54 }
 0x1a6   : > { %v7895_v59 = vadd.f32 %v5816_v24, %v2820_v10  ;;  %v7898_v16 = vadd.f32 %v5880_v45, %v7765_v12  ;;  %3474 = vmatprep.mubr.bf16.mxu0 %v6911_v17  ;;  %3571 = vmatprep.mubr.bf16.mxu1 %v6914_v19 }
 0x1a7   : > { %v5818_v35 = vpop.f32.mrf.mxu1  ;;  %v5882_v37 = vpop.f32.mrf.mxu0  ;;  %6446 = vmatpush3.bf16.msra.mxu1 %v6957_v0 }
 0x1a8   : > { %v5819_v40 = vadd.f32 %v5818_v35, %v5817_v25  ;;  %v5883_v42 = vadd.f32 %v5882_v37, %v5881_v29  ;;  %6447 = vmatprep.subr.bf16.mxu1 %v6970_v18  ;;  %v6920_v25 = vld [vmem:[%s7568_s8 + $0x208] ss:$60 sps:$4 sm:$0xff]  }
 0x1a9   : > { %v5820_v48 = vpop.f32.mrf.mxu1  ;;  %v5884_v49 = vpop.f32.mrf.mxu0  ;;  %v6929_v35 = vld [vmem:[%s7568_s8 + $0x284] ss:$60 sps:$4 sm:$0xff]  }
 0x1aa   : > { %v7904_v12 = vadd.f32 %v5819_v40, %v2825_v63  ;;  %v7907_v33 = vadd.f32 %v5883_v42, %v7773_v28  ;;  %v6926_v63 = vld [vmem:[%s7568_s8 + $0x63c] ss:$60 sps:$4 sm:$0xff]  }
 0x1ab   : > { %v5821_v61 = vpop.f32.mrf.mxu1  ;;  %v5885_v60 = vpop.f32.mrf.mxu0  ;;  %6448 = vmatpush3.bf16.msra.mxu1 %v6970_v18  ;;  %v6917_v18 = vld [vmem:[%s7568_s8 + $0x5c0] ss:$60 sps:$4 sm:$0xff]  }
 0x1ac   : > { %v5822_v0 = vadd.f32 %v5821_v61, %v5820_v48  ;;  %v5886_v1 = vadd.f32 %v5885_v60, %v5884_v49  ;;  %6449 = vmatprep.subr.bf16.mxu1 %v6983_v43 }
 0x1ad   : > { %v5823_v8 = vpop.f32.mrf.mxu1  ;;  %v5887_v54 = vpop.f32.mrf.mxu0  ;;  %3475 = vmatmul.mubr.bf16.gmra.mxu0 %v6909_v52  ;;  %3572 = vmatmul.mubr.bf16.gmra.mxu1 %v6912_v38 }
 0x1ae   : > { %v7913_v28 = vadd.f32 %v5822_v0, %v2828_v53  ;;  %v7916_v10 = vadd.f32 %v5886_v1, %v7781_v22  ;;  %3482 = vmatprep.mubr.bf16.mxu0 %v6919_v58  ;;  %3579 = vmatprep.mubr.bf16.mxu1 %v6922_v51  ;;  %v2841_v53 = vadd.f32 %v7687_v15, %v7727_v5  ;;  %v6924_v0 = vld [vmem:[%s7568_s8 + $0x638] ss:$60 sps:$4 sm:$0xff]   ;;  %v6927_v1 = vld [vmem:[%s7568_s8 + $0x280] ss:$60 sps:$4 sm:$0xff]  }
 0x1af   : > { %v5824_v17 = vpop.f32.mrf.mxu1  ;;  %v5888_v19 = vpop.f32.mrf.mxu0  ;;  %6450 = vmatpush3.bf16.msra.mxu1 %v6983_v43 }
 0x1b0   : > { %v5825_v21 = vadd.f32 %v5824_v17, %v5823_v8  ;;  %v5889_v20 = vadd.f32 %v5888_v19, %v5887_v54  ;;  %6451 = vmatprep.subr.bf16.mxu1 %v6996_v4  ;;  %v6937_v54 = vld [vmem:[%s7568_s8 + $0x2fc] ss:$60 sps:$4 sm:$0xff]   ;;  %v2844_v19 = vadd.f32 %v7693_v23, %v7727_v5  ;;  %v2849_v23 = vadd.f32 %v7699_v31, %v7727_v5 }
 0x1b1   : > { %v5826_v24 = vpop.f32.mrf.mxu1  ;;  %v5890_v45 = vpop.f32.mrf.mxu0 }
 0x1b2   : > { %v7922_v29 = vadd.f32 %v5825_v21, %v2833_v32  ;;  %v7925_v22 = vadd.f32 %v5889_v20, %v7789_v30 }
 0x1b3   : > { %v5827_v37 = vpop.f32.mrf.mxu1  ;;  %v5891_v40 = vpop.f32.mrf.mxu0  ;;  %6452 = vmatpush3.bf16.msra.mxu1 %v6996_v4 }
 0x1b4   : > { %v5828_v42 = vadd.f32 %v5827_v37, %v5826_v24  ;;  %v5892_v43 = vadd.f32 %v5891_v40, %v5890_v45  ;;  %v6932_v40 = vld [vmem:[%s7568_s8 + $0x6b0] ss:$60 sps:$4 sm:$0xff]  }
 0x1b5   : > { %v5829_v48 = vpop.f32.mrf.mxu1  ;;  %v5893_v49 = vpop.f32.mrf.mxu0  ;;  %3483 = vmatmul.mubr.bf16.gmra.mxu0 %v6917_v18  ;;  %3580 = vmatmul.mubr.bf16.gmra.mxu1 %v6920_v25 }
 0x1b6   : > { %v7929_v6 = vadd.f32 %v5828_v42, %v2836_v47  ;;  %v7932_v30 = vadd.f32 %v5892_v43, %v7797_v9  ;;  %3490 = vmatprep.mubr.bf16.mxu0 %v6926_v63  ;;  %3587 = vmatprep.mubr.bf16.mxu1 %v6929_v35  ;;  %v6934_v9 = vld [vmem:[%s7568_s8 + $0x6b4] ss:$60 sps:$4 sm:$0xff]  }
 0x1b7   : > { %v5830_v52 = vpop.f32.mrf.mxu1  ;;  %v5894_v38 = vpop.f32.mrf.mxu0  ;;  %v6935_v42 = vld [vmem:[%s7568_s8 + $0x2f8] ss:$60 sps:$4 sm:$0xff]  }
 0x1b8   : > { %v5831_v58 = vadd.f32 %v5830_v52, %v5829_v48  ;;  %v5895_v51 = vadd.f32 %v5894_v38, %v5893_v49  ;;  %v6946_v49 = vld [vmem:[%s7568_s8 + $0x374] ss:$60 sps:$4 sm:$0xff]  }
 0x1b9   : > { %v5832_v61 = vpop.f32.mrf.mxu1  ;;  %v5896_v60 = vpop.f32.mrf.mxu0 }
 0x1ba   : > { %v7938_v4 = vadd.f32 %v5831_v58, %v2841_v53  ;;  %v7941_v8 = vadd.f32 %v5895_v51, %v7805_v27  ;;  %v2852_v53 = vadd.f32 %v7705_v39, %v7727_v5  ;;  %v2857_v39 = vadd.f32 %v7710_v46, %v7727_v5 }
 0x1bb   : > { %v5833_v32 = vpop.f32.mrf.mxu1  ;;  %v5897_v17 = vpop.f32.mrf.mxu0 }
 0x1bc   : > { %v5834_v21 = vadd.f32 %v5833_v32, %v5832_v61  ;;  %v5898_v15 = vadd.f32 %v5897_v17, %v5896_v60 }
 0x1bd   : > { %v5835_v20 = vpop.f32.mrf.mxu1  ;;  %v5899_v24 = vpop.f32.mrf.mxu0  ;;  %3491 = vmatmul.mubr.bf16.gmra.mxu0 %v6924_v0  ;;  %3588 = vmatmul.mubr.bf16.gmra.mxu1 %v6927_v1 }
 0x1be   : > { %v7947_v45 = vadd.f32 %v5834_v21, %v2844_v19  ;;  %v7950_v27 = vadd.f32 %v5898_v15, %v7813_v41  ;;  %3498 = vmatprep.mubr.bf16.mxu0 %v6934_v9  ;;  %3595 = vmatprep.mubr.bf16.mxu1 %v6937_v54  ;;  %v6943_v41 = vld [vmem:[%s7568_s8 + $0x72c] ss:$60 sps:$4 sm:$0xff]  }
 0x1bf   : > { %v5836_v18 = vpop.f32.mrf.mxu1  ;;  %v5900_v25 = vpop.f32.mrf.mxu0  ;;  %v6941_v19 = vld [vmem:[%s7568_s8 + $0x728] ss:$60 sps:$4 sm:$0xff]   ;;  %v6944_v21 = vld [vmem:[%s7568_s8 + $0x370] ss:$60 sps:$4 sm:$0xff]  }
 0x1c0   : > { %v5837_v47 = vadd.f32 %v5836_v18, %v5835_v20  ;;  %v5901_v63 = vadd.f32 %v5900_v25, %v5899_v24  ;;  %v6956_v24 = vld [vmem:[%s7568_s8 + $0x34] ss:$60 sps:$4 sm:$0xff]  }
 0x1c1   : > { %v5838_v35 = vpop.f32.mrf.mxu1  ;;  %v5902_v37 = vpop.f32.mrf.mxu0 }
 0x1c2   : > { %v7956_v43 = vadd.f32 %v5837_v47, %v2849_v23  ;;  %v7959_v48 = vadd.f32 %v5901_v63, %v7821_v57  ;;  %v2860_v23 = vadd.f32 %v7717_v55, %v7727_v5  ;;  %v2865_v55 = vadd.f32 %v7722_v62, %v7727_v5 }
 0x1c3   : > { %v5839_v52 = vpop.f32.mrf.mxu1  ;;  %v5903_v38 = vpop.f32.mrf.mxu0 }
 0x1c4   : > { %v5840_v58 = vadd.f32 %v5839_v52, %v5838_v35  ;;  %v5904_v31 = vadd.f32 %v5903_v38, %v5902_v37 }
 0x1c5   : > { %v5841_v51 = vpop.f32.mrf.mxu1  ;;  %v5905_v61 = vpop.f32.mrf.mxu0  ;;  %3499 = vmatmul.mubr.bf16.gmra.mxu0 %v6932_v40  ;;  %3596 = vmatmul.mubr.bf16.gmra.mxu1 %v6935_v42 }
 0x1c6   : > { %v7965_v60 = vadd.f32 %v5840_v58, %v2852_v53  ;;  %v7968_v57 = vadd.f32 %v5904_v31, %v7829_v7  ;;  %3506 = vmatprep.mubr.bf16.mxu0 %v6943_v41  ;;  %3603 = vmatprep.mubr.bf16.mxu1 %v6946_v49  ;;  %v6953_v7 = vld [vmem:[%s7568_s8 + $0x3ec] ss:$60 sps:$4 sm:$0xff]  }
 0x1c7   : > { %v5842_v0 = vpop.f32.mrf.mxu1  ;;  %v5906_v1 = vpop.f32.mrf.mxu0  ;;  %v6951_v53 = vld [vmem:[%s7568_s8 + $0x3e8] ss:$60 sps:$4 sm:$0xff]   ;;  %v6954_v58 = vld [vmem:[%s7568_s8 + $0x30] ss:$60 sps:$4 sm:$0xff]  }
 0x1c8   : > { %v5843_v9 = vadd.f32 %v5842_v0, %v5841_v51  ;;  %v5907_v54 = vadd.f32 %v5906_v1, %v5905_v61  ;;  %v6963_v61 = vld [vmem:[%s7568_s8 + $0xac] ss:$60 sps:$4 sm:$0xff]  }
 0x1c9   : > { %v5844_v32 = vpop.f32.mrf.mxu1  ;;  %v5908_v17 = vpop.f32.mrf.mxu0 }
 0x1ca   : > { %v7974_v15 = vadd.f32 %v5843_v9, %v2857_v39  ;;  %v7977_v20 = vadd.f32 %v5907_v54, %v7837_v26  ;;  %v2868_v39 = vadd.f32 %v7731_v11, %v7727_v5 }
 0x1cb   : > { %v5845_v18 = vpop.f32.mrf.mxu1  ;;  %v5909_v25 = vpop.f32.mrf.mxu0 }
 0x1cc   : > { %v5846_v47 = vadd.f32 %v5845_v18, %v5844_v32  ;;  %v5910_v46 = vadd.f32 %v5909_v25, %v5908_v17  ;;  %v6958_v18 = vld [vmem:[%s7568_s8 + $0x460] ss:$60 sps:$4 sm:$0xff]   ;;  %v6961_v25 = vld [vmem:[%s7568_s8 + $0xa8] ss:$60 sps:$4 sm:$0xff]  }
 0x1cd   : > { %v5847_v63 = vpop.f32.mrf.mxu1  ;;  %v5911_v35 = vpop.f32.mrf.mxu0  ;;  %3507 = vmatmul.mubr.bf16.gmra.mxu0 %v6941_v19  ;;  %3604 = vmatmul.mubr.bf16.gmra.mxu1 %v6944_v21 }
 0x1ce   : > { %v7983_v37 = vadd.f32 %v5846_v47, %v2860_v23  ;;  %v7986_v26 = vadd.f32 %v5910_v46, %v7845_v36  ;;  %3611 = vmatprep.mubr.bf16.mxu1 %v6953_v7  ;;  %3708 = vmatprep.mubr.bf16.mxu0 %v6956_v24  ;;  %v6960_v36 = vld [vmem:[%s7568_s8 + $0x464] ss:$60 sps:$4 sm:$0xff]   ;;  %v6966_v46 = vld [vmem:[%s7568_s8 + $0x4dc] ss:$60 sps:$4 sm:$0xff]  }
 0x1cf   : > { %v5848_v40 = vpop.f32.mrf.mxu1  ;;  %v5912_v42 = vpop.f32.mrf.mxu0 }
 0x1d0   : > { %v5849_v41 = vadd.f32 %v5848_v40, %v5847_v63  ;;  %v5913_v49 = vadd.f32 %v5912_v42, %v5911_v35  ;;  %v6969_v63 = vld [vmem:[%s7568_s8 + $0x124] ss:$60 sps:$4 sm:$0xff]  }
 0x1d1   : > { %v5850_v52 = vpop.f32.mrf.mxu1  ;;  %v5914_v38 = vpop.f32.mrf.mxu0 }
 0x1d2   : > { %v7992_v31 = vadd.f32 %v5849_v41, %v2865_v55  ;;  %v7995_v51 = vadd.f32 %v5913_v49, %v7853_v50 }
 0x1d3   : > { %v5851_v0 = vpop.f32.mrf.mxu1  ;;  %v5915_v1 = vpop.f32.mrf.mxu0 }
 0x1d4   : > { %v5852_v9 = vadd.f32 %v5851_v0, %v5850_v52  ;;  %v5916_v62 = vadd.f32 %v5915_v1, %v5914_v38  ;;  %v6967_v0 = vld [vmem:[%s7568_s8 + $0x120] ss:$60 sps:$4 sm:$0xff]  }
 0x1d5   : > { %v5917_v54 = vpop.f32.mrf.mxu0  ;;  %v5981_v32 = vpop.f32.mrf.mxu1  ;;  %3612 = vmatmul.mubr.bf16.gmra.mxu1 %v6951_v53  ;;  %3709 = vmatmul.mubr.bf16.vlgmr.msra.gmra.mxu0 %v6954_v58 }
 0x1d6   : > { %v8001_v17 = vadd.f32 %v5852_v9, %v2868_v39  ;;  %v8004_v50 = vadd.f32 %v5916_v62, %v7861_v2  ;;  %3619 = vmatprep.mubr.bf16.mxu1 %v6960_v36  ;;  %3716 = vmatprep.mubr.bf16.mxu0 %v6963_v61  ;;  %v6964_v61 = vld [vmem:[%s7568_s8 + $0x4d8] ss:$60 sps:$4 sm:$0xff]  }
 0x1d7   : > { %v5918_v19 = vpop.f32.mrf.mxu0  ;;  %v5982_v21 = vpop.f32.mrf.mxu1  ;;  %v6976_v9 = vld [vmem:[%s7568_s8 + $0x19c] ss:$60 sps:$4 sm:$0xff]  }
 0x1d8   : > { %v5919_v5 = vadd.f32 %v5918_v19, %v5917_v54  ;;  %v5983_v11 = vadd.f32 %v5982_v21, %v5981_v32 }
 0x1d9   : > { %v5920_v7 = vpop.f32.mrf.mxu0  ;;  %v5984_v24 = vpop.f32.mrf.mxu1 }
 0x1da   : > { %v8009_v23 = vadd.f32 %v5919_v5, %v7868_v34  ;;  %v8012_v47 = vadd.f32 %v5983_v11, %v7871_v3 }
 0x1db   : > { %v5921_v2 = vpop.f32.mrf.mxu0  ;;  %v5985_v35 = vpop.f32.mrf.mxu1 }
 0x1dc   : > { %v5922_v40 = vadd.f32 %v5921_v2, %v5920_v7  ;;  %v5986_v42 = vadd.f32 %v5985_v35, %v5984_v24 }
 0x1dd   : > { %v5923_v55 = vpop.f32.mrf.mxu0  ;;  %v5987_v41 = vpop.f32.mrf.mxu1  ;;  %3620 = vmatmul.mubr.bf16.gmra.mxu1 %v6958_v18  ;;  %3717 = vmatmul.mubr.bf16.gmra.mxu0 %v6961_v25 }
 0x1de   : > { %v8017_v34 = vadd.f32 %v5922_v40, %v7877_v14  ;;  %v8020_v3 = vadd.f32 %v5986_v42, %v7880_v56  ;;  %3627 = vmatprep.mubr.bf16.mxu1 %v6966_v46  ;;  %3724 = vmatprep.mubr.bf16.mxu0 %v6969_v63  ;;  %v6973_v14 = vld [vmem:[%s7568_s8 + $0x554] ss:$60 sps:$4 sm:$0xff]  }
 0x1df   : > { %v5924_v49 = vpop.f32.mrf.mxu0  ;;  %v5988_v52 = vpop.f32.mrf.mxu1  ;;  %v6971_v46 = vld [vmem:[%s7568_s8 + $0x550] ss:$60 sps:$4 sm:$0xff]   ;;  %v6974_v63 = vld [vmem:[%s7568_s8 + $0x198] ss:$60 sps:$4 sm:$0xff]  }
 0x1e0   : > { %v5925_v38 = vadd.f32 %v5924_v49, %v5923_v55  ;;  %v5989_v53 = vadd.f32 %v5988_v52, %v5987_v41  ;;  %v6982_v40 = vld [vmem:[%s7568_s8 + $0x214] ss:$60 sps:$4 sm:$0xff]  }
 0x1e1   : > { %v5926_v58 = vpop.f32.mrf.mxu0  ;;  %v5990_v36 = vpop.f32.mrf.mxu1 }
 0x1e2   : > { %v8025_v1 = vadd.f32 %v5925_v38, %v7886_v44  ;;  %v8028_v39 = vadd.f32 %v5989_v53, %v7889_v13 }
 0x1e3   : > { %v5927_v56 = vpop.f32.mrf.mxu0  ;;  %v5991_v62 = vpop.f32.mrf.mxu1 }
 0x1e4   : > { %v5928_v54 = vadd.f32 %v5927_v56, %v5926_v58  ;;  %v5992_v32 = vadd.f32 %v5991_v62, %v5990_v36 }
 0x1e5   : > { %v5929_v19 = vpop.f32.mrf.mxu0  ;;  %v5993_v21 = vpop.f32.mrf.mxu1  ;;  %3628 = vmatmul.mubr.bf16.gmra.mxu1 %v6964_v61  ;;  %3725 = vmatmul.mubr.bf16.gmra.mxu0 %v6967_v0 }
 0x1e6   : > { %v8033_v44 = vadd.f32 %v5928_v54, %v7895_v59  ;;  %v8036_v13 = vadd.f32 %v5992_v32, %v7898_v16  ;;  %3635 = vmatprep.mubr.bf16.mxu1 %v6973_v14  ;;  %3732 = vmatprep.mubr.bf16.mxu0 %v6976_v9  ;;  %v6979_v59 = vld [vmem:[%s7568_s8 + $0x5cc] ss:$60 sps:$4 sm:$0xff]  }
 0x1e7   : > { %v5930_v5 = vpop.f32.mrf.mxu0  ;;  %v5994_v11 = vpop.f32.mrf.mxu1  ;;  %v6977_v14 = vld [vmem:[%s7568_s8 + $0x5c8] ss:$60 sps:$4 sm:$0xff]   ;;  %v6980_v9 = vld [vmem:[%s7568_s8 + $0x210] ss:$60 sps:$4 sm:$0xff]  }
 0x1e8   : > { %v5931_v7 = vadd.f32 %v5930_v5, %v5929_v19  ;;  %v5995_v24 = vadd.f32 %v5994_v11, %v5993_v21  ;;  %v6989_v54 = vld [vmem:[%s7568_s8 + $0x28c] ss:$60 sps:$4 sm:$0xff]  }
 0x1e9   : > { %v5932_v18 = vpop.f32.mrf.mxu0  ;;  %v5996_v25 = vpop.f32.mrf.mxu1 }
 0x1ea   : > { %v8041_v2 = vadd.f32 %v5931_v7, %v7904_v12  ;;  %v8044_v35 = vadd.f32 %v5995_v24, %v7907_v33 }
 0x1eb   : > { %v5933_v16 = vpop.f32.mrf.mxu0  ;;  %v5997_v42 = vpop.f32.mrf.mxu1 }
 0x1ec   : > { %v5934_v55 = vadd.f32 %v5933_v16, %v5932_v18  ;;  %v5998_v41 = vadd.f32 %v5997_v42, %v5996_v25 }
 0x1ed   : > { %v5935_v49 = vpop.f32.mrf.mxu0  ;;  %v5999_v52 = vpop.f32.mrf.mxu1  ;;  %3636 = vmatmul.mubr.bf16.gmra.mxu1 %v6971_v46  ;;  %3733 = vmatmul.mubr.bf16.gmra.mxu0 %v6974_v63 }
 0x1ee   : > { %v8049_v12 = vadd.f32 %v5934_v55, %v7913_v28  ;;  %v8052_v33 = vadd.f32 %v5998_v41, %v7916_v10  ;;  %3643 = vmatprep.mubr.bf16.mxu1 %v6979_v59  ;;  %3740 = vmatprep.mubr.bf16.mxu0 %v6982_v40  ;;  %v6986_v28 = vld [vmem:[%s7568_s8 + $0x644] ss:$60 sps:$4 sm:$0xff]  }
 0x1ef   : > { %v5936_v38 = vpop.f32.mrf.mxu0  ;;  %v6000_v53 = vpop.f32.mrf.mxu1  ;;  %v6984_v59 = vld [vmem:[%s7568_s8 + $0x640] ss:$60 sps:$4 sm:$0xff]   ;;  %v6987_v40 = vld [vmem:[%s7568_s8 + $0x288] ss:$60 sps:$4 sm:$0xff]  }
 0x1f0   : > { %v5937_v58 = vadd.f32 %v5936_v38, %v5935_v49  ;;  %v6001_v36 = vadd.f32 %v6000_v53, %v5999_v52  ;;  %v6995_v55 = vld [vmem:[%s7568_s8 + $0x304] ss:$60 sps:$4 sm:$0xff]  }
 0x1f1   : > { %v5938_v61 = vpop.f32.mrf.mxu0  ;;  %v6002_v0 = vpop.f32.mrf.mxu1 }
 0x1f2   : > { %v8057_v56 = vadd.f32 %v5937_v58, %v7922_v29  ;;  %v8060_v62 = vadd.f32 %v6001_v36, %v7925_v22 }
 0x1f3   : > { %v5939_v10 = vpop.f32.mrf.mxu0  ;;  %v6003_v32 = vpop.f32.mrf.mxu1 }
 0x1f4   : > { %v5940_v19 = vadd.f32 %v5939_v10, %v5938_v61  ;;  %v6004_v21 = vadd.f32 %v6003_v32, %v6002_v0 }
 0x1f5   : > { %v5941_v5 = vpop.f32.mrf.mxu0  ;;  %v6005_v11 = vpop.f32.mrf.mxu1  ;;  %3644 = vmatmul.mubr.bf16.gmra.mxu1 %v6977_v14  ;;  %3741 = vmatmul.mubr.bf16.gmra.mxu0 %v6980_v9 }
 0x1f6   : > { %v8065_v29 = vadd.f32 %v5940_v19, %v7929_v6  ;;  %v8068_v22 = vadd.f32 %v6004_v21, %v7932_v30  ;;  %3651 = vmatprep.mubr.bf16.mxu1 %v6986_v28  ;;  %3748 = vmatprep.mubr.bf16.mxu0 %v6989_v54  ;;  %v6992_v6 = vld [vmem:[%s7568_s8 + $0x6bc] ss:$60 sps:$4 sm:$0xff]  }
 0x1f7   : > { %v5942_v7 = vpop.f32.mrf.mxu0  ;;  %v6006_v24 = vpop.f32.mrf.mxu1  ;;  %v6990_v28 = vld [vmem:[%s7568_s8 + $0x6b8] ss:$60 sps:$4 sm:$0xff]   ;;  %v6993_v54 = vld [vmem:[%s7568_s8 + $0x300] ss:$60 sps:$4 sm:$0xff]  }
 0x1f8   : > { %v5943_v18 = vadd.f32 %v5942_v7, %v5941_v5  ;;  %v6007_v25 = vadd.f32 %v6006_v24, %v6005_v11  ;;  %v7002_v19 = vld [vmem:[%s7568_s8 + $0x37c] ss:$60 sps:$4 sm:$0xff]  }
 0x1f9   : > { %v5944_v46 = vpop.f32.mrf.mxu0  ;;  %v6008_v63 = vpop.f32.mrf.mxu1 }
 0x1fa   : > { %v8073_v16 = vadd.f32 %v5943_v18, %v7938_v4  ;;  %v8076_v42 = vadd.f32 %v6007_v25, %v7941_v8 }
 0x1fb   : > { %v5945_v30 = vpop.f32.mrf.mxu0  ;;  %v6009_v41 = vpop.f32.mrf.mxu1 }
 0x1fc   : > { %v5946_v49 = vadd.f32 %v5945_v30, %v5944_v46  ;;  %v6010_v52 = vadd.f32 %v6009_v41, %v6008_v63 }
 0x1fd   : > { %v5947_v38 = vpop.f32.mrf.mxu0  ;;  %v6011_v53 = vpop.f32.mrf.mxu1  ;;  %3652 = vmatmul.mubr.bf16.gmra.mxu1 %v6984_v59  ;;  %3749 = vmatmul.mubr.bf16.gmra.mxu0 %v6987_v40 }
 0x1fe   : > { %v8081_v4 = vadd.f32 %v5946_v49, %v7947_v45  ;;  %v8084_v8 = vadd.f32 %v6010_v52, %v7950_v27  ;;  %3659 = vmatprep.mubr.bf16.mxu1 %v6992_v6  ;;  %3756 = vmatprep.mubr.bf16.mxu0 %v6995_v55  ;;  %v6999_v45 = vld [vmem:[%s7568_s8 + $0x734] ss:$60 sps:$4 sm:$0xff]  }
 0x1ff   : > { %v5948_v58 = vpop.f32.mrf.mxu0  ;;  %v6012_v36 = vpop.f32.mrf.mxu1  ;;  %v6997_v6 = vld [vmem:[%s7568_s8 + $0x730] ss:$60 sps:$4 sm:$0xff]   ;;  %v7000_v55 = vld [vmem:[%s7568_s8 + $0x378] ss:$60 sps:$4 sm:$0xff]  }
 0x200   : > { %v5949_v61 = vadd.f32 %v5948_v58, %v5947_v38  ;;  %v6013_v0 = vadd.f32 %v6012_v36, %v6011_v53  ;;  %v7006_v49 = vld [vmem:[%s7568_s8 + $0x38] ss:$60 sps:$4 sm:$0xff]  }
 0x201   : > { %v5950_v14 = vpop.f32.mrf.mxu0  ;;  %v6014_v9 = vpop.f32.mrf.mxu1 }
 0x202   : > { %v8089_v10 = vadd.f32 %v5949_v61, %v7956_v43  ;;  %v8092_v32 = vadd.f32 %v6013_v0, %v7959_v48 }
 0x203   : > { %v5951_v27 = vpop.f32.mrf.mxu0  ;;  %v6015_v21 = vpop.f32.mrf.mxu1 }
 0x204   : > { %v5952_v5 = vadd.f32 %v5951_v27, %v5950_v14  ;;  %v6016_v11 = vadd.f32 %v6015_v21, %v6014_v9 }
 0x205   : > { %v5953_v7 = vpop.f32.mrf.mxu0  ;;  %v6017_v24 = vpop.f32.mrf.mxu1  ;;  %3660 = vmatmul.mubr.bf16.gmra.mxu1 %v6990_v28  ;;  %3757 = vmatmul.mubr.bf16.gmra.mxu0 %v6993_v54 }
 0x206   : > { %v8097_v43 = vadd.f32 %v5952_v5, %v7965_v60  ;;  %v8100_v48 = vadd.f32 %v6016_v11, %v7968_v57  ;;  %3667 = vmatprep.mubr.bf16.mxu1 %v6999_v45  ;;  %3764 = vmatprep.mubr.bf16.mxu0 %v7002_v19  ;;  %v7005_v60 = vld [vmem:[%s7568_s8 + $0x3f4] ss:$60 sps:$4 sm:$0xff]   ;;  %v7011_v5 = vld [vmem:[%s7568_s8 + $0x128] ss:$60 sps:$4 sm:$0xff]  }
 0x207   : > { %v5954_v18 = vpop.f32.mrf.mxu0  ;;  %v6018_v25 = vpop.f32.mrf.mxu1  ;;  %v7003_v45 = vld [vmem:[%s7568_s8 + $0x3f0] ss:$60 sps:$4 sm:$0xff]  }
 0x208   : > { %v5955_v46 = vadd.f32 %v5954_v18, %v5953_v7  ;;  %v6019_v63 = vadd.f32 %v6018_v25, %v6017_v24  ;;  %v7007_v19 = vld [vmem:[%s7568_s8 + $0xb0] ss:$60 sps:$4 sm:$0xff]  }
 0x209   : > { %v5956_v59 = vpop.f32.mrf.mxu0  ;;  %v6020_v40 = vpop.f32.mrf.mxu1 }
 0x20a   : > { %v8105_v30 = vadd.f32 %v5955_v46, %v7974_v15  ;;  %v8108_v41 = vadd.f32 %v6019_v63, %v7977_v20 }
 0x20b   : > { %v5957_v57 = vpop.f32.mrf.mxu0  ;;  %v6021_v52 = vpop.f32.mrf.mxu1 }
 0x20c   : > { %v5958_v38 = vadd.f32 %v5957_v57, %v5956_v59  ;;  %v6022_v53 = vadd.f32 %v6021_v52, %v6020_v40 }
 0x20d   : > { %v5959_v58 = vpop.f32.mrf.mxu0  ;;  %v6023_v36 = vpop.f32.mrf.mxu1  ;;  %3668 = vmatmul.mubr.bf16.gmra.mxu1 %v6997_v6  ;;  %3765 = vmatmul.mubr.bf16.gmra.mxu0 %v7000_v55 }
 0x20e   : > { %v8113_v15 = vadd.f32 %v5958_v38, %v7983_v37  ;;  %v8116_v20 = vadd.f32 %v6022_v53, %v7986_v26  ;;  %3772 = vmatprep.mubr.bf16.mxu0 %v7005_v60  ;;  %6453 = vmatprep.mubr.bf16.mxu1 %v7006_v49  ;;  %v7010_v37 = vld [vmem:[%s7568_s8 + $0x46c] ss:$60 sps:$4 sm:$0xff]   ;;  %v7012_v49 = vld [vmem:[%s7568_s8 + $0x1a0] ss:$60 sps:$4 sm:$0xff]   ;;  %v7016_v38 = vld [vmem:[%s7568_s8 + $0x218] ss:$60 sps:$4 sm:$0xff]  }
 0x20f   : > { %v5960_v61 = vpop.f32.mrf.mxu0  ;;  %v6024_v0 = vpop.f32.mrf.mxu1  ;;  %v7008_v60 = vld [vmem:[%s7568_s8 + $0x468] ss:$60 sps:$4 sm:$0xff]  }
 0x210   : > { %v5961_v14 = vadd.f32 %v5960_v61, %v5959_v58  ;;  %v6025_v9 = vadd.f32 %v6024_v0, %v6023_v36 }
 0x211   : > { %v5962_v28 = vpop.f32.mrf.mxu0  ;;  %v6026_v54 = vpop.f32.mrf.mxu1 }
 0x212   : > { %v8121_v27 = vadd.f32 %v5961_v14, %v7992_v31  ;;  %v8124_v21 = vadd.f32 %v6025_v9, %v7995_v51 }
 0x213   : > { %v5963_v26 = vpop.f32.mrf.mxu0  ;;  %v6027_v11 = vpop.f32.mrf.mxu1 }
 0x214   : > { %v5964_v7 = vadd.f32 %v5963_v26, %v5962_v28  ;;  %v6028_v24 = vadd.f32 %v6027_v11, %v6026_v54 }
 0x215   : > { %v6029_v18 = vpop.f32.mrf.mxu1  ;;  %v6093_v25 = vpop.f32.mrf.mxu0  ;;  %3773 = vmatmul.mubr.bf16.gmra.mxu0 %v7003_v45  ;;  %6454 = vmatmul.mubr.bf16.vlgmr.msra.gmra.mxu1 %v7007_v19 }
 0x216   : > { %v8129_v31 = vadd.f32 %v5964_v7, %v8001_v17  ;;  %v8132_v51 = vadd.f32 %v6028_v24, %v8004_v50  ;;  %3780 = vmatprep.mubr.bf16.mxu0 %v7010_v37  ;;  %6457 = vmatprep.mubr.bf16.mxu1 %v7011_v5  ;;  %v7015_v17 = vld [vmem:[%s7568_s8 + $0x4e4] ss:$60 sps:$4 sm:$0xff]   ;;  %v7017_v5 = vld [vmem:[%s7568_s8 + $0x290] ss:$60 sps:$4 sm:$0xff]  }
 0x217   : > { %v6030_v46 = vpop.f32.mrf.mxu1  ;;  %v6094_v63 = vpop.f32.mrf.mxu0  ;;  %v7013_v37 = vld [vmem:[%s7568_s8 + $0x4e0] ss:$60 sps:$4 sm:$0xff]   ;;  %v7021_v7 = vld [vmem:[%s7568_s8 + $0x308] ss:$60 sps:$4 sm:$0xff]  }
 0x218   : > { %v6031_v59 = vadd.f32 %v6030_v46, %v6029_v18  ;;  %v6095_v40 = vadd.f32 %v6094_v63, %v6093_v25 }
 0x219   : > { %v6032_v6 = vpop.f32.mrf.mxu1  ;;  %v6096_v55 = vpop.f32.mrf.mxu0 }
 0x21a   : > { %v8137_v57 = vadd.f32 %v6031_v59, %v8009_v23  ;;  %v8140_v52 = vadd.f32 %v6095_v40, %v8012_v47 }
 0x21b   : > { %v6033_v50 = vpop.f32.mrf.mxu1  ;;  %v6097_v53 = vpop.f32.mrf.mxu0 }
 0x21c   : > { %v6034_v58 = vadd.f32 %v6033_v50, %v6032_v6  ;;  %v6098_v36 = vadd.f32 %v6097_v53, %v6096_v55 }
 0x21d   : > { %v6035_v61 = vpop.f32.mrf.mxu1  ;;  %v6099_v0 = vpop.f32.mrf.mxu0  ;;  %3781 = vmatmul.mubr.bf16.gmra.mxu0 %v7008_v60  ;;  %6458 = vmatmul.mubr.bf16.gmra.mxu1 %v7012_v49 }
 0x21e   : > { %v8145_v23 = vadd.f32 %v6034_v58, %v8017_v34  ;;  %v8148_v47 = vadd.f32 %v6098_v36, %v8020_v3  ;;  %3788 = vmatprep.mubr.bf16.mxu0 %v7015_v17  ;;  %6461 = vmatprep.mubr.bf16.mxu1 %v7016_v38  ;;  %v7020_v34 = vld [vmem:[%s7568_s8 + $0x55c] ss:$60 sps:$4 sm:$0xff]  }
 0x21f   : > { %v6036_v14 = vpop.f32.mrf.mxu1  ;;  %v6100_v9 = vpop.f32.mrf.mxu0  ;;  %v7018_v17 = vld [vmem:[%s7568_s8 + $0x558] ss:$60 sps:$4 sm:$0xff]   ;;  %v7022_v38 = vld [vmem:[%s7568_s8 + $0x380] ss:$60 sps:$4 sm:$0xff]  }
 0x220   : > { %v6037_v28 = vadd.f32 %v6036_v14, %v6035_v61  ;;  %v6101_v54 = vadd.f32 %v6100_v9, %v6099_v0  ;;  %v7026_v58 = vld [vmem:[%s7568_s8 + $0x3f8] ss:$60 sps:$4 sm:$0xff]  }
 0x221   : > { %v6038_v45 = vpop.f32.mrf.mxu1  ;;  %v6102_v19 = vpop.f32.mrf.mxu0 }
 0x222   : > { %v8153_v26 = vadd.f32 %v6037_v28, %v8025_v1  ;;  %v8156_v11 = vadd.f32 %v6101_v54, %v8028_v39 }
 0x223   : > { %v6039_v3 = vpop.f32.mrf.mxu1  ;;  %v6103_v24 = vpop.f32.mrf.mxu0 }
 0x224   : > { %v6040_v18 = vadd.f32 %v6039_v3, %v6038_v45  ;;  %v6104_v25 = vadd.f32 %v6103_v24, %v6102_v19 }
 0x225   : > { %v6041_v46 = vpop.f32.mrf.mxu1  ;;  %v6105_v63 = vpop.f32.mrf.mxu0  ;;  %3789 = vmatmul.mubr.bf16.gmra.mxu0 %v7013_v37  ;;  %6462 = vmatmul.mubr.bf16.gmra.mxu1 %v7017_v5 }
 0x226   : > { %v8161_v1 = vadd.f32 %v6040_v18, %v8033_v44  ;;  %v8164_v39 = vadd.f32 %v6104_v25, %v8036_v13  ;;  %3796 = vmatprep.mubr.bf16.mxu0 %v7020_v34  ;;  %6465 = vmatprep.mubr.bf16.mxu1 %v7021_v7  ;;  %v7025_v44 = vld [vmem:[%s7568_s8 + $0x5d4] ss:$60 sps:$4 sm:$0xff]   ;;  %v7031_v18 = vld [vmem:[%s7568_s8 + $0x4e8] ss:$60 sps:$4 sm:$0xff]  }
 0x227   : > { %v6042_v59 = vpop.f32.mrf.mxu1  ;;  %v6106_v40 = vpop.f32.mrf.mxu0  ;;  %v7023_v34 = vld [vmem:[%s7568_s8 + $0x5d0] ss:$60 sps:$4 sm:$0xff]  }
 0x228   : > { %v6043_v6 = vadd.f32 %v6042_v59, %v6041_v46  ;;  %v6107_v55 = vadd.f32 %v6106_v40, %v6105_v63  ;;  %v7027_v7 = vld [vmem:[%s7568_s8 + $0x470] ss:$60 sps:$4 sm:$0xff]  }
 0x229   : > { %v6044_v60 = vpop.f32.mrf.mxu1  ;;  %v6108_v49 = vpop.f32.mrf.mxu0 }
 0x22a   : > { %v8169_v50 = vadd.f32 %v6043_v6, %v8041_v2  ;;  %v8172_v53 = vadd.f32 %v6107_v55, %v8044_v35 }
 0x22b   : > { %v6045_v13 = vpop.f32.mrf.mxu1  ;;  %v6109_v36 = vpop.f32.mrf.mxu0 }
 0x22c   : > { %v6046_v61 = vadd.f32 %v6045_v13, %v6044_v60  ;;  %v6110_v0 = vadd.f32 %v6109_v36, %v6108_v49 }
 0x22d   : > { %v6047_v14 = vpop.f32.mrf.mxu1  ;;  %v6111_v9 = vpop.f32.mrf.mxu0  ;;  %3797 = vmatmul.mubr.bf16.gmra.mxu0 %v7018_v17  ;;  %6466 = vmatmul.mubr.bf16.gmra.mxu1 %v7022_v38 }
 0x22e   : > { %v8177_v2 = vadd.f32 %v6046_v61, %v8049_v12  ;;  %v8180_v35 = vadd.f32 %v6110_v0, %v8052_v33  ;;  %3804 = vmatprep.mubr.bf16.mxu0 %v7025_v44  ;;  %6469 = vmatprep.mubr.bf16.mxu1 %v7026_v58  ;;  %v7030_v12 = vld [vmem:[%s7568_s8 + $0x64c] ss:$60 sps:$4 sm:$0xff]   ;;  %v7032_v58 = vld [vmem:[%s7568_s8 + $0x560] ss:$60 sps:$4 sm:$0xff]   ;;  %v7036_v61 = vld [vmem:[%s7568_s8 + $0x5d8] ss:$60 sps:$4 sm:$0xff]  }
 0x22f   : > { %v6048_v28 = vpop.f32.mrf.mxu1  ;;  %v6112_v54 = vpop.f32.mrf.mxu0  ;;  %v7028_v44 = vld [vmem:[%s7568_s8 + $0x648] ss:$60 sps:$4 sm:$0xff]  }
 0x230   : > { %v6049_v45 = vadd.f32 %v6048_v28, %v6047_v14  ;;  %v6113_v19 = vadd.f32 %v6112_v54, %v6111_v9 }
 0x231   : > { %v6050_v37 = vpop.f32.mrf.mxu1  ;;  %v6114_v5 = vpop.f32.mrf.mxu0 }
 0x232   : > { %v8185_v3 = vadd.f32 %v6049_v45, %v8057_v56  ;;  %v8188_v24 = vadd.f32 %v6113_v19, %v8060_v62 }
 0x233   : > { %v6051_v33 = vpop.f32.mrf.mxu1  ;;  %v6115_v25 = vpop.f32.mrf.mxu0 }
 0x234   : > { %v6052_v46 = vadd.f32 %v6051_v33, %v6050_v37  ;;  %v6116_v63 = vadd.f32 %v6115_v25, %v6114_v5 }
 0x235   : > { %v6053_v59 = vpop.f32.mrf.mxu1  ;;  %v6117_v40 = vpop.f32.mrf.mxu0  ;;  %3805 = vmatmul.mubr.bf16.gmra.mxu0 %v7023_v34  ;;  %6470 = vmatmul.mubr.bf16.gmra.mxu1 %v7027_v7 }
 0x236   : > { %v8193_v56 = vadd.f32 %v6052_v46, %v8065_v29  ;;  %v8196_v62 = vadd.f32 %v6116_v63, %v8068_v22  ;;  %3812 = vmatprep.mubr.bf16.mxu0 %v7030_v12  ;;  %6473 = vmatprep.mubr.bf16.mxu1 %v7031_v18  ;;  %v7035_v29 = vld [vmem:[%s7568_s8 + $0x6c4] ss:$60 sps:$4 sm:$0xff]   ;;  %v7037_v18 = vld [vmem:[%s7568_s8 + $0x650] ss:$60 sps:$4 sm:$0xff]  }
 0x237   : > { %v6054_v6 = vpop.f32.mrf.mxu1  ;;  %v6118_v55 = vpop.f32.mrf.mxu0  ;;  %v7033_v12 = vld [vmem:[%s7568_s8 + $0x6c0] ss:$60 sps:$4 sm:$0xff]   ;;  %v7041_v46 = vld [vmem:[%s7568_s8 + $0x6c8] ss:$60 sps:$4 sm:$0xff]  }
 0x238   : > { %v6055_v60 = vadd.f32 %v6054_v6, %v6053_v59  ;;  %v6119_v49 = vadd.f32 %v6118_v55, %v6117_v40 }
 0x239   : > { %v6056_v17 = vpop.f32.mrf.mxu1  ;;  %v6120_v38 = vpop.f32.mrf.mxu0 }
 0x23a   : > { %v8201_v13 = vadd.f32 %v6055_v60, %v8073_v16  ;;  %v8204_v36 = vadd.f32 %v6119_v49, %v8076_v42 }
 0x23b   : > { %v6057_v22 = vpop.f32.mrf.mxu1  ;;  %v6121_v0 = vpop.f32.mrf.mxu0 }
 0x23c   : > { %v6058_v14 = vadd.f32 %v6057_v22, %v6056_v17  ;;  %v6122_v9 = vadd.f32 %v6121_v0, %v6120_v38 }
 0x23d   : > { %v6059_v28 = vpop.f32.mrf.mxu1  ;;  %v6123_v54 = vpop.f32.mrf.mxu0  ;;  %3813 = vmatmul.mubr.bf16.gmra.mxu0 %v7028_v44  ;;  %6474 = vmatmul.mubr.bf16.gmra.mxu1 %v7032_v58 }
 0x23e   : > { %v8209_v16 = vadd.f32 %v6058_v14, %v8081_v4  ;;  %v8212_v42 = vadd.f32 %v6122_v9, %v8084_v8  ;;  %3820 = vmatprep.mubr.bf16.mxu0 %v7035_v29  ;;  %6477 = vmatprep.mubr.bf16.mxu1 %v7036_v61  ;;  %v7040_v4 = vld [vmem:[%s7568_s8 + $0x73c] ss:$60 sps:$4 sm:$0xff]  }
 0x23f   : > { %v6060_v45 = vpop.f32.mrf.mxu1  ;;  %v6124_v19 = vpop.f32.mrf.mxu0  ;;  %v7038_v29 = vld [vmem:[%s7568_s8 + $0x738] ss:$60 sps:$4 sm:$0xff]   ;;  %v7042_v61 = vld [vmem:[%s7568_s8 + $0x740] ss:$60 sps:$4 sm:$0xff]  }
 0x240   : > { %v6061_v37 = vadd.f32 %v6060_v45, %v6059_v28  ;;  %v6125_v5 = vadd.f32 %v6124_v19, %v6123_v54 }
 0x241   : > { %v6062_v34 = vpop.f32.mrf.mxu1  ;;  %v6126_v7 = vpop.f32.mrf.mxu0 }
 0x242   : > { %v8217_v33 = vadd.f32 %v6061_v37, %v8089_v10  ;;  %v8220_v25 = vadd.f32 %v6125_v5, %v8092_v32 }
 0x243   : > { %v6063_v8 = vpop.f32.mrf.mxu1  ;;  %v6127_v63 = vpop.f32.mrf.mxu0 }
 0x244   : > { %v6064_v59 = vadd.f32 %v6063_v8, %v6062_v34  ;;  %v6128_v40 = vadd.f32 %v6127_v63, %v6126_v7 }
 0x245   : > { %v6065_v6 = vpop.f32.mrf.mxu1  ;;  %v6129_v55 = vpop.f32.mrf.mxu0  ;;  %3821 = vmatmul.mubr.bf16.gmra.mxu0 %v7033_v12  ;;  %6478 = vmatmul.mubr.bf16.gmra.mxu1 %v7037_v18 }
 0x246   : > { %v8225_v60 = vadd.f32 %v6064_v59, %v8097_v43  ;;  %v8228_v10 = vadd.f32 %v6128_v40, %v8100_v48  ;;  %3828 = vmatprep.mubr.bf16.mxu0 %v7040_v4  ;;  %6481 = vmatprep.mubr.bf16.mxu1 %v7041_v46 }
 0x247   : > { %v6066_v32 = vpop.f32.mrf.mxu1  ;;  %v6130_v49 = vpop.f32.mrf.mxu0 }
 0x248   : > { %v6067_v17 = vadd.f32 %v6066_v32, %v6065_v6  ;;  %v6131_v38 = vadd.f32 %v6130_v49, %v6129_v55 }
 0x249   : > { %v6068_v44 = vpop.f32.mrf.mxu1  ;;  %v6132_v58 = vpop.f32.mrf.mxu0 }
 0x24a   : > { %v8233_v22 = vadd.f32 %v6067_v17, %v8105_v30  ;;  %v8236_v0 = vadd.f32 %v6131_v38, %v8108_v41 }
 0x24b   : > { %v6069_v43 = vpop.f32.mrf.mxu1  ;;  %v6133_v14 = vpop.f32.mrf.mxu0 }
 0x24c   : > { %v6070_v48 = vadd.f32 %v6069_v43, %v6068_v44  ;;  %v6134_v9 = vadd.f32 %v6133_v14, %v6132_v58 }
 0x24d   : > { %v6071_v28 = vpop.f32.mrf.mxu1  ;;  %v6135_v54 = vpop.f32.mrf.mxu0  ;;  %3829 = vmatmul.mubr.bf16.gmra.mxu0 %v7038_v29  ;;  %6482 = vmatmul.mubr.bf16.gmra.mxu1 %v7042_v61 }
 0x24e   : > { %v8239_v45 = vadd.f32 %v6070_v48, %v8113_v15  ;;  %v8242_v19 = vadd.f32 %v6134_v9, %v8116_v20 }
 0x24f   : > { %v6072_v37 = vpop.f32.mrf.mxu1  ;;  %v6136_v30 = vpop.f32.mrf.mxu0 }
 0x250   : > { %v6073_v5 = vadd.f32 %v6072_v37, %v6071_v28  ;;  %v6137_v34 = vadd.f32 %v6136_v30, %v6135_v54 }
 0x251   : > { %v6074_v41 = vpop.f32.mrf.mxu1  ;;  %v6138_v7 = vpop.f32.mrf.mxu0 }
 0x252   : > { %v8245_v12 = vadd.f32 %v6073_v5, %v8121_v27  ;;  %v8248_v18 = vadd.f32 %v6137_v34, %v8124_v21 }
 0x253   : > { %v6075_v4 = vpop.f32.mrf.mxu1  ;;  %v6139_v46 = vpop.f32.mrf.mxu0 }
 0x254   : > { %v6076_v8 = vadd.f32 %v6075_v4, %v6074_v41  ;;  %v6140_v15 = vadd.f32 %v6139_v46, %v6138_v7 }
 0x255   : > { %v6141_v63 = vpop.f32.mrf.mxu0  ;;  %v6205_v59 = vpop.f32.mrf.mxu1 }
 0x256   : > { %v8251_v20 = vadd.f32 %v6076_v8, %v8129_v31  ;;  %v8254_v40 = vadd.f32 %v6140_v15, %v8132_v51 }
 0x257   : > { %v6142_v6 = vpop.f32.mrf.mxu0  ;;  %v6206_v55 = vpop.f32.mrf.mxu1 }
 0x258   : > { %v6143_v32 = vadd.f32 %v6142_v6, %v6141_v63  ;;  %v6207_v27 = vadd.f32 %v6206_v55, %v6205_v59 }
 0x259   : > { %v6144_v49 = vpop.f32.mrf.mxu0  ;;  %v6208_v17 = vpop.f32.mrf.mxu1 }
 0x25a   : > { %v8257_v21 = vadd.f32 %v6143_v32, %v8137_v57  ;;  %v8260_v38 = vadd.f32 %v6207_v27, %v8140_v52 }
 0x25b   : > { %v6145_v44 = vpop.f32.mrf.mxu0  ;;  %v6209_v58 = vpop.f32.mrf.mxu1 }
 0x25c   : > { %v6146_v29 = vadd.f32 %v6145_v44, %v6144_v49  ;;  %v6210_v31 = vadd.f32 %v6209_v58, %v6208_v17 }
 0x25d   : > { %v6147_v61 = vpop.f32.mrf.mxu0  ;;  %v6211_v43 = vpop.f32.mrf.mxu1 }
 0x25e   : > { %v8263_v51 = vadd.f32 %v6146_v29, %v8145_v23  ;;  %v8266_v14 = vadd.f32 %v6210_v31, %v8148_v47 }
 0x25f   : > { %v6148_v48 = vpop.f32.mrf.mxu0  ;;  %v6212_v9 = vpop.f32.mrf.mxu1 }
 0x260   : > { %v6149_v28 = vadd.f32 %v6148_v48, %v6147_v61  ;;  %v6213_v57 = vadd.f32 %v6212_v9, %v6211_v43 }
 0x261   : > { %v6150_v54 = vpop.f32.mrf.mxu0  ;;  %v6214_v37 = vpop.f32.mrf.mxu1 }
 0x262   : > { %v8269_v52 = vadd.f32 %v6149_v28, %v8153_v26  ;;  %v8272_v30 = vadd.f32 %v6213_v57, %v8156_v11 }
 0x263   : > { %v6151_v5 = vpop.f32.mrf.mxu0  ;;  %v6215_v34 = vpop.f32.mrf.mxu1 }
 0x264   : > { %v6152_v41 = vadd.f32 %v6151_v5, %v6150_v54  ;;  %v6216_v23 = vadd.f32 %v6215_v34, %v6214_v37 }
 0x265   : > { %v6153_v7 = vpop.f32.mrf.mxu0  ;;  %v6217_v4 = vpop.f32.mrf.mxu1 }
 0x266   : > { %v8275_v47 = vadd.f32 %v6152_v41, %v8161_v1  ;;  %v8278_v46 = vadd.f32 %v6216_v23, %v8164_v39 }
 0x267   : > { %v6154_v8 = vpop.f32.mrf.mxu0  ;;  %v6218_v15 = vpop.f32.mrf.mxu1 }
 0x268   : > { %v6155_v63 = vadd.f32 %v6154_v8, %v6153_v7  ;;  %v6219_v26 = vadd.f32 %v6218_v15, %v6217_v4 }
 0x269   : > { %v6156_v59 = vpop.f32.mrf.mxu0  ;;  %v6220_v6 = vpop.f32.mrf.mxu1 }
 0x26a   : > { %v8281_v11 = vadd.f32 %v6155_v63, %v8169_v50  ;;  %v8284_v55 = vadd.f32 %v6219_v26, %v8172_v53 }
 0x26b   : > { %v6157_v32 = vpop.f32.mrf.mxu0  ;;  %v6221_v27 = vpop.f32.mrf.mxu1 }
 0x26c   : > { %v6158_v49 = vadd.f32 %v6157_v32, %v6156_v59  ;;  %v6222_v1 = vadd.f32 %v6221_v27, %v6220_v6 }
 0x26d   : > { %v6159_v17 = vpop.f32.mrf.mxu0  ;;  %v6223_v44 = vpop.f32.mrf.mxu1 }
 0x26e   : > { %v8287_v39 = vadd.f32 %v6158_v49, %v8177_v2  ;;  %v8290_v58 = vadd.f32 %v6222_v1, %v8180_v35 }
 0x26f   : > { %v6160_v29 = vpop.f32.mrf.mxu0  ;;  %v6224_v31 = vpop.f32.mrf.mxu1 }
 0x270   : > { %v6161_v61 = vadd.f32 %v6160_v29, %v6159_v17  ;;  %v6225_v50 = vadd.f32 %v6224_v31, %v6223_v44 }
 0x271   : > { %v6162_v43 = vpop.f32.mrf.mxu0  ;;  %v6226_v48 = vpop.f32.mrf.mxu1 }
 0x272   : > { %v8293_v53 = vadd.f32 %v6161_v61, %v8185_v3  ;;  %v8296_v9 = vadd.f32 %v6225_v50, %v8188_v24 }
 0x273   : > { %v6163_v28 = vpop.f32.mrf.mxu0  ;;  %v6227_v57 = vpop.f32.mrf.mxu1 }
 0x274   : > { %v6164_v54 = vadd.f32 %v6163_v28, %v6162_v43  ;;  %v6228_v2 = vadd.f32 %v6227_v57, %v6226_v48 }
 0x275   : > { %v6165_v37 = vpop.f32.mrf.mxu0  ;;  %v6229_v5 = vpop.f32.mrf.mxu1 }
 0x276   : > { %v8299_v35 = vadd.f32 %v6164_v54, %v8193_v56  ;;  %v8302_v34 = vadd.f32 %v6228_v2, %v8196_v62 }
 0x277   : > { %v6166_v41 = vpop.f32.mrf.mxu0  ;;  %v6230_v23 = vpop.f32.mrf.mxu1 }
 0x278   : > { %v6167_v7 = vadd.f32 %v6166_v41, %v6165_v37  ;;  %v6231_v3 = vadd.f32 %v6230_v23, %v6229_v5 }
 0x279   : > { %v6168_v4 = vpop.f32.mrf.mxu0  ;;  %v6232_v8 = vpop.f32.mrf.mxu1 }
 0x27a   : > { %v8305_v24 = vadd.f32 %v6167_v7, %v8201_v13  ;;  %v8308_v15 = vadd.f32 %v6231_v3, %v8204_v36 }
 0x27b   : > { %v6169_v63 = vpop.f32.mrf.mxu0  ;;  %v6233_v26 = vpop.f32.mrf.mxu1 }
 0x27c   : > { %v6170_v59 = vadd.f32 %v6169_v63, %v6168_v4  ;;  %v6234_v56 = vadd.f32 %v6233_v26, %v6232_v8 }
 0x27d   : > { %v6171_v6 = vpop.f32.mrf.mxu0  ;;  %v6235_v32 = vpop.f32.mrf.mxu1 }
 0x27e   : > { %v8311_v62 = vadd.f32 %v6170_v59, %v8209_v16  ;;  %v8314_v27 = vadd.f32 %v6234_v56, %v8212_v42 }
 0x27f   : > { %v6172_v49 = vpop.f32.mrf.mxu0  ;;  %v6236_v1 = vpop.f32.mrf.mxu1 }
 0x280   : > { %v6173_v17 = vadd.f32 %v6172_v49, %v6171_v6  ;;  %v6237_v13 = vadd.f32 %v6236_v1, %v6235_v32 }
 0x281   : > { %v6174_v44 = vpop.f32.mrf.mxu0  ;;  %v6238_v29 = vpop.f32.mrf.mxu1 }
 0x282   : > { %v8317_v36 = vadd.f32 %v6173_v17, %v8217_v33  ;;  %v8320_v31 = vadd.f32 %v6237_v13, %v8220_v25 }
 0x283   : > { %v6175_v61 = vpop.f32.mrf.mxu0  ;;  %v6239_v50 = vpop.f32.mrf.mxu1 }
 0x284   : > { %v6176_v43 = vadd.f32 %v6175_v61, %v6174_v44  ;;  %v6240_v16 = vadd.f32 %v6239_v50, %v6238_v29 }
 0x285   : > { %v6177_v48 = vpop.f32.mrf.mxu0  ;;  %v6241_v28 = vpop.f32.mrf.mxu1 }
 0x286   : > { %v8323_v42 = vadd.f32 %v6176_v43, %v8225_v60  ;;  %v8326_v57 = vadd.f32 %v6240_v16, %v8228_v10 }
 0x287   : > { %v6178_v54 = vpop.f32.mrf.mxu0  ;;  %v6242_v2 = vpop.f32.mrf.mxu1 }
 0x288   : > { %v6179_v37 = vadd.f32 %v6178_v54, %v6177_v48  ;;  %v6243_v33 = vadd.f32 %v6242_v2, %v6241_v28 }
 0x289   : > { %v6180_v5 = vpop.f32.mrf.mxu0  ;;  %v6244_v41 = vpop.f32.mrf.mxu1 }
 0x28a   : > { %v8329_v25 = vadd.f32 %v6179_v37, %v8233_v22  ;;  %v8332_v23 = vadd.f32 %v6243_v33, %v8236_v0 }
 0x28b   : > { %v6181_v7 = vpop.f32.mrf.mxu0  ;;  %v6245_v3 = vpop.f32.mrf.mxu1 }
 0x28c   : > { %v6182_v4 = vadd.f32 %v6181_v7, %v6180_v5  ;;  %v6246_v60 = vadd.f32 %v6245_v3, %v6244_v41 }
 0x28d   : > { %v6183_v8 = vpop.f32.mrf.mxu0  ;;  %v6247_v63 = vpop.f32.mrf.mxu1 }
 0x28e   : > { %v8335_v10 = vadd.f32 %v6182_v4, %v8239_v45  ;;  %v8338_v26 = vadd.f32 %v6246_v60, %v8242_v19 }
 0x28f   : > { %v6184_v59 = vpop.f32.mrf.mxu0  ;;  %v6248_v56 = vpop.f32.mrf.mxu1 }
 0x290   : > { %v6185_v6 = vadd.f32 %v6184_v59, %v6183_v8  ;;  %v6249_v22 = vadd.f32 %v6248_v56, %v6247_v63 }
 0x291   : > { %v6186_v32 = vpop.f32.mrf.mxu0  ;;  %v6250_v49 = vpop.f32.mrf.mxu1 }
 0x292   : > { %v8341_v0 = vadd.f32 %v6185_v6, %v8245_v12  ;;  %v8344_v1 = vadd.f32 %v6249_v22, %v8248_v18 }
 0x293   : > { %v6187_v17 = vpop.f32.mrf.mxu0  ;;  %v6251_v13 = vpop.f32.mrf.mxu1 }
 0x294   : > { %v6188_v44 = vadd.f32 %v6187_v17, %v6186_v32  ;;  %v6252_v45 = vadd.f32 %v6251_v13, %v6250_v49 }
 0x295   : > { %v6253_v29 = vpop.f32.mrf.mxu1  ;;  %v8346_v61 = vpop.f32.mrf.mxu0 }
 0x296   : > { %v8349_v19 = vadd.f32 %v6188_v44, %v8251_v20  ;;  %v8352_v50 = vadd.f32 %v6252_v45, %v8254_v40 }
 0x297   : > { %v6254_v43 = vpop.f32.mrf.mxu1  ;;  %v8354_v16 = vpop.f32.mrf.mxu0 }
 0x298   : > { %v6255_v12 = vadd.f32 %v6254_v43, %v6253_v29 }
 0x299   : > { %v6256_v48 = vpop.f32.mrf.mxu1  ;;  %v8356_v18 = vpop.f32.mrf.mxu0 }
 0x29a   : > { %v8359_v28 = vadd.f32 %v6255_v12, %v8257_v21 }
 0x29b   : > { %v6257_v54 = vpop.f32.mrf.mxu1  ;;  %v8361_v2 = vpop.f32.mrf.mxu0 }
 0x29c   : > { %v6258_v37 = vadd.f32 %v6257_v54, %v6256_v48 }
 0x29d   : > { %v6259_v33 = vpop.f32.mrf.mxu1  ;;  %v8363_v20 = vpop.f32.mrf.mxu0 }
 0x29e   : > { %v8366_v40 = vadd.f32 %v6258_v37, %v8263_v51 }
 0x29f   : > { %v6260_v5 = vpop.f32.mrf.mxu1  ;;  %v8368_v41 = vpop.f32.mrf.mxu0 }
 0x2a0   : > { %9311 = vst [vmem:[#allocation9_spill] sm:$0xff] %v8366_v40  ;;  %v6261_v7 = vadd.f32 %v6260_v5, %v6259_v33 }
 0x2a1   : > { %v6262_v3 = vpop.f32.mrf.mxu1  ;;  %v8370_v4 = vpop.f32.mrf.mxu0 }
 0x2a2   : > { %v8373_v21 = vadd.f32 %v6261_v7, %v8269_v52 }
 0x2a3   : > { %v6263_v60 = vpop.f32.mrf.mxu1  ;;  %v8375_v8 = vpop.f32.mrf.mxu0 }
 0x2a4   : > { %v6264_v63 = vadd.f32 %v6263_v60, %v6262_v3 }
 0x2a5   : > { %v6265_v59 = vpop.f32.mrf.mxu1  ;;  %v8377_v56 = vpop.f32.mrf.mxu0 }
 0x2a6   : > { %v8380_v51 = vadd.f32 %v6264_v63, %v8275_v47 }
 0x2a7   : > { %v6266_v6 = vpop.f32.mrf.mxu1  ;;  %v8382_v22 = vpop.f32.mrf.mxu0 }
 0x2a8   : > { %v6267_v32 = vadd.f32 %v6266_v6, %v6265_v59 }
 0x2a9   : > { %v6268_v49 = vpop.f32.mrf.mxu1  ;;  %v8384_v17 = vpop.f32.mrf.mxu0 }
 0x2aa   : > { %v8387_v52 = vadd.f32 %v6267_v32, %v8281_v11 }
 0x2ab   : > { %v6269_v13 = vpop.f32.mrf.mxu1  ;;  %v8389_v44 = vpop.f32.mrf.mxu0 }
 0x2ac   : > { %9312 = vst [vmem:[#allocation10_spill] sm:$0xff] %v8387_v52  ;;  %v6270_v45 = vadd.f32 %v6269_v13, %v6268_v49 }
 0x2ad   : > { %v6271_v29 = vpop.f32.mrf.mxu1  ;;  %v8391_v43 = vpop.f32.mrf.mxu0 }
 0x2ae   : > { %v8394_v47 = vadd.f32 %v6270_v45, %v8287_v39 }
 0x2af   : > { %v6272_v12 = vpop.f32.mrf.mxu1  ;;  %v8396_v48 = vpop.f32.mrf.mxu0 }
 0x2b0   : > { %9313 = vst [vmem:[#allocation11_spill] sm:$0xff] %v8394_v47  ;;  %v6273_v54 = vadd.f32 %v6272_v12, %v6271_v29 }
 0x2b1   : > { %v6274_v37 = vpop.f32.mrf.mxu1  ;;  %v8398_v33 = vpop.f32.mrf.mxu0 }
 0x2b2   : > { %v8401_v11 = vadd.f32 %v6273_v54, %v8293_v53 }
 0x2b3   : > { %v6275_v5 = vpop.f32.mrf.mxu1  ;;  %v8403_v7 = vpop.f32.mrf.mxu0 }
 0x2b4   : > { %9314 = vst [vmem:[#allocation12_spill] sm:$0xff] %v8401_v11  ;;  %v6276_v3 = vadd.f32 %v6275_v5, %v6274_v37 }
 0x2b5   : > { %v6277_v60 = vpop.f32.mrf.mxu1  ;;  %v8405_v63 = vpop.f32.mrf.mxu0 }
 0x2b6   : > { %v8408_v39 = vadd.f32 %v6276_v3, %v8299_v35 }
 0x2b7   : > { %v6278_v59 = vpop.f32.mrf.mxu1  ;;  %v8410_v6 = vpop.f32.mrf.mxu0 }
 0x2b8   : > { %9315 = vst [vmem:[#allocation13_spill] sm:$0xff] %v8408_v39  ;;  %v6279_v32 = vadd.f32 %v6278_v59, %v6277_v60 }
 0x2b9   : > { %v6280_v49 = vpop.f32.mrf.mxu1  ;;  %v8412_v13 = vpop.f32.mrf.mxu0 }
 0x2ba   : > { %v8415_v53 = vadd.f32 %v6279_v32, %v8305_v24 }
 0x2bb   : > { %v6281_v45 = vpop.f32.mrf.mxu1  ;;  %v8417_v29 = vpop.f32.mrf.mxu0 }
 0x2bc   : > { %9316 = vst [vmem:[#allocation14_spill] sm:$0xff] %v8415_v53  ;;  %v6282_v12 = vadd.f32 %v6281_v45, %v6280_v49 }
 0x2bd   : > { %v6283_v54 = vpop.f32.mrf.mxu1  ;;  %v8419_v37 = vpop.f32.mrf.mxu0 }
 0x2be   : > { %v8422_v35 = vadd.f32 %v6282_v12, %v8311_v62 }
 0x2bf   : > { %v6284_v5 = vpop.f32.mrf.mxu1  ;;  %v8424_v3 = vpop.f32.mrf.mxu0 }
 0x2c0   : > { %9317 = vst [vmem:[#allocation15_spill] sm:$0xff] %v8422_v35  ;;  %v6285_v60 = vadd.f32 %v6284_v5, %v6283_v54 }
 0x2c1   : > { %v6286_v59 = vpop.f32.mrf.mxu1  ;;  %v8426_v47 = vpop.f32.mrf.mxu0 }
 0x2c2   : > { %v8429_v24 = vadd.f32 %v6285_v60, %v8317_v36 }
 0x2c3   : > { %v6287_v32 = vpop.f32.mrf.mxu1  ;;  %v8431_v53 = vpop.f32.mrf.mxu0 }
 0x2c4   : > { %9318 = vst [vmem:[#allocation16_spill] sm:$0xff] %v8429_v24  ;;  %v6288_v49 = vadd.f32 %v6287_v32, %v6286_v59 }
 0x2c5   : > { %v6289_v45 = vpop.f32.mrf.mxu1  ;;  %v8433_v39 = vpop.f32.mrf.mxu0 }
 0x2c6   : > { %v8436_v62 = vadd.f32 %v6288_v49, %v8323_v42 }
 0x2c7   : > { %v6290_v12 = vpop.f32.mrf.mxu1  ;;  %v8438_v35 = vpop.f32.mrf.mxu0 }
 0x2c8   : > { %9319 = vst [vmem:[#allocation17_spill] sm:$0xff] %v8436_v62  ;;  %v6291_v54 = vadd.f32 %v6290_v12, %v6289_v45  ;;  %v6325_v45 = vadd.f32 %v8368_v41, %v8363_v20 }
 0x2c9   : > { %v6292_v5 = vpop.f32.mrf.mxu1  ;;  %v8440_v52 = vpop.f32.mrf.mxu0 }
 0x2ca   : > { %v8443_v36 = vadd.f32 %v6291_v54, %v8329_v25  ;;  %v6319_v54 = vadd.f32 %v8354_v16, %v8346_v61 }
 0x2cb   : > { %v6293_v60 = vpop.f32.mrf.mxu1  ;;  %v8445_v24 = vpop.f32.mrf.mxu0 }
 0x2cc   : > { %9320 = vst [vmem:[#allocation18_spill] sm:$0xff] %v8443_v36  ;;  %v6294_v59 = vadd.f32 %v6293_v60, %v6292_v5  ;;  %v3711_v16 = vadd.f32 %v6319_v54, %v8260_v38 }
 0x2cd   : > { %v6295_v32 = vpop.f32.mrf.mxu1  ;;  %v8447_v11 = vpop.f32.mrf.mxu0 }
 0x2ce   : > { %v8450_v42 = vadd.f32 %v6294_v59, %v8335_v10  ;;  %v6328_v10 = vadd.f32 %v8375_v8, %v8370_v4  ;;  %v6337_v4 = vadd.f32 %v8396_v48, %v8391_v43 }
 0x2cf   : > { %v6296_v49 = vpop.f32.mrf.mxu1  ;;  %v8452_v62 = vpop.f32.mrf.mxu0 }
 0x2d0   : > { %9321 = vst [vmem:[#allocation19_spill] sm:$0xff] %v8450_v42  ;;  %v6297_v12 = vadd.f32 %v6296_v49, %v6295_v32  ;;  %v3719_v42 = vadd.f32 %v6325_v45, %v8272_v30  ;;  %v6322_v32 = vadd.f32 %v8361_v2, %v8356_v18  ;;  %v3722_v30 = vadd.f32 %v6328_v10, %v8278_v46 }
 0x2d1   : > { %v6298_v40 = vpop.f32.mrf.mxu1  ;;  %v8456_v25 = vpop.f32.mrf.mxu0  ;;  %v6340_v45 = vadd.f32 %v8403_v7, %v8398_v33  ;;  %v6331_v46 = vadd.f32 %v8382_v22, %v8377_v56  ;;  %v3735_v48 = vadd.f32 %v6337_v4, %v8296_v9  ;;  %v6349_v56 = vadd.f32 %v8424_v3, %v8419_v37 }
 0x2d2   : > { %v8461_v5 = vadd.f32 %v6297_v12, %v8341_v0  ;;  %v3714_v8 = vadd.f32 %v6322_v32, %v8266_v14  ;;  %v6343_v37 = vadd.f32 %v8410_v6, %v8405_v63  ;;  %v6352_v6 = vadd.f32 %v8431_v53, %v8426_v47 }
 0x2d3   : > { %v6299_v60 = vpop.f32.mrf.mxu1  ;;  %v8463_v36 = vpop.f32.mrf.mxu0  ;;  %v3727_v22 = vadd.f32 %v6331_v46, %v8284_v55  ;;  %v6346_v53 = vadd.f32 %v8417_v29, %v8412_v13 }
 0x2d4   : > { %v6300_v59 = vadd.f32 %v6299_v60, %v6298_v40  ;;  %v6334_v60 = vadd.f32 %v8389_v44, %v8384_v17 }
 0x2d5   : > { %v8468_v20 = vpop.f32.mrf.mxu0  ;;  %v6455_v41 = vpop.f32.mrf.mxu1  ;;  %v3746_v13 = vadd.f32 %v6346_v53, %v8314_v27 }
 0x2d6   : > { %v8473_v61 = vadd.f32 %v6300_v59, %v8349_v19  ;;  %v8475_v0 = vadd.f32 %v6455_v41, %v3719_v42  ;;  %v3738_v59 = vadd.f32 %v6340_v45, %v8302_v34 }
 0x2d7   : > { %v8478_v49 = vpop.f32.mrf.mxu0  ;;  %v3871_v12 = vpop.f32.mrf.mxu1 }
 0x2d8   : > { %7043 = vtanh.f32 %v8475_v0  ;;  %v8481_v40 = vadd.f32 %v3871_v12, %v3711_v16  ;;  %v3730_v16 = vadd.f32 %v6334_v60, %v8290_v58 }
 0x2d9   : > { %v8486_v18 = vpop.f32.mrf.mxu0  ;;  %v6456_v19 = vpop.f32.mrf.mxu1 }
 0x2da   : > { %v8488_v2 = vadd.f32 %v6456_v19, %v3722_v30  ;;  %7045 = vtanh.f32 %v8481_v40  ;;  %v3751_v30 = vadd.f32 %v6349_v56, %v8320_v31 }
 0x2db   : > { %v8492_v38 = vpop.f32.mrf.mxu0  ;;  %v3874_v42 = vpop.f32.mrf.mxu1 }
 0x2dc   : > { %v8496_v54 = vadd.f32 %v3874_v42, %v3714_v8  ;;  %7047 = vtanh.f32 %v8488_v2  ;;  %v3743_v42 = vadd.f32 %v6343_v37, %v8308_v15  ;;  %v3754_v15 = vadd.f32 %v6352_v6, %v8326_v57 }
 0x2dd   : > { %v8501_v43 = vpop.f32.mrf.mxu0  ;;  %v6459_v14 = vpop.f32.mrf.mxu1 }
 0x2de   : > { %7049 = vtanh.f32 %v8496_v54  ;;  %v8507_v10 = vadd.f32 %v6459_v14, %v3735_v48 }
 0x2df   : > { %v8509_v33 = vpop.f32.mrf.mxu0  ;;  %v3887_v7 = vpop.f32.mrf.mxu1 }
 0x2e0   : > { %7051 = vtanh.f32 %v8507_v10  ;;  %v8520_v17 = vadd.f32 %v3887_v7, %v3727_v22 }
 0x2e1   : > { %v8515_v41 = vpop.f32.mrf.mxu0  ;;  %v6460_v9 = vpop.f32.mrf.mxu1 }
 0x2e2   : > { %v8517_v32 = vadd.f32 %v6460_v9, %v3738_v59 }
 0x2e3   : > { %v8522_v44 = vpop.f32.mrf.mxu0  ;;  %v3890_v12 = vpop.f32.mrf.mxu1 }
 0x2e4   : > { %7053 = vtanh.f32 %v8517_v32  ;;  %v8528_v55 = vadd.f32 %v3890_v12, %v3730_v16  ;;  %v6361_v12 = vadd.f32 %v8452_v62, %v8447_v11  ;;  %v6355_v11 = vadd.f32 %v8438_v35, %v8433_v39 }
 0x2e5   : > { %v7044_v34 = vpop.eup %7043  ;;  %v8530_v3 = vpop.f32.mrf.mxu0  ;;  %7055 = vtanh.f32 %v8520_v17 }
 0x2e6   : > { %v6463_v4 = vpop.f32.mrf.mxu1  ;;  %4322 = vrot.lane.b32.xlu1 %v7044_v34, %s7426_s20  ;;  %7057 = vtanh.f32 %v8528_v55  ;;  %v3767_v27 = vadd.f32 %v6361_v12, %v8344_v1  ;;  %v3759_v1 = vadd.f32 %v6355_v11, %v8332_v23  ;;  %v6373_v23 = vadd.f32 %v8509_v33, %v8501_v43 }
 0x2e7   : > { %v8535_v58 = vadd.f32 %v6463_v4, %v3751_v30  ;;  %v8537_v19 = vpop.f32.mrf.mxu0  ;;  %v7046_v63 = vpop.eup %7045 }
 0x2e8   : > { %v3903_v8 = vpop.f32.mrf.mxu1  ;;  %4318 = vrot.lane.b32.xlu0 %v7046_v63, %s7426_s20  ;;  %v3783_v43 = vadd.f32 %v6373_v23, %v8373_v21 }
 0x2e9   : > { %v8544_v31 = vpop.f32.mrf.mxu0  ;;  %v7048_v46 = vpop.eup %7047  ;;  %7059 = vtanh.f32 %v8535_v58  ;;  %v8547_v48 = vadd.f32 %v3903_v8, %v3743_v42  ;;  %v6364_v42 = vadd.f32 %v8463_v36, %v8456_v25  ;;  %v6358_v36 = vadd.f32 %v8445_v24, %v8440_v52 }
 0x2ea   : > { %v6464_v45 = vpop.f32.mrf.mxu1  ;;  %4324 = vrot.lane.b32.xlu1 %v7048_v46, %s7426_s20 }
 0x2eb   : > { %v8550_v14 = vpop.f32.mrf.mxu0  ;;  %v7050_v47 = vpop.eup %7049  ;;  %7061 = vtanh.f32 %v8547_v48  ;;  %v8559_v56 = vadd.f32 %v6464_v45, %v3754_v15  ;;  %v3770_v53 = vadd.f32 %v6364_v42, %v8352_v50  ;;  %v3762_v52 = vadd.f32 %v6358_v36, %v8338_v26  ;;  %v9322_v42 = vld [vmem:[#allocation9_spill] sm:$0xff] }
 0x2ec   : > { %v3906_v60 = vpop.f32.mrf.mxu1  ;;  %4320 = vrot.lane.b32.xlu0 %v7050_v47, %s7426_s20  ;;  %v6367_v50 = vadd.f32 %v8478_v49, %v8468_v20 }
 0x2ed   : > { %v8556_v7 = vpop.f32.mrf.mxu0  ;;  %v7052_v16 = vpop.eup %7051  ;;  %7063 = vtanh.f32 %v8559_v56  ;;  %v8570_v37 = vadd.f32 %v3906_v60, %v3746_v13 }
 0x2ee   : > { %v6467_v59 = vpop.f32.mrf.mxu1  ;;  %v3775_v20 = vadd.f32 %v6367_v50, %v8359_v28  ;;  %v9325_v50 = vld [vmem:[#allocation13_spill] sm:$0xff] }
 0x2ef   : > { %v8561_v22 = vpop.f32.mrf.mxu0  ;;  %v8583_v45 = vadd.f32 %v6467_v59, %v3767_v27  ;;  %7065 = vtanh.f32 %v8570_v37 }
 0x2f0   : > { %v3919_v9 = vpop.f32.mrf.mxu1  ;;  %4330 = vrot.lane.b32.xlu0 %v7052_v16, %s7426_s20 }
 0x2f1   : > { %v8567_v57 = vpop.f32.mrf.mxu0  ;;  %v7054_v34 = vpop.eup %7053  ;;  %7067 = vtanh.f32 %v8583_v45  ;;  %v8596_v25 = vadd.f32 %v3919_v9, %v3759_v1  ;;  %v9323_v1 = vld [vmem:[#allocation12_spill] sm:$0xff] }
 0x2f2   : > { %v6468_v29 = vpop.f32.mrf.mxu1  ;;  %4332 = vrot.lane.b32.xlu1 %v7054_v34, %s7426_s20  ;;  %v7056_v8 = vpop.eup %7055 }
 0x2f3   : > { %v8573_v30 = vpop.f32.mrf.mxu0  ;;  %v7058_v6 = vpop.eup %7057  ;;  %v8603_v16 = vadd.f32 %v6468_v29, %v3770_v53  ;;  %7069 = vtanh.f32 %v8596_v25  ;;  %v6376_v29 = vadd.f32 %v8522_v44, %v8515_v41 }
 0x2f4   : > { %v3922_v4 = vpop.f32.mrf.mxu1  ;;  %4326 = vrot.lane.b32.xlu0 %v7056_v8, %s7426_s20  ;;  %v6388_v53 = vadd.f32 %v8573_v30, %v8567_v57 }
 0x2f5   : > { %v8579_v62 = vpop.f32.mrf.mxu0  ;;  %7071 = vtanh.f32 %v8603_v16  ;;  %v8611_v34 = vadd.f32 %v3922_v4, %v3762_v52  ;;  %v6370_v4 = vadd.f32 %v8492_v38, %v8486_v18  ;;  %v3786_v21 = vadd.f32 %v6376_v29, %v8380_v51 }
 0x2f6   : > { %v6471_v63 = vpop.f32.mrf.mxu1  ;;  %4328 = vrot.lane.b32.xlu1 %v7058_v6, %s7426_s20  ;;  %v7060_v35 = vpop.eup %7059 }
 0x2f7   : > { %v8587_v46 = vpop.f32.mrf.mxu0  ;;  %v8617_v8 = vadd.f32 %v6471_v63, %v3783_v43  ;;  %7073 = vtanh.f32 %v8611_v34  ;;  %v6385_v63 = vadd.f32 %v8561_v22, %v8556_v7  ;;  %v3778_v18 = vadd.f32 %v6370_v4, %v9322_v42 }
 0x2f8   : > { %v3935_v39 = vpop.f32.mrf.mxu1  ;;  %4338 = vrot.lane.b32.xlu0 %v7060_v35, %s7426_s20  ;;  %v7062_v59 = vpop.eup %7061  ;;  %v3802_v43 = vadd.f32 %v6388_v53, %v9325_v50 }
 0x2f9   : > { %v8591_v60 = vpop.f32.mrf.mxu0  ;;  %7075 = vtanh.f32 %v8617_v8  ;;  %v8626_v41 = vadd.f32 %v3935_v39, %v3775_v20  ;;  %v6379_v39 = vadd.f32 %v8537_v19, %v8530_v3  ;;  %v3799_v7 = vadd.f32 %v6385_v63, %v9323_v1  ;;  %v9324_v3 = vld [vmem:[#allocation10_spill] sm:$0xff]  ;;  %v9326_v20 = vld [vmem:[#allocation11_spill] sm:$0xff] }
 0x2fa   : > { %v6472_v47 = vpop.f32.mrf.mxu1  ;;  %v7064_v9 = vpop.eup %7063 }
 0x2fb   : > { %v8599_v15 = vpop.f32.mrf.mxu0  ;;  %4340 = vrot.lane.b32.xlu1 %v7064_v9, %s7426_s20  ;;  %v8630_v6 = vadd.f32 %v6472_v47, %v3786_v21  ;;  %7077 = vtanh.f32 %v8626_v41  ;;  %v3791_v19 = vadd.f32 %v6379_v39, %v9324_v3  ;;  %v6382_v9 = vadd.f32 %v8550_v14, %v8544_v31  ;;  %v9328_v39 = vld [vmem:[#allocation14_spill] sm:$0xff] }
 0x2fc   : > { %v3938_v12 = vpop.f32.mrf.mxu1  ;;  %4334 = vrot.lane.b32.xlu0 %v7062_v59, %s7426_s20  ;;  %v7066_v11 = vpop.eup %7065  ;;  %v6391_v31 = vadd.f32 %v8587_v46, %v8579_v62 }
 0x2fd   : > { %v6395_v13 = vpop.f32.mrf.mxu0  ;;  %7079 = vtanh.f32 %v8630_v6  ;;  %v8638_v35 = vadd.f32 %v3938_v12, %v3778_v18 }
 0x2fe   : > { %v6475_v33 = vpop.f32.mrf.mxu1  ;;  %v7068_v27 = vpop.eup %7067  ;;  %v3807_v62 = vadd.f32 %v6391_v31, %v9328_v39 }
 0x2ff   : > { %v6396_v24 = vpop.f32.mrf.mxu0  ;;  %4336 = vrot.lane.b32.xlu1 %v7066_v11, %s7426_s20  ;;  %v8642_v36 = vadd.f32 %v6475_v33, %v3799_v7  ;;  %7081 = vtanh.f32 %v8638_v35  ;;  %v6394_v7 = vadd.f32 %v8599_v15, %v8591_v60 }
 0x300   : > { %v3951_v49 = vpop.f32.mrf.mxu1  ;;  %4346 = vrot.lane.b32.xlu0 %v7068_v27, %s7426_s20  ;;  %v7070_v38 = vpop.eup %7069  ;;  %v6397_v33 = vadd.f32 %v6396_v24, %v6395_v13  ;;  %v9327_v13 = vld [vmem:[#allocation16_spill] sm:$0xff] }
 0x301   : > { %v6398_v26 = vpop.f32.mrf.mxu0  ;;  %7083 = vtanh.f32 %v8642_v36  ;;  %v8650_v52 = vadd.f32 %v3951_v49, %v3791_v19  ;;  %v3794_v49 = vadd.f32 %v6382_v9, %v9326_v20  ;;  %v9331_v20 = vld [vmem:[#allocation18_spill] sm:$0xff] }
 0x302   : > { %v6476_v28 = vpop.f32.mrf.mxu1  ;;  %v7072_v47 = vpop.eup %7071  ;;  %v3815_v24 = vadd.f32 %v6397_v33, %v9327_v13 }
 0x303   : > { %v6399_v44 = vpop.f32.mrf.mxu0  ;;  %4348 = vrot.lane.b32.xlu1 %v7072_v47, %s7426_s20  ;;  %v8656_v29 = vadd.f32 %v6476_v28, %v3802_v43  ;;  %7085 = vtanh.f32 %v8650_v52 }
 0x304   : > { %v3954_v22 = vpop.f32.mrf.mxu1  ;;  %4342 = vrot.lane.b32.xlu0 %v7070_v38, %s7426_s20  ;;  %v7074_v12 = vpop.eup %7073  ;;  %v6400_v28 = vadd.f32 %v6399_v44, %v6398_v26  ;;  %v9329_v26 = vld [vmem:[#allocation17_spill] sm:$0xff] }
 0x305   : > { %v6401_v51 = vpop.f32.mrf.mxu0  ;;  %7087 = vtanh.f32 %v8656_v29  ;;  %v8664_v14 = vadd.f32 %v3954_v22, %v3794_v49 }
 0x306   : > { %v6479_v23 = vpop.f32.mrf.mxu1  ;;  %v7076_v30 = vpop.eup %7075  ;;  %v3818_v44 = vadd.f32 %v6400_v28, %v9329_v26  ;;  %v9332_v28 = vld [vmem:[#allocation19_spill] sm:$0xff] }
 0x307   : > { %v6402_v59 = vpop.f32.mrf.mxu0  ;;  %4344 = vrot.lane.b32.xlu1 %v7074_v12, %s7426_s20  ;;  %v8669_v42 = vadd.f32 %v6479_v23, %v3815_v24  ;;  %7089 = vtanh.f32 %v8664_v14  ;;  %v9330_v23 = vld [vmem:[#allocation15_spill] sm:$0xff] }
 0x308   : > { %v3967_v11 = vpop.f32.mrf.mxu1  ;;  %4354 = vrot.lane.b32.xlu0 %v7076_v30, %s7426_s20  ;;  %v7078_v21 = vpop.eup %7077  ;;  %v3810_v12 = vadd.f32 %v6394_v7, %v9330_v23  ;;  %v6403_v50 = vadd.f32 %v6402_v59, %v6401_v51  ;;  %v5600_v23 = vmul.f32 -1.442695, %v8528_v55 }
 0x309   : > { %v6404_v57 = vpop.f32.mrf.mxu0  ;;  %7091 = vtanh.f32 %v8669_v42  ;;  %v8677_v22 = vadd.f32 %v3967_v11, %v3807_v62  ;;  %v5597_v62 = vmul.f32 -1.442695, %v8475_v0  ;;  %v5596_v0 = vmul.f32 -1.442695, %v8496_v54 }
 0x30a   : > { %v7080_v27 = vpop.eup %7079  ;;  %v6480_v63 = vpop.f32.mrf.mxu1  ;;  %v3823_v49 = vadd.f32 %v6403_v50, %v9331_v20  ;;  %v5605_v54 = vmul.f32 -1.442695, %v8535_v58  ;;  %v5604_v58 = vmul.f32 -1.442695, %v8570_v37  ;;  %v5607_v37 = vmul.f32 -1.442695, %v8596_v25 }
 0x30b   : > { %v6405_v4 = vpop.f32.mrf.mxu0  ;;  %4356 = vrot.lane.b32.xlu1 %v7080_v27, %s7426_s20  ;;  %v8681_v53 = vadd.f32 %v6480_v63, %v3818_v44  ;;  %7093 = vtanh.f32 %v8677_v22  ;;  %v5601_v44 = vmul.f32 -1.442695, %v8507_v10 }
 0x30c   : > { %4350 = vrot.lane.b32.xlu0 %v7078_v21, %s7426_s20  ;;  %v7082_v38 = vpop.eup %7081  ;;  %v3970_v46 = vpop.f32.mrf.mxu1  ;;  %v6406_v59 = vadd.f32 %v6405_v4, %v6404_v57 }
 0x30d   : > { %v6407_v18 = vpop.f32.mrf.mxu0  ;;  %7095 = vtanh.f32 %v8681_v53  ;;  %v8687_v15 = vadd.f32 %v3970_v46, %v3810_v12 }
 0x30e   : > { %v7084_v1 = vpop.eup %7083  ;;  %v6483_v3 = vpop.f32.mrf.mxu1 }
 0x30f   : > { %4352 = vrot.lane.b32.xlu1 %v7082_v38, %s7426_s20  ;;  %v6408_v47 = vpop.f32.mrf.mxu0  ;;  %7097 = vtanh.f32 %v8687_v15 }
 0x310   : > { %4362 = vrot.lane.b32.xlu0 %v7084_v1, %s7426_s20  ;;  %v7086_v19 = vpop.eup %7085  ;;  %v6409_v60 = vadd.f32 %v6408_v47, %v6407_v18  ;;  %v3983_v43 = vpop.f32.mrf.mxu1  ;;  %v3826_v18 = vadd.f32 %v6406_v59, %v9332_v28  ;;  %v5598_v1 = vmul.f32 -1.442695, %v8488_v2  ;;  %v5599_v2 = vmul.f32 -1.442695, %v8520_v17 }
 0x311   : > { %v6410_v9 = vpop.f32.mrf.mxu0  ;;  %v8693_v27 = vadd.f32 %v3983_v43, %v3823_v49  ;;  %v5606_v43 = vmul.f32 -1.442695, %v8559_v56 }
 0x312   : > { %v7088_v30 = vpop.eup %7087  ;;  %v3831_v11 = vadd.f32 %v6409_v60, %v8461_v5  ;;  %v6484_v21 = vpop.f32.mrf.mxu1 }
 0x313   : > { %4364 = vrot.lane.b32.xlu1 %v7088_v30, %s7426_s20  ;;  %v6411_v33 = vpop.f32.mrf.mxu0  ;;  %7099 = vtanh.f32 %v8693_v27 }
 0x314   : > { %4358 = vrot.lane.b32.xlu0 %v7086_v19, %s7426_s20  ;;  %v7090_v51 = vpop.eup %7089  ;;  %v6412_v31 = vadd.f32 %v6411_v33, %v6410_v9  ;;  %v8696_v24 = vadd.f32 %v6483_v3, %v3831_v11  ;;  %v3986_v63 = vpop.f32.mrf.mxu1  ;;  %v5602_v3 = vmul.f32 -1.442695, %v8517_v32  ;;  %v5603_v32 = vmul.f32 -1.442695, %v8547_v48 }
 0x315   : > { %v8703_v57 = vadd.f32 %v3986_v63, %v3826_v18  ;;  %v5610_v18 = vmul.f32 -1.442695, %v8603_v16 }
 0x316   : > { %v7092_v13 = vpop.eup %7091  ;;  %v3834_v5 = vadd.f32 %v6412_v31, %v8473_v61  ;;  %7101 = vtanh.f32 %v8696_v24  ;;  %v5595_v61 = vmul.f32 -1.442695, %v8481_v40 }
 0x317   : > { %4360 = vrot.lane.b32.xlu1 %v7090_v51, %s7426_s20  ;;  %7103 = vtanh.f32 %v8703_v57 }
 0x318   : > { %4370 = vrot.lane.b32.xlu0 %v7092_v13, %s7426_s20  ;;  %v7094_v38 = vpop.eup %7093  ;;  %v8706_v39 = vadd.f32 %v6484_v21, %v3834_v5  ;;  %v5609_v21 = vmul.f32 -1.442695, %v8583_v45 }
 0x31a   : > { %v7096_v4 = vpop.eup %7095  ;;  %7105 = vtanh.f32 %v8706_v39 }
 0x31b   : > { %4372 = vrot.lane.b32.xlu1 %v7096_v4, %s7426_s20  ;;  %7107 = vpow2.f32 %v5597_v62 }
 0x31c   : > { %4366 = vrot.lane.b32.xlu0 %v7094_v38, %s7426_s20  ;;  %v7098_v46 = vpop.eup %7097  ;;  %7109 = vpow2.f32 %v5595_v61  ;;  %v5608_v61 = vmul.f32 -1.442695, %v8611_v34 }
 0x31d   : > { %7111 = vpow2.f32 %v5598_v1 }
 0x31e   : > { %7113 = vpow2.f32 %v5596_v0  ;;  %v5613_v0 = vmul.f32 -1.442695, %v8617_v8 }
 0x31f   : > { %4368 = vrot.lane.b32.xlu1 %v7098_v46, %s7426_s20  ;;  %7115 = vpow2.f32 %v5601_v44 }
 0x320   : > { %v7100_v7 = vpop.eup %7099  ;;  %7117 = vpow2.f32 %v5602_v3 }
 0x321   : > { %4374 = vrot.lane.b32.xlu0 %v7100_v7, %s7426_s20  ;;  %7119 = vpow2.f32 %v5599_v2  ;;  %v5611_v2 = vmul.f32 -1.442695, %v8626_v41 }
 0x322   : > { %7121 = vpow2.f32 %v5600_v23 }
 0x323   : > { %v7102_v26 = vpop.eup %7101  ;;  %7123 = vpow2.f32 %v5605_v54 }
 0x324   : > { %v7104_v47 = vpop.eup %7103 }
 0x325   : > { %4378 = vrot.lane.b32.xlu0 %v7102_v26, %s7426_s20  ;;  %4376 = vrot.lane.b32.xlu1 %v7104_v47, %s7426_s20 }
 0x327   : > { %v7106_v40 = vpop.eup %7105 }
 0x328   : > { %v7108_v19 = vpop.eup %7107 }
 0x329   : > { %4380 = vrot.lane.b32.xlu1 %v7106_v40, %s7426_s20  ;;  %v4096_v10 = vadd.f32 1.0, %v7108_v19  ;;  %v7110_v12 = vpop.eup %7109 }
 0x32a   : > { %v7112_v9 = vpop.eup %7111  ;;  %v4094_v50 = vadd.f32 1.0, %v7110_v12  ;;  %v5614_v12 = vmul.f32 -1.442695, %v8630_v6  ;;  %v5612_v6 = vmul.f32 -1.442695, %v8638_v35 }
 0x32b   : > { %7125 = vrcp.f32 %v4096_v10  ;;  %v4097_v60 = vadd.f32 1.0, %v7112_v9  ;;  %v7114_v17 = vpop.eup %7113 }
 0x32c   : > { %7127 = vpow2.f32 %v5603_v32  ;;  %v7116_v55 = vpop.eup %7115  ;;  %v4095_v30 = vadd.f32 1.0, %v7114_v17 }
 0x32d   : > { %7129 = vrcp.f32 %v4094_v50  ;;  %v7118_v33 = vpop.eup %7117  ;;  %v4100_v11 = vadd.f32 1.0, %v7116_v55 }
 0x32e   : > { %7131 = vrcp.f32 %v4097_v60  ;;  %v7120_v20 = vpop.eup %7119  ;;  %v4101_v48 = vadd.f32 1.0, %v7118_v33 }
 0x32f   : > { %7133 = vpow2.f32 %v5606_v43  ;;  %v7122_v49 = vpop.eup %7121  ;;  %v4098_v51 = vadd.f32 1.0, %v7120_v20  ;;  %v5617_v20 = vmul.f32 -1.442695, %v8642_v36 }
 0x330   : > { %7135 = vrcp.f32 %v4095_v30  ;;  %v7124_v59 = vpop.eup %7123  ;;  %v4099_v31 = vadd.f32 1.0, %v7122_v49 }
 0x331   : > { %7137 = vpow2.f32 %v5604_v58  ;;  %v4104_v28 = vadd.f32 1.0, %v7124_v59 }
 0x332   : > { %7139 = vrcp.f32 %v4100_v11 }
 0x333   : > { %7141 = vrcp.f32 %v4101_v48 }
 0x334   : > { %7143 = vpow2.f32 %v5609_v21 }
 0x335   : > { %7145 = vrcp.f32 %v4098_v51 }
 0x336   : > { %7147 = vrcp.f32 %v4099_v31  ;;  %v5615_v31 = vmul.f32 -1.442695, %v8650_v52 }
 0x337   : > { %7149 = vpow2.f32 %v5607_v37 }
 0x338   : > { %v8729_v56 = vpop.eup %7125  ;;  %7151 = vrcp.f32 %v4104_v28 }
 0x339   : > { %v7128_v5 = vpop.eup %7127  ;;  %7153 = vpow2.f32 %v5610_v18 }
 0x33a   : > { %v8735_v45 = vpop.eup %7129  ;;  %v4102_v62 = vadd.f32 1.0, %v7128_v5  ;;  %v5618_v5 = vmul.f32 -1.442695, %v8656_v29  ;;  %v5621_v29 = vmul.f32 -1.442695, %v8669_v42 }
 0x33b   : > { %v8737_v4 = vpop.eup %7131 }
 0x33c   : > { %v7134_v16 = vpop.eup %7133  ;;  %7155 = vrcp.f32 %v4102_v62 }
 0x33d   : > { %v8744_v26 = vpop.eup %7135  ;;  %v4105_v47 = vadd.f32 1.0, %v7134_v16  ;;  %7157 = vpow2.f32 %v5608_v61 }
 0x33e   : > { %v7138_v44 = vpop.eup %7137  ;;  %7159 = vpow2.f32 %v5613_v0 }
 0x33f   : > { %v8748_v34 = vpop.eup %7139  ;;  %v4103_v54 = vadd.f32 1.0, %v7138_v44  ;;  %7161 = vrcp.f32 %v4105_v47 }
 0x340   : > { %v8753_v23 = vpop.eup %7141  ;;  %7163 = vpow2.f32 %v5611_v2 }
 0x341   : > { %v7144_v8 = vpop.eup %7143  ;;  %7165 = vrcp.f32 %v4103_v54  ;;  %v5622_v54 = vmul.f32 -1.442695, %v8681_v53 }
 0x342   : > { %v8758_v32 = vpop.eup %7145  ;;  %v4108_v17 = vadd.f32 1.0, %v7144_v8  ;;  %7167 = vpow2.f32 %v5614_v12 }
 0x343   : > { %v8762_v60 = vpop.eup %7147 }
 0x344   : > { %v7150_v55 = vpop.eup %7149  ;;  %7169 = vrcp.f32 %v4108_v17  ;;  %v5620_v17 = vmul.f32 -1.442695, %v8687_v15  ;;  %v5623_v15 = vmul.f32 -1.442695, %v8693_v27 }
 0x345   : > { %v8767_v33 = vpop.eup %7151  ;;  %v4106_v49 = vadd.f32 1.0, %v7150_v55  ;;  %7171 = vpow2.f32 %v5612_v6 }
 0x346   : > { %v7154_v11 = vpop.eup %7153  ;;  %7173 = vpow2.f32 %v5617_v20 }
 0x347   : > { %v4109_v51 = vadd.f32 1.0, %v7154_v11  ;;  %7175 = vrcp.f32 %v4106_v49 }
 0x349   : > { %v8772_v21 = vpop.eup %7155  ;;  %7177 = vrcp.f32 %v4109_v51 }
 0x34a   : > { %v7158_v35 = vpop.eup %7157  ;;  %7179 = vpow2.f32 %v5615_v31 }
 0x34b   : > { %v7160_v36 = vpop.eup %7159  ;;  %v4107_v37 = vadd.f32 1.0, %v7158_v35 }
 0x34c   : > { %v4112_v62 = vadd.f32 1.0, %v7160_v36 }
 0x34d   : > { %7181 = vrcp.f32 %v4107_v37  ;;  %v5625_v37 = vmul.f32 -1.442695, %v8696_v24 }
 0x34e   : > { %7183 = vpow2.f32 %v5618_v5 }
 0x34f   : > { %7185 = vrcp.f32 %v4112_v62 }
 0x358   : > { %v4323_v13 = vpop.permute.xlu1 %4322 }
 0x359   : > { %v4416_v63 = vmul.f32 %v8729_v56, %v4323_v13 }
 0x35a   : > { %v4319_v38 = vpop.permute.xlu0 %4318 }
 0x35b   : > { %4482 = vrot.lane.b32.xlu0 %v4416_v63, %s7427_s21  ;;  %v4414_v25 = vmul.f32 %v8735_v45, %v4319_v38  ;;  %v8778_v63 = vpop.eup %7161 }
 0x35c   : > { %v4325_v46 = vpop.permute.xlu1 %4324  ;;  %v7164_v38 = vpop.eup %7163 }
 0x35d   : > { %v4417_v1 = vmul.f32 %v8737_v4, %v4325_v46  ;;  %v5616_v46 = vmul.f32 -1.442695, %v8664_v14  ;;  %v5619_v14 = vmul.f32 -1.442695, %v8677_v22 }
 0x35e   : > { %v4321_v7 = vpop.permute.xlu0 %4320 }
 0x35f   : > { %4478 = vrot.lane.b32.xlu0 %v4414_v25, %s7427_s21  ;;  %4484 = vrot.lane.b32.xlu1 %v4417_v1, %s7427_s21  ;;  %v4415_v3 = vmul.f32 %v8744_v26, %v4321_v7  ;;  %v8782_v25 = vpop.eup %7165  ;;  %v4110_v1 = vadd.f32 1.0, %v7164_v38  ;;  %7187 = vpow2.f32 %v5616_v46 }
 0x360   : > { %v7168_v52 = vpop.eup %7167 }
 0x361   : > { %v8788_v7 = vpop.eup %7169  ;;  %v4113_v0 = vadd.f32 1.0, %v7168_v52  ;;  %7189 = vrcp.f32 %v4110_v1 }
 0x362   : > { %v4331_v40 = vpop.permute.xlu0 %4330  ;;  %v7172_v47 = vpop.eup %7171  ;;  %7191 = vpow2.f32 %v5621_v29 }
 0x363   : > { %v4420_v19 = vmul.f32 %v8748_v34, %v4331_v40  ;;  %4480 = vrot.lane.b32.xlu1 %v4415_v3, %s7427_s21  ;;  %v7174_v40 = vpop.eup %7173  ;;  %7193 = vrcp.f32 %v4113_v0  ;;  %v4111_v42 = vadd.f32 1.0, %v7172_v47 }
 0x364   : > { %v4333_v10 = vpop.permute.xlu1 %4332  ;;  %v8794_v2 = vpop.eup %7175  ;;  %v4116_v12 = vadd.f32 1.0, %v7174_v40  ;;  %7195 = vpow2.f32 %v5619_v14 }
 0x365   : > { %v4421_v9 = vmul.f32 %v8753_v23, %v4333_v10  ;;  %4490 = vrot.lane.b32.xlu0 %v4420_v19, %s7427_s21  ;;  %v8798_v8 = vpop.eup %7177  ;;  %7197 = vrcp.f32 %v4111_v42 }
 0x366   : > { %v4327_v41 = vpop.permute.xlu0 %4326  ;;  %7199 = vpow2.f32 %v5622_v54 }
 0x367   : > { %v4418_v50 = vmul.f32 %v8758_v32, %v4327_v41  ;;  %4492 = vrot.lane.b32.xlu1 %v4421_v9, %s7427_s21  ;;  %v7180_v41 = vpop.eup %7179  ;;  %7201 = vrcp.f32 %v4116_v12 }
 0x368   : > { %v4329_v43 = vpop.permute.xlu1 %4328  ;;  %v8802_v22 = vpop.eup %7181  ;;  %7203 = vpow2.f32 %v5620_v17 }
 0x369   : > { %v4419_v30 = vmul.f32 %v8762_v60, %v4329_v43  ;;  %4486 = vrot.lane.b32.xlu0 %v4418_v50, %s7427_s21  ;;  %v7184_v53 = vpop.eup %7183  ;;  %v4114_v43 = vadd.f32 1.0, %v7180_v41 }
 0x36a   : > { %v4339_v58 = vpop.permute.xlu0 %4338  ;;  %v4117_v11 = vadd.f32 1.0, %v7184_v53 }
 0x36b   : > { %v4424_v48 = vmul.f32 %v8767_v33, %v4339_v58  ;;  %4488 = vrot.lane.b32.xlu1 %v4419_v30, %s7427_s21  ;;  %v8807_v30 = vpop.eup %7185  ;;  %7205 = vrcp.f32 %v4114_v43 }
 0x36c   : > { %7207 = vrcp.f32 %v4117_v11 }
 0x36d   : > { %4498 = vrot.lane.b32.xlu0 %v4424_v48, %s7427_s21  ;;  %v4341_v28 = vpop.permute.xlu1 %4340  ;;  %v7188_v48 = vpop.eup %7187  ;;  %7209 = vpow2.f32 %v5623_v15 }
 0x36e   : > { %v4335_v59 = vpop.permute.xlu0 %4334  ;;  %v4425_v18 = vmul.f32 %v8778_v63, %v4341_v28  ;;  %v8812_v49 = vpop.eup %7189  ;;  %v4115_v31 = vadd.f32 1.0, %v7188_v48 }
 0x36f   : > { %v4422_v13 = vmul.f32 %v8772_v21, %v4335_v59  ;;  %v7192_v35 = vpop.eup %7191 }
 0x370   : > { %4500 = vrot.lane.b32.xlu1 %v4425_v18, %s7427_s21  ;;  %v8815_v59 = vpop.eup %7193  ;;  %v4120_v28 = vadd.f32 1.0, %v7192_v35  ;;  %v5624_v18 = vmul.f32 -1.442695, %v8703_v57  ;;  %7211 = vrcp.f32 %v4115_v31 }
 0x371   : > { %4494 = vrot.lane.b32.xlu0 %v4422_v13, %s7427_s21  ;;  %v4337_v61 = vpop.permute.xlu1 %4336  ;;  %v7196_v27 = vpop.eup %7195  ;;  %7213 = vpow2.f32 %v5625_v37 }
 0x372   : > { %v4423_v16 = vmul.f32 %v8782_v25, %v4337_v61  ;;  %v4347_v44 = vpop.permute.xlu0 %4346  ;;  %v8823_v38 = vpop.eup %7197  ;;  %7215 = vrcp.f32 %v4120_v28  ;;  %v4118_v61 = vadd.f32 1.0, %v7196_v27 }
 0x373   : > { %v4428_v3 = vmul.f32 %v8788_v7, %v4347_v44  ;;  %v7200_v52 = vpop.eup %7199  ;;  %7217 = vpow2.f32 %v5624_v18 }
 0x374   : > { %4496 = vrot.lane.b32.xlu1 %v4423_v16, %s7427_s21  ;;  %v8826_v24 = vpop.eup %7201  ;;  %v5626_v16 = vmul.f32 -1.442695, %v8706_v39  ;;  %v4121_v29 = vadd.f32 1.0, %v7200_v52  ;;  %7219 = vrcp.f32 %v4118_v61 }
 0x375   : > { %4506 = vrot.lane.b32.xlu0 %v4428_v3, %s7427_s21  ;;  %v4349_v9 = vpop.permute.xlu1 %4348  ;;  %v7204_v0 = vpop.eup %7203 }
 0x376   : > { %v4343_v19 = vpop.permute.xlu0 %4342  ;;  %v4429_v50 = vmul.f32 %v8798_v8, %v4349_v9  ;;  %7221 = vpow2.f32 %v5626_v16  ;;  %v4119_v40 = vadd.f32 1.0, %v7204_v0  ;;  %v4224_v0 = vld [vmem:[%s8886_s5 + $0x10] sm:$0xff] }
 0x377   : > { %v4426_v10 = vmul.f32 %v8794_v2, %v4343_v19  ;;  %7223 = vrcp.f32 %v4121_v29 }
 0x378   : > { %4508 = vrot.lane.b32.xlu1 %v4429_v50, %s7427_s21  ;;  %v8832_v44 = vpop.eup %7205  ;;  %7225 = vrcp.f32 %v4119_v40  ;;  %v4222_v40 = vld [vmem:[%s8886_s5] sm:$0xff] }
 0x379   : > { %4502 = vrot.lane.b32.xlu0 %v4426_v10, %s7427_s21  ;;  %v4345_v55 = vpop.permute.xlu1 %4344  ;;  %v8835_v14 = vpop.eup %7207 }
 0x37a   : > { %v4427_v6 = vmul.f32 %v8802_v22, %v4345_v55  ;;  %v4355_v58 = vpop.permute.xlu0 %4354  ;;  %v7210_v42 = vpop.eup %7209 }
 0x37b   : > { %v4432_v20 = vmul.f32 %v8807_v30, %v4355_v58  ;;  %v4122_v10 = vadd.f32 1.0, %v7210_v42  ;;  %v4225_v42 = vld [vmem:[%s8886_s5 + $0x18] sm:$0xff] }
 0x37c   : > { %4504 = vrot.lane.b32.xlu1 %v4427_v6, %s7427_s21 }
 0x37d   : > { %4514 = vrot.lane.b32.xlu0 %v4432_v20, %s7427_s21  ;;  %v4357_v13 = vpop.permute.xlu1 %4356  ;;  %v8840_v54 = vpop.eup %7211  ;;  %7227 = vrcp.f32 %v4122_v10  ;;  %v4257_v10 = vmul.f32 %v8737_v4, %v4225_v42  ;;  %v4233_v42 = vld [vmem:[%s8886_s5 + $0x58] sm:$0xff] }
 0x37e   : > { %v4351_v51 = vpop.permute.xlu0 %4350  ;;  %v4433_v5 = vmul.f32 %v8815_v59, %v4357_v13  ;;  %v7214_v9 = vpop.eup %7213 }
 0x37f   : > { %v4430_v36 = vmul.f32 %v8812_v49, %v4351_v51  ;;  %v8843_v50 = vpop.eup %7215  ;;  %v4124_v55 = vadd.f32 1.0, %v7214_v9 }
 0x380   : > { %4516 = vrot.lane.b32.xlu1 %v4433_v5, %s7427_s21  ;;  %v7218_v53 = vpop.eup %7217 }
 0x381   : > { %4510 = vrot.lane.b32.xlu0 %v4430_v36, %s7427_s21  ;;  %v4353_v62 = vpop.permute.xlu1 %4352  ;;  %v8848_v6 = vpop.eup %7219  ;;  %v4123_v58 = vadd.f32 1.0, %v7218_v53  ;;  %7229 = vrcp.f32 %v4124_v55 }
 0x382   : > { %v4431_v46 = vmul.f32 %v8823_v38, %v4353_v62  ;;  %v4363_v1 = vpop.permute.xlu0 %4362 }
 0x383   : > { %v4436_v57 = vmul.f32 %v8826_v24, %v4363_v1  ;;  %v7222_v20 = vpop.eup %7221  ;;  %7231 = vrcp.f32 %v4123_v58 }
 0x384   : > { %4512 = vrot.lane.b32.xlu1 %v4431_v46, %s7427_s21  ;;  %v8851_v15 = vpop.eup %7223  ;;  %v4125_v31 = vadd.f32 1.0, %v7222_v20 }
 0x385   : > { %4522 = vrot.lane.b32.xlu0 %v4436_v57, %s7427_s21  ;;  %v4365_v39 = vpop.permute.xlu1 %4364  ;;  %v8856_v13 = vpop.eup %7225 }
 0x386   : > { %v4359_v47 = vpop.permute.xlu0 %4358  ;;  %v4437_v19 = vmul.f32 %v8835_v14, %v4365_v39  ;;  %7233 = vrcp.f32 %v4125_v31 }
 0x387   : > { %v4434_v3 = vmul.f32 %v8832_v44, %v4359_v47  ;;  %v4256_v47 = vmul.f32 %v8729_v56, %v4224_v0 }
 0x388   : > { %4524 = vrot.lane.b32.xlu1 %v4437_v19, %s7427_s21  ;;  %v4254_v19 = vmul.f32 %v8735_v45, %v4222_v40 }
 0x389   : > { %4518 = vrot.lane.b32.xlu0 %v4434_v3, %s7427_s21  ;;  %v4361_v12 = vpop.permute.xlu1 %4360 }
 0x38a   : > { %v4435_v41 = vmul.f32 %v8840_v54, %v4361_v12  ;;  %v4371_v17 = vpop.permute.xlu0 %4370  ;;  %v8860_v5 = vpop.eup %7227 }
 0x38b   : > { %v4440_v43 = vmul.f32 %v8843_v50, %v4371_v17  ;;  %v4223_v17 = vld [vmem:[%s8886_s5 + $0x8] sm:$0xff] }
 0x38c   : > { %4520 = vrot.lane.b32.xlu1 %v4435_v41, %s7427_s21  ;;  %v4255_v55 = vmul.f32 %v8744_v26, %v4223_v17  ;;  %v4265_v17 = vmul.f32 %v8778_v63, %v4233_v42 }
 0x38d   : > { %4530 = vrot.lane.b32.xlu0 %v4440_v43, %s7427_s21  ;;  %v4373_v35 = vpop.permute.xlu1 %4372  ;;  %v4228_v43 = vld [vmem:[%s8886_s5 + $0x30] sm:$0xff] }
 0x38e   : > { %v4367_v11 = vpop.permute.xlu0 %4366  ;;  %v4441_v51 = vmul.f32 %v8851_v15, %v4373_v35  ;;  %v8864_v18 = vpop.eup %7229 }
 0x38f   : > { %v4438_v48 = vmul.f32 %v8848_v6, %v4367_v11  ;;  %v4229_v11 = vld [vmem:[%s8886_s5 + $0x38] sm:$0xff] }
 0x390   : > { %4532 = vrot.lane.b32.xlu1 %v4441_v51, %s7427_s21  ;;  %v8867_v46 = vpop.eup %7231  ;;  %v4226_v51 = vld [vmem:[%s8886_s5 + $0x20] sm:$0xff] }
 0x391   : > { %4526 = vrot.lane.b32.xlu0 %v4438_v48, %s7427_s21  ;;  %v4369_v36 = vpop.permute.xlu1 %4368  ;;  %v4260_v48 = vmul.f32 %v8748_v34, %v4228_v43  ;;  %v4231_v43 = vld [vmem:[%s8886_s5 + $0x48] sm:$0xff] }
 0x392   : > { %v4439_v37 = vmul.f32 %v8856_v13, %v4369_v36  ;;  %v4261_v36 = vmul.f32 %v8753_v23, %v4229_v11 }
 0x393   : > { %v4375_v28 = vpop.permute.xlu0 %4374  ;;  %v8872_v16 = vpop.eup %7233 }
 0x394   : > { %4528 = vrot.lane.b32.xlu1 %v4439_v37, %s7427_s21  ;;  %v4442_v27 = vmul.f32 %v8860_v5, %v4375_v28  ;;  %v4227_v28 = vld [vmem:[%s8886_s5 + $0x28] sm:$0xff] }
 0x396   : > { %4534 = vrot.lane.b32.xlu0 %v4442_v27, %s7427_s21 }
 0x397   : > { %v4379_v62 = vpop.permute.xlu0 %4378  ;;  %v4377_v61 = vpop.permute.xlu1 %4376 }
 0x398   : > { %v4444_v52 = vmul.f32 %v8864_v18, %v4379_v62  ;;  %v4443_v1 = vmul.f32 %v8867_v46, %v4377_v61  ;;  %v4258_v62 = vmul.f32 %v8758_v32, %v4226_v51 }
 0x39a   : > { %4538 = vrot.lane.b32.xlu0 %v4444_v52, %s7427_s21  ;;  %4536 = vrot.lane.b32.xlu1 %v4443_v1, %s7427_s21  ;;  %v4259_v1 = vmul.f32 %v8762_v60, %v4227_v28 }
 0x39b   : > { %v4381_v57 = vpop.permute.xlu1 %4380 }
 0x39c   : > { %v4445_v29 = vmul.f32 %v8872_v16, %v4381_v57 }
 0x39e   : > { %4540 = vrot.lane.b32.xlu1 %v4445_v29, %s7427_s21 }
 0x3cd   : > { %v4483_v3 = vpop.permute.xlu0 %4482 }
 0x3ce   : > { %v4576_v39 = vadd.f32 %v4483_v3, %v4256_v47  ;;  %v4232_v3 = vld [vmem:[%s8886_s5 + $0x50] sm:$0xff] }
 0x3d0   : > { %4962 = vrot.lane.b32.xlu0 %v4576_v39, %s7428_s18  ;;  %7235 = vtanh.f32 %v4576_v39 }
 0x3d1   : > { %v4479_v12 = vpop.permute.xlu0 %4478  ;;  %v4485_v9 = vpop.permute.xlu1 %4484 }
 0x3d2   : > { %v4574_v41 = vadd.f32 %v4479_v12, %v4254_v19  ;;  %v4577_v53 = vadd.f32 %v4485_v9, %v4257_v10  ;;  %v4264_v19 = vmul.f32 %v8767_v33, %v4232_v3  ;;  %v4230_v9 = vld [vmem:[%s8886_s5 + $0x40] sm:$0xff] }
 0x3d4   : > { %4958 = vrot.lane.b32.xlu0 %v4574_v41, %s7428_s18  ;;  %4964 = vrot.lane.b32.xlu1 %v4577_v53, %s7428_s18  ;;  %7237 = vtanh.f32 %v4577_v53 }
 0x3d5   : > { %v4481_v58 = vpop.permute.xlu1 %4480  ;;  %7239 = vtanh.f32 %v4574_v41 }
 0x3d6   : > { %v4575_v20 = vadd.f32 %v4481_v58, %v4255_v55  ;;  %v4262_v58 = vmul.f32 %v8772_v21, %v4230_v9 }
 0x3d7   : > { %v4491_v35 = vpop.permute.xlu0 %4490 }
 0x3d8   : > { %v4580_v31 = vadd.f32 %v4491_v35, %v4260_v48  ;;  %4960 = vrot.lane.b32.xlu1 %v4575_v20, %s7428_s18  ;;  %7241 = vtanh.f32 %v4575_v20  ;;  %v4263_v48 = vmul.f32 %v8782_v25, %v4231_v43  ;;  %v4241_v43 = vld [vmem:[%s8886_s5 + $0x98] sm:$0xff] }
 0x3d9   : > { %v4493_v37 = vpop.permute.xlu1 %4492 }
 0x3da   : > { %v4581_v27 = vadd.f32 %v4493_v37, %v4261_v36  ;;  %4970 = vrot.lane.b32.xlu0 %v4580_v31, %s7428_s18  ;;  %7243 = vtanh.f32 %v4580_v31  ;;  %v4236_v36 = vld [vmem:[%s8886_s5 + $0x70] sm:$0xff] }
 0x3db   : > { %v4487_v52 = vpop.permute.xlu0 %4486 }
 0x3dc   : > { %v4578_v61 = vadd.f32 %v4487_v52, %v4258_v62  ;;  %4972 = vrot.lane.b32.xlu1 %v4581_v27, %s7428_s18  ;;  %7245 = vtanh.f32 %v4581_v27  ;;  %v4237_v27 = vld [vmem:[%s8886_s5 + $0x78] sm:$0xff]  ;;  %v4268_v52 = vmul.f32 %v8788_v7, %v4236_v36 }
 0x3dd   : > { %v4489_v57 = vpop.permute.xlu1 %4488  ;;  %v7236_v0 = vpop.eup %7235 }
 0x3de   : > { %v4579_v29 = vadd.f32 %v4489_v57, %v4259_v1  ;;  %4966 = vrot.lane.b32.xlu0 %v4578_v61, %s7428_s18  ;;  %7247 = vtanh.f32 %v4578_v61  ;;  %v4234_v1 = vld [vmem:[%s8886_s5 + $0x60] sm:$0xff] }
 0x3df   : > { %v4499_v40 = vpop.permute.xlu0 %4498 }
 0x3e0   : > { %4968 = vrot.lane.b32.xlu1 %v4579_v29, %s7428_s18  ;;  %v4584_v41 = vadd.f32 %v4499_v40, %v4264_v19  ;;  %7249 = vtanh.f32 %v4579_v29  ;;  %v4269_v29 = vmul.f32 %v8798_v8, %v4237_v27  ;;  %v4266_v40 = vmul.f32 %v8794_v2, %v4234_v1 }
 0x3e1   : > { %v7238_v47 = vpop.eup %7237 }
 0x3e2   : > { %4674 = vrot.lane.b32.xlu0 %v7236_v0, %s7426_s20  ;;  %v7240_v39 = vpop.eup %7239  ;;  %v4501_v12 = vpop.permute.xlu1 %4500  ;;  %7251 = vtanh.f32 %v4584_v41 }
 0x3e3   : > { %v4495_v53 = vpop.permute.xlu0 %4494  ;;  %v4585_v55 = vadd.f32 %v4501_v12, %v4265_v17 }
 0x3e4   : > { %4676 = vrot.lane.b32.xlu1 %v7238_v47, %s7426_s20  ;;  %v4582_v20 = vadd.f32 %v4495_v53, %v4262_v58  ;;  %v4235_v47 = vld [vmem:[%s8886_s5 + $0x68] sm:$0xff] }
 0x3e5   : > { %v7242_v10 = vpop.eup %7241  ;;  %7253 = vtanh.f32 %v4585_v55  ;;  %v4267_v19 = vmul.f32 %v8802_v22, %v4235_v47  ;;  %v4245_v47 = vld [vmem:[%s8886_s5 + $0xb8] sm:$0xff] }
 0x3e6   : > { %4670 = vrot.lane.b32.xlu0 %v7240_v39, %s7426_s20  ;;  %v4497_v11 = vpop.permute.xlu1 %4496  ;;  %7255 = vtanh.f32 %v4582_v20 }
 0x3e7   : > { %v4583_v35 = vadd.f32 %v4497_v11, %v4263_v48  ;;  %v7244_v51 = vpop.eup %7243  ;;  %v4507_v37 = vpop.permute.xlu0 %4506 }
 0x3e8   : > { %4672 = vrot.lane.b32.xlu1 %v7242_v10, %s7426_s20  ;;  %v4588_v57 = vadd.f32 %v4507_v37, %v4268_v52 }
 0x3e9   : > { %v7246_v31 = vpop.eup %7245  ;;  %7257 = vtanh.f32 %v4583_v35 }
 0x3ea   : > { %4978 = vrot.lane.b32.xlu0 %v4584_v41, %s7428_s18  ;;  %v4509_v62 = vpop.permute.xlu1 %4508  ;;  %v4240_v41 = vld [vmem:[%s8886_s5 + $0x90] sm:$0xff]  ;;  %7259 = vtanh.f32 %v4588_v57 }
 0x3eb   : > { %v7248_v28 = vpop.eup %7247  ;;  %v4503_v0 = vpop.permute.xlu0 %4502  ;;  %v4589_v3 = vadd.f32 %v4509_v62, %v4269_v29  ;;  %v4272_v58 = vmul.f32 %v8807_v30, %v4240_v41 }
 0x3ec   : > { %4980 = vrot.lane.b32.xlu1 %v4585_v55, %s7428_s18  ;;  %v4586_v42 = vadd.f32 %v4503_v0, %v4266_v40 }
 0x3ed   : > { %v7250_v61 = vpop.eup %7249  ;;  %7261 = vtanh.f32 %v4589_v3 }
 0x3ee   : > { %4974 = vrot.lane.b32.xlu0 %v4582_v20, %s7428_s18  ;;  %v4505_v39 = vpop.permute.xlu1 %4504  ;;  %v4238_v20 = vld [vmem:[%s8886_s5 + $0x80] sm:$0xff]  ;;  %7263 = vtanh.f32 %v4586_v42 }
 0x3ef   : > { %v4587_v10 = vadd.f32 %v4505_v39, %v4267_v19  ;;  %v7252_v12 = vpop.eup %7251  ;;  %v4515_v17 = vpop.permute.xlu0 %4514  ;;  %v4270_v37 = vmul.f32 %v8812_v49, %v4238_v20 }
 0x3f0   : > { %4976 = vrot.lane.b32.xlu1 %v4583_v35, %s7428_s18  ;;  %v4592_v48 = vadd.f32 %v4515_v17, %v4272_v58  ;;  %v4273_v35 = vmul.f32 %v8815_v59, %v4241_v43 }
 0x3f1   : > { %7265 = vtanh.f32 %v4587_v10 }
 0x3f2   : > { %4682 = vrot.lane.b32.xlu0 %v7244_v51, %s7426_s20  ;;  %v7254_v9 = vpop.eup %7253  ;;  %v4517_v55 = vpop.permute.xlu1 %4516  ;;  %7267 = vtanh.f32 %v4592_v48 }
 0x3f3   : > { %v7256_v53 = vpop.eup %7255  ;;  %v4511_v51 = vpop.permute.xlu0 %4510  ;;  %v4593_v36 = vadd.f32 %v4517_v55, %v4273_v35 }
 0x3f4   : > { %4684 = vrot.lane.b32.xlu1 %v7246_v31, %s7426_s20  ;;  %v4239_v31 = vld [vmem:[%s8886_s5 + $0x88] sm:$0xff]  ;;  %v4590_v27 = vadd.f32 %v4511_v51, %v4270_v37 }
 0x3f5   : > { %v4271_v62 = vmul.f32 %v8823_v38, %v4239_v31  ;;  %7269 = vtanh.f32 %v4593_v36  ;;  %v4249_v31 = vld [vmem:[%s8886_s5 + $0xd8] sm:$0xff] }
 0x3f6   : > { %4678 = vrot.lane.b32.xlu0 %v7248_v28, %s7426_s20  ;;  %v7258_v11 = vpop.eup %7257  ;;  %v4513_v28 = vpop.permute.xlu1 %4512  ;;  %7271 = vtanh.f32 %v4590_v27 }
 0x3f7   : > { %v4591_v52 = vadd.f32 %v4513_v28, %v4271_v62  ;;  %v4523_v29 = vpop.permute.xlu0 %4522 }
 0x3f8   : > { %4680 = vrot.lane.b32.xlu1 %v7250_v61, %s7426_s20  ;;  %v7260_v61 = vpop.eup %7259 }
 0x3f9   : > { %7273 = vtanh.f32 %v4591_v52 }
 0x3fa   : > { %4986 = vrot.lane.b32.xlu0 %v4588_v57, %s7428_s18  ;;  %v7262_v1 = vpop.eup %7261  ;;  %v4244_v57 = vld [vmem:[%s8886_s5 + $0xb0] sm:$0xff] }
 0x3fb   : > { %v7264_v0 = vpop.eup %7263  ;;  %v4276_v40 = vmul.f32 %v8826_v24, %v4244_v57 }
 0x3fc   : > { %4988 = vrot.lane.b32.xlu1 %v4589_v3, %s7428_s18  ;;  %v4525_v3 = vpop.permute.xlu1 %4524 }
 0x3fd   : > { %v4596_v19 = vadd.f32 %v4523_v29, %v4276_v40 }
 0x3fe   : > { %4982 = vrot.lane.b32.xlu0 %v4586_v42, %s7428_s18  ;;  %v7266_v39 = vpop.eup %7265  ;;  %v4242_v42 = vld [vmem:[%s8886_s5 + $0xa0] sm:$0xff] }
 0x3ff   : > { %v4274_v17 = vmul.f32 %v8832_v44, %v4242_v42  ;;  %7275 = vtanh.f32 %v4596_v19 }
 0x400   : > { %4984 = vrot.lane.b32.xlu1 %v4587_v10, %s7428_s18  ;;  %v4277_v10 = vmul.f32 %v8835_v14, %v4245_v47 }
 0x402   : > { %4690 = vrot.lane.b32.xlu0 %v7252_v12, %s7426_s20  ;;  %v4519_v12 = vpop.permute.xlu0 %4518  ;;  %v4597_v41 = vadd.f32 %v4525_v3, %v4277_v10  ;;  %v4251_v10 = vld [vmem:[%s8886_s5 + $0xe8] sm:$0xff] }
 0x403   : > { %v4594_v43 = vadd.f32 %v4519_v12, %v4274_v17  ;;  %v4252_v17 = vld [vmem:[%s8886_s5 + $0xf0] sm:$0xff] }
 0x404   : > { %4692 = vrot.lane.b32.xlu1 %v7254_v9, %s7426_s20  ;;  %v4243_v9 = vld [vmem:[%s8886_s5 + $0xa8] sm:$0xff]  ;;  %7277 = vtanh.f32 %v4597_v41 }
 0x405   : > { %v4275_v55 = vmul.f32 %v8840_v54, %v4243_v9  ;;  %7279 = vtanh.f32 %v4594_v43 }
 0x406   : > { %4686 = vrot.lane.b32.xlu0 %v7256_v53, %s7426_s20  ;;  %v4521_v53 = vpop.permute.xlu1 %4520  ;;  %v4531_v35 = vpop.permute.xlu0 %4530 }
 0x407   : > { %v4595_v58 = vadd.f32 %v4521_v53, %v4275_v55 }
 0x408   : > { %4688 = vrot.lane.b32.xlu1 %v7258_v11, %s7426_s20  ;;  %v7268_v11 = vpop.eup %7267 }
 0x409   : > { %v7270_v20 = vpop.eup %7269  ;;  %7281 = vtanh.f32 %v4595_v58 }
 0x40a   : > { %4994 = vrot.lane.b32.xlu0 %v4592_v48, %s7428_s18  ;;  %v4248_v48 = vld [vmem:[%s8886_s5 + $0xd0] sm:$0xff]  ;;  %v7272_v51 = vpop.eup %7271 }
 0x40b   : > { %v4280_v37 = vmul.f32 %v8843_v50, %v4248_v48  ;;  %v7274_v28 = vpop.eup %7273  ;;  %v4284_v48 = vmul.f32 %v8864_v18, %v4252_v17 }
 0x40c   : > { %4996 = vrot.lane.b32.xlu1 %v4593_v36, %s7428_s18  ;;  %v4533_v36 = vpop.permute.xlu1 %4532 }
 0x40d   : > { %v4600_v62 = vadd.f32 %v4531_v35, %v4280_v37 }
 0x40e   : > { %4990 = vrot.lane.b32.xlu0 %v4590_v27, %s7428_s18  ;;  %v4246_v27 = vld [vmem:[%s8886_s5 + $0xc0] sm:$0xff] }
 0x40f   : > { %v4278_v29 = vmul.f32 %v8848_v6, %v4246_v27  ;;  %7283 = vtanh.f32 %v4600_v62 }
 0x410   : > { %4992 = vrot.lane.b32.xlu1 %v4591_v52, %s7428_s18  ;;  %v4281_v52 = vmul.f32 %v8851_v15, %v4249_v31 }
 0x412   : > { %4698 = vrot.lane.b32.xlu0 %v7260_v61, %s7426_s20  ;;  %v4527_v61 = vpop.permute.xlu0 %4526  ;;  %v4601_v57 = vadd.f32 %v4533_v36, %v4281_v52 }
 0x413   : > { %v4598_v47 = vadd.f32 %v4527_v61, %v4278_v29 }
 0x414   : > { %4700 = vrot.lane.b32.xlu1 %v7262_v1, %s7426_s20  ;;  %v4247_v1 = vld [vmem:[%s8886_s5 + $0xc8] sm:$0xff]  ;;  %7285 = vtanh.f32 %v4601_v57 }
 0x415   : > { %v4279_v3 = vmul.f32 %v8856_v13, %v4247_v1  ;;  %7287 = vtanh.f32 %v4598_v47 }
 0x416   : > { %4694 = vrot.lane.b32.xlu0 %v7264_v0, %s7426_s20  ;;  %v4529_v0 = vpop.permute.xlu1 %4528  ;;  %v4535_v42 = vpop.permute.xlu0 %4534 }
 0x417   : > { %v4599_v40 = vadd.f32 %v4529_v0, %v4279_v3 }
 0x418   : > { %4696 = vrot.lane.b32.xlu1 %v7266_v39, %s7426_s20  ;;  %v4250_v39 = vld [vmem:[%s8886_s5 + $0xe0] sm:$0xff] }
 0x419   : > { %v4282_v9 = vmul.f32 %v8860_v5, %v4250_v39  ;;  %7289 = vtanh.f32 %v4599_v40 }
 0x41a   : > { %5002 = vrot.lane.b32.xlu0 %v4596_v19, %s7428_s18  ;;  %v7276_v19 = vpop.eup %7275  ;;  %v4537_v12 = vpop.permute.xlu1 %4536 }
 0x41b   : > { %v4602_v53 = vadd.f32 %v4535_v42, %v4282_v9 }
 0x41c   : > { %5004 = vrot.lane.b32.xlu1 %v4597_v41, %s7428_s18  ;;  %v7278_v41 = vpop.eup %7277 }
 0x41d   : > { %v7280_v55 = vpop.eup %7279  ;;  %7291 = vtanh.f32 %v4602_v53 }
 0x41e   : > { %4998 = vrot.lane.b32.xlu0 %v4594_v43, %s7428_s18  ;;  %v4283_v43 = vmul.f32 %v8867_v46, %v4251_v10  ;;  %v7282_v35 = vpop.eup %7281 }
 0x420   : > { %5000 = vrot.lane.b32.xlu1 %v4595_v58, %s7428_s18  ;;  %v4539_v58 = vpop.permute.xlu0 %4538 }
 0x421   : > { %v9002_v31 = vadd.f32 %v4539_v58, %v4284_v48 }
 0x422   : > { %4706 = vrot.lane.b32.xlu0 %v7268_v11, %s7426_s20  ;;  %v4253_v11 = vld [vmem:[%s8886_s5 + $0xf8] sm:$0xff] }
 0x423   : > { %v4285_v36 = vmul.f32 %v8872_v16, %v4253_v11 }
 0x424   : > { %4708 = vrot.lane.b32.xlu1 %v7270_v20, %s7426_s20  ;;  %v4603_v20 = vadd.f32 %v4537_v12, %v4283_v43 }
 0x426   : > { %4702 = vrot.lane.b32.xlu0 %v7272_v51, %s7426_s20  ;;  %v4541_v51 = vpop.permute.xlu1 %4540  ;;  %7293 = vtanh.f32 %v4603_v20 }
 0x427   : > { %v9006_v37 = vadd.f32 %v4541_v51, %v4285_v36  ;;  %7295 = vtanh.f32 %v9002_v31 }
 0x428   : > { %4704 = vrot.lane.b32.xlu1 %v7274_v28, %s7426_s20  ;;  %v7284_v28 = vpop.eup %7283 }
 0x429   : > { %7297 = vtanh.f32 %v9006_v37  ;;  %v7286_v27 = vpop.eup %7285 }
 0x42a   : > { %5010 = vrot.lane.b32.xlu0 %v4600_v62, %s7428_s18  ;;  %v7288_v62 = vpop.eup %7287 }
 0x42b   : > { %v7290_v61 = vpop.eup %7289 }
 0x42c   : > { %5012 = vrot.lane.b32.xlu1 %v4601_v57, %s7428_s18  ;;  %v7292_v1 = vpop.eup %7291 }
 0x42e   : > { %5006 = vrot.lane.b32.xlu0 %v4598_v47, %s7428_s18 }
 0x430   : > { %5008 = vrot.lane.b32.xlu1 %v4599_v40, %s7428_s18 }
 0x432   : > { %4714 = vrot.lane.b32.xlu0 %v7276_v19, %s7426_s20 }
 0x433   : > { %v7294_v29 = vpop.eup %7293 }
 0x434   : > { %4716 = vrot.lane.b32.xlu1 %v7278_v41, %s7426_s20  ;;  %v7296_v47 = vpop.eup %7295 }
 0x436   : > { %4710 = vrot.lane.b32.xlu0 %v7280_v55, %s7426_s20  ;;  %v7298_v40 = vpop.eup %7297 }
 0x438   : > { %4712 = vrot.lane.b32.xlu1 %v7282_v35, %s7426_s20 }
 0x43a   : > { %5014 = vrot.lane.b32.xlu0 %v4602_v53, %s7428_s18 }
 0x43c   : > { %5016 = vrot.lane.b32.xlu1 %v4603_v20, %s7428_s18 }
 0x43e   : > { %4722 = vrot.lane.b32.xlu0 %v7284_v28, %s7426_s20 }
 0x440   : > { %4724 = vrot.lane.b32.xlu1 %v7286_v27, %s7426_s20 }
 0x442   : > { %v9014_v52 = vpop.permute.xlu0 %4962  ;;  %4718 = vrot.lane.b32.xlu0 %v7288_v62, %s7426_s20 }
 0x444   : > { %4720 = vrot.lane.b32.xlu1 %v7290_v61, %s7426_s20 }
 0x446   : > { %v9018_v57 = vpop.permute.xlu1 %4964  ;;  %4726 = vrot.lane.b32.xlu0 %v7292_v1, %s7426_s20  ;;  %v9021_v0 = vpop.permute.xlu0 %4958 }
 0x448   : > { %4728 = vrot.lane.b32.xlu1 %v7294_v29, %s7426_s20 }
 0x44a   : > { %v9024_v3 = vpop.permute.xlu1 %4960  ;;  %4730 = vrot.lane.b32.xlu0 %v7296_v47, %s7426_s20 }
 0x44c   : > { %4732 = vrot.lane.b32.xlu1 %v7298_v40, %s7426_s20  ;;  %v9028_v39 = vpop.permute.xlu0 %4970 }
 0x44e   : > { %v9030_v42 = vpop.permute.xlu1 %4972 }
 0x450   : > { %v9032_v19 = vpop.permute.xlu0 %4966 }
 0x452   : > { %v9034_v10 = vpop.permute.xlu1 %4968 }
 0x454   : > { %v4675_v12 = vpop.permute.xlu0 %4674 }
 0x455   : > { %v4768_v9 = vmul.f32 %v8729_v56, %v4675_v12 }
 0x456   : > { %v4677_v41 = vpop.permute.xlu1 %4676 }
 0x457   : > { %v4769_v17 = vmul.f32 %v8737_v4, %v4677_v41  ;;  %4834 = vrot.lane.b32.xlu0 %v4768_v9, %s7426_s20 }
 0x458   : > { %v4671_v53 = vpop.permute.xlu0 %4670 }
 0x459   : > { %v4766_v43 = vmul.f32 %v8735_v45, %v4671_v53  ;;  %4836 = vrot.lane.b32.xlu1 %v4769_v17, %s7426_s20 }
 0x45a   : > { %v4673_v55 = vpop.permute.xlu1 %4672 }
 0x45b   : > { %v4767_v58 = vmul.f32 %v8744_v26, %v4673_v55  ;;  %4830 = vrot.lane.b32.xlu0 %v4766_v43, %s7426_s20 }
 0x45c   : > { %v9043_v11 = vpop.permute.xlu0 %4978 }
 0x45d   : > { %4832 = vrot.lane.b32.xlu1 %v4767_v58, %s7426_s20 }
 0x45e   : > { %v9046_v56 = vpop.permute.xlu1 %4980 }
 0x460   : > { %v9048_v20 = vpop.permute.xlu0 %4974 }
 0x462   : > { %v9050_v4 = vpop.permute.xlu1 %4976 }
 0x464   : > { %v4683_v48 = vpop.permute.xlu0 %4682 }
 0x465   : > { %v4772_v45 = vmul.f32 %v8748_v34, %v4683_v48 }
 0x466   : > { %v4685_v35 = vpop.permute.xlu1 %4684 }
 0x467   : > { %v4773_v51 = vmul.f32 %v8753_v23, %v4685_v35  ;;  %4842 = vrot.lane.b32.xlu0 %v4772_v45, %s7426_s20 }
 0x468   : > { %v4679_v26 = vpop.permute.xlu0 %4678 }
 0x469   : > { %v4770_v36 = vmul.f32 %v8758_v32, %v4679_v26  ;;  %4844 = vrot.lane.b32.xlu1 %v4773_v51, %s7426_s20 }
 0x46a   : > { %v4681_v28 = vpop.permute.xlu1 %4680 }
 0x46b   : > { %v4771_v27 = vmul.f32 %v8762_v60, %v4681_v28  ;;  %4838 = vrot.lane.b32.xlu0 %v4770_v36, %s7426_s20 }
 0x46c   : > { %v9059_v62 = vpop.permute.xlu0 %4986 }
 0x46d   : > { %4840 = vrot.lane.b32.xlu1 %v4771_v27, %s7426_s20 }
 0x46e   : > { %v9062_v34 = vpop.permute.xlu1 %4988 }
 0x470   : > { %v9064_v61 = vpop.permute.xlu0 %4982 }
 0x472   : > { %v9066_v23 = vpop.permute.xlu1 %4984 }
 0x474   : > { %v4691_v1 = vpop.permute.xlu0 %4690 }
 0x475   : > { %v4776_v32 = vmul.f32 %v8767_v33, %v4691_v1 }
 0x476   : > { %v4693_v29 = vpop.permute.xlu1 %4692 }
 0x477   : > { %v4777_v47 = vmul.f32 %v8778_v63, %v4693_v29  ;;  %4850 = vrot.lane.b32.xlu0 %v4776_v32, %s7426_s20 }
 0x478   : > { %v4687_v60 = vpop.permute.xlu0 %4686 }
 0x479   : > { %v4774_v40 = vmul.f32 %v8772_v21, %v4687_v60  ;;  %4852 = vrot.lane.b32.xlu1 %v4777_v47, %s7426_s20 }
 0x47a   : > { %v4689_v12 = vpop.permute.xlu1 %4688 }
 0x47b   : > { %v4775_v9 = vmul.f32 %v8782_v25, %v4689_v12  ;;  %4846 = vrot.lane.b32.xlu0 %v4774_v40, %s7426_s20 }
 0x47c   : > { %v9075_v41 = vpop.permute.xlu0 %4994 }
 0x47d   : > { %4848 = vrot.lane.b32.xlu1 %v4775_v9, %s7426_s20 }
 0x47e   : > { %v9078_v33 = vpop.permute.xlu1 %4996 }
 0x480   : > { %v9080_v17 = vpop.permute.xlu0 %4990 }
 0x482   : > { %v9082_v63 = vpop.permute.xlu1 %4992 }
 0x484   : > { %v4699_v53 = vpop.permute.xlu0 %4698 }
 0x485   : > { %v4780_v21 = vmul.f32 %v8788_v7, %v4699_v53 }
 0x486   : > { %v4701_v43 = vpop.permute.xlu1 %4700 }
 0x487   : > { %v4781_v55 = vmul.f32 %v8798_v8, %v4701_v43  ;;  %4858 = vrot.lane.b32.xlu0 %v4780_v21, %s7426_s20 }
 0x488   : > { %v4695_v25 = vpop.permute.xlu0 %4694 }
 0x489   : > { %v4778_v58 = vmul.f32 %v8794_v2, %v4695_v25  ;;  %4860 = vrot.lane.b32.xlu1 %v4781_v55, %s7426_s20 }
 0x48a   : > { %v4697_v48 = vpop.permute.xlu1 %4696 }
 0x48b   : > { %v4779_v45 = vmul.f32 %v8802_v22, %v4697_v48  ;;  %4854 = vrot.lane.b32.xlu0 %v4778_v58, %s7426_s20 }
 0x48c   : > { %v9091_v35 = vpop.permute.xlu0 %5002 }
 0x48d   : > { %4856 = vrot.lane.b32.xlu1 %v4779_v45, %s7426_s20 }
 0x48e   : > { %v9094_v7 = vpop.permute.xlu1 %5004 }
 0x490   : > { %v9096_v51 = vpop.permute.xlu0 %4998 }
 0x492   : > { %v9098_v8 = vpop.permute.xlu1 %5000 }
 0x494   : > { %v4707_v26 = vpop.permute.xlu0 %4706 }
 0x495   : > { %v4784_v2 = vmul.f32 %v8807_v30, %v4707_v26 }
 0x496   : > { %v4709_v36 = vpop.permute.xlu1 %4708 }
 0x497   : > { %v4785_v28 = vmul.f32 %v8815_v59, %v4709_v36  ;;  %4866 = vrot.lane.b32.xlu0 %v4784_v2, %s7426_s20 }
 0x498   : > { %v4703_v22 = vpop.permute.xlu0 %4702 }
 0x499   : > { %v4782_v27 = vmul.f32 %v8812_v49, %v4703_v22  ;;  %4868 = vrot.lane.b32.xlu1 %v4785_v28, %s7426_s20 }
 0x49a   : > { %v4705_v1 = vpop.permute.xlu1 %4704 }
 0x49b   : > { %v4783_v32 = vmul.f32 %v8823_v38, %v4705_v1  ;;  %4862 = vrot.lane.b32.xlu0 %v4782_v27, %s7426_s20 }
 0x49c   : > { %v9107_v29 = vpop.permute.xlu0 %5010 }
 0x49d   : > { %4864 = vrot.lane.b32.xlu1 %v4783_v32, %s7426_s20 }
 0x49e   : > { %v9110_v30 = vpop.permute.xlu1 %5012 }
 0x4a0   : > { %v9112_v47 = vpop.permute.xlu0 %5006 }
 0x4a2   : > { %v9114_v59 = vpop.permute.xlu1 %5008 }
 0x4a4   : > { %v4715_v60 = vpop.permute.xlu0 %4714 }
 0x4a5   : > { %v4788_v49 = vmul.f32 %v8826_v24, %v4715_v60 }
 0x4a6   : > { %v4717_v40 = vpop.permute.xlu1 %4716 }
 0x4a7   : > { %v4789_v12 = vmul.f32 %v8835_v14, %v4717_v40  ;;  %4874 = vrot.lane.b32.xlu0 %v4788_v49, %s7426_s20 }
 0x4a8   : > { %v4711_v38 = vpop.permute.xlu0 %4710 }
 0x4a9   : > { %v4786_v9 = vmul.f32 %v8832_v44, %v4711_v38  ;;  %4876 = vrot.lane.b32.xlu1 %v4789_v12, %s7426_s20 }
 0x4aa   : > { %v4713_v53 = vpop.permute.xlu1 %4712 }
 0x4ab   : > { %v4787_v21 = vmul.f32 %v8840_v54, %v4713_v53  ;;  %4870 = vrot.lane.b32.xlu0 %v4786_v9, %s7426_s20 }
 0x4ac   : > { %v9123_v43 = vpop.permute.xlu0 %5014 }
 0x4ad   : > { %4872 = vrot.lane.b32.xlu1 %v4787_v21, %s7426_s20 }
 0x4ae   : > { %v9126_v24 = vpop.permute.xlu1 %5016 }
 0x4b0   : > { %v4723_v55 = vpop.permute.xlu0 %4722 }
 0x4b1   : > { %v4792_v14 = vmul.f32 %v8843_v50, %v4723_v55 }
 0x4b2   : > { %v4725_v25 = vpop.permute.xlu1 %4724 }
 0x4b3   : > { %v4793_v58 = vmul.f32 %v8851_v15, %v4725_v25  ;;  %4882 = vrot.lane.b32.xlu0 %v4792_v14, %s7426_s20 }
 0x4b4   : > { %v4719_v44 = vpop.permute.xlu0 %4718 }
 0x4b5   : > { %v4790_v48 = vmul.f32 %v8848_v6, %v4719_v44  ;;  %4884 = vrot.lane.b32.xlu1 %v4793_v58, %s7426_s20 }
 0x4b6   : > { %v4721_v54 = vpop.permute.xlu1 %4720 }
 0x4b7   : > { %v4791_v45 = vmul.f32 %v8856_v13, %v4721_v54  ;;  %4878 = vrot.lane.b32.xlu0 %v4790_v48, %s7426_s20 }
 0x4b8   : > { %v4727_v26 = vpop.permute.xlu0 %4726 }
 0x4b9   : > { %v4794_v2 = vmul.f32 %v8860_v5, %v4727_v26  ;;  %4880 = vrot.lane.b32.xlu1 %v4791_v45, %s7426_s20 }
 0x4ba   : > { %v4729_v50 = vpop.permute.xlu1 %4728 }
 0x4bb   : > { %v4795_v15 = vmul.f32 %v8867_v46, %v4729_v50  ;;  %4886 = vrot.lane.b32.xlu0 %v4794_v2, %s7426_s20 }
 0x4bc   : > { %v4731_v36 = vpop.permute.xlu0 %4730 }
 0x4bd   : > { %v4796_v6 = vmul.f32 %v8864_v18, %v4731_v36  ;;  %4888 = vrot.lane.b32.xlu1 %v4795_v15, %s7426_s20 }
 0x4be   : > { %v4733_v28 = vpop.permute.xlu1 %4732 }
 0x4bf   : > { %v4797_v13 = vmul.f32 %v8872_v16, %v4733_v28  ;;  %4890 = vrot.lane.b32.xlu0 %v4796_v6, %s7426_s20 }
 0x4c1   : > { %4892 = vrot.lane.b32.xlu1 %v4797_v13, %s7426_s20 }
 0x4c3   : > { %5018 = vrot.lane.b32.xlu0 %v9002_v31, %s7428_s18 }
 0x4c5   : > { %5020 = vrot.lane.b32.xlu1 %v9006_v37, %s7428_s18 }
 0x4c9   : > { %v4835_v5 = vpop.permute.xlu0 %4834 }
 0x4ca   : > { %v5057_v18 = vsel %vm5054_vm0, %v4835_v5, %v9014_v52 }
 0x4cb   : > { %5090 = vst.msk [vmem:[%s9153_s10 + $0x10] sm:$0xff] %vm5087_vm1, %v5057_v18  ;;  %v4837_v46 = vpop.permute.xlu1 %4836 }
 0x4cc   : > { %v5058_v16 = vsel %vm5054_vm0, %v4837_v46, %v9018_v57 }
 0x4cd   : > { %5091 = vst.msk [vmem:[%s9153_s10 + $0x18] sm:$0xff] %vm5087_vm1, %v5058_v16  ;;  %v4831_v31 = vpop.permute.xlu0 %4830 }
 0x4ce   : > { %v5055_v37 = vsel %vm5054_vm0, %v4831_v31, %v9021_v0 }
 0x4cf   : > { %5088 = vst.msk [vmem:[%s9153_s10] sm:$0xff] %vm5087_vm1, %v5055_v37  ;;  %v4833_v22 = vpop.permute.xlu1 %4832 }
 0x4d0   : > { %v5056_v52 = vsel %vm5054_vm0, %v4833_v22, %v9024_v3 }
 0x4d1   : > { %5089 = vst.msk [vmem:[%s9153_s10 + $0x8] sm:$0xff] %vm5087_vm1, %v5056_v52 }
 0x4d9   : > { %v4843_v27 = vpop.permute.xlu0 %4842 }
 0x4da   : > { %v5061_v57 = vsel %vm5054_vm0, %v4843_v27, %v9028_v39 }
 0x4db   : > { %5094 = vst.msk [vmem:[%s9153_s10 + $0x30] sm:$0xff] %vm5087_vm1, %v5061_v57  ;;  %v4845_v1 = vpop.permute.xlu1 %4844 }
 0x4dc   : > { %v5062_v0 = vsel %vm5054_vm0, %v4845_v1, %v9030_v42 }
 0x4dd   : > { %5095 = vst.msk [vmem:[%s9153_s10 + $0x38] sm:$0xff] %vm5087_vm1, %v5062_v0  ;;  %v4839_v32 = vpop.permute.xlu0 %4838 }
 0x4de   : > { %v5059_v3 = vsel %vm5054_vm0, %v4839_v32, %v9032_v19 }
 0x4df   : > { %5092 = vst.msk [vmem:[%s9153_s10 + $0x20] sm:$0xff] %vm5087_vm1, %v5059_v3  ;;  %v4841_v60 = vpop.permute.xlu1 %4840 }
 0x4e0   : > { %v5060_v39 = vsel %vm5054_vm0, %v4841_v60, %v9034_v10 }
 0x4e1   : > { %5093 = vst.msk [vmem:[%s9153_s10 + $0x28] sm:$0xff] %vm5087_vm1, %v5060_v39 }
 0x4e9   : > { %v4851_v49 = vpop.permute.xlu0 %4850 }
 0x4ea   : > { %v5065_v42 = vsel %vm5054_vm0, %v4851_v49, %v9043_v11 }
 0x4eb   : > { %5098 = vst.msk [vmem:[%s9153_s10 + $0x50] sm:$0xff] %vm5087_vm1, %v5065_v42  ;;  %v4853_v40 = vpop.permute.xlu1 %4852 }
 0x4ec   : > { %v5066_v19 = vsel %vm5054_vm0, %v4853_v40, %v9046_v56 }
 0x4ed   : > { %5099 = vst.msk [vmem:[%s9153_s10 + $0x58] sm:$0xff] %vm5087_vm1, %v5066_v19  ;;  %v4847_v12 = vpop.permute.xlu0 %4846 }
 0x4ee   : > { %v5063_v10 = vsel %vm5054_vm0, %v4847_v12, %v9048_v20 }
 0x4ef   : > { %5096 = vst.msk [vmem:[%s9153_s10 + $0x40] sm:$0xff] %vm5087_vm1, %v5063_v10  ;;  %v4849_v38 = vpop.permute.xlu1 %4848 }
 0x4f0   : > { %v5064_v11 = vsel %vm5054_vm0, %v4849_v38, %v9050_v4 }
 0x4f1   : > { %5097 = vst.msk [vmem:[%s9153_s10 + $0x48] sm:$0xff] %vm5087_vm1, %v5064_v11 }
 0x4f9   : > { %v4859_v9 = vpop.permute.xlu0 %4858 }
 0x4fa   : > { %v5069_v56 = vsel %vm5054_vm0, %v4859_v9, %v9059_v62 }
 0x4fb   : > { %5102 = vst.msk [vmem:[%s9153_s10 + $0x70] sm:$0xff] %vm5087_vm1, %v5069_v56  ;;  %v4861_v53 = vpop.permute.xlu1 %4860 }
 0x4fc   : > { %v5070_v20 = vsel %vm5054_vm0, %v4861_v53, %v9062_v34 }
 0x4fd   : > { %5103 = vst.msk [vmem:[%s9153_s10 + $0x78] sm:$0xff] %vm5087_vm1, %v5070_v20  ;;  %v4855_v21 = vpop.permute.xlu0 %4854 }
 0x4fe   : > { %v5067_v4 = vsel %vm5054_vm0, %v4855_v21, %v9064_v61 }
 0x4ff   : > { %5100 = vst.msk [vmem:[%s9153_s10 + $0x60] sm:$0xff] %vm5087_vm1, %v5067_v4  ;;  %v4857_v55 = vpop.permute.xlu1 %4856 }
 0x500   : > { %v5068_v62 = vsel %vm5054_vm0, %v4857_v55, %v9066_v23 }
 0x501   : > { %5101 = vst.msk [vmem:[%s9153_s10 + $0x68] sm:$0xff] %vm5087_vm1, %v5068_v62 }
 0x509   : > { %v4867_v14 = vpop.permute.xlu0 %4866 }
 0x50a   : > { %v5073_v34 = vsel %vm5054_vm0, %v4867_v14, %v9075_v41 }
 0x50b   : > { %5106 = vst.msk [vmem:[%s9153_s10 + $0x90] sm:$0xff] %vm5087_vm1, %v5073_v34  ;;  %v4869_v25 = vpop.permute.xlu1 %4868 }
 0x50c   : > { %v5074_v61 = vsel %vm5054_vm0, %v4869_v25, %v9078_v33 }
 0x50d   : > { %5107 = vst.msk [vmem:[%s9153_s10 + $0x98] sm:$0xff] %vm5087_vm1, %v5074_v61  ;;  %v4863_v58 = vpop.permute.xlu0 %4862 }
 0x50e   : > { %v5071_v23 = vsel %vm5054_vm0, %v4863_v58, %v9080_v17 }
 0x50f   : > { %5104 = vst.msk [vmem:[%s9153_s10 + $0x80] sm:$0xff] %vm5087_vm1, %v5071_v23  ;;  %v4865_v44 = vpop.permute.xlu1 %4864 }
 0x510   : > { %v5072_v41 = vsel %vm5054_vm0, %v4865_v44, %v9082_v63 }
 0x511   : > { %5105 = vst.msk [vmem:[%s9153_s10 + $0x88] sm:$0xff] %vm5087_vm1, %v5072_v41 }
 0x519   : > { %v4875_v48 = vpop.permute.xlu0 %4874 }
 0x51a   : > { %v5077_v33 = vsel %vm5054_vm0, %v4875_v48, %v9091_v35 }
 0x51b   : > { %5110 = vst.msk [vmem:[%s9153_s10 + $0xb0] sm:$0xff] %vm5087_vm1, %v5077_v33  ;;  %v4877_v54 = vpop.permute.xlu1 %4876 }
 0x51c   : > { %v5078_v17 = vsel %vm5054_vm0, %v4877_v54, %v9094_v7 }
 0x51d   : > { %5111 = vst.msk [vmem:[%s9153_s10 + $0xb8] sm:$0xff] %vm5087_vm1, %v5078_v17  ;;  %v4871_v45 = vpop.permute.xlu0 %4870 }
 0x51e   : > { %v5075_v63 = vsel %vm5054_vm0, %v4871_v45, %v9096_v51 }
 0x51f   : > { %5108 = vst.msk [vmem:[%s9153_s10 + $0xa0] sm:$0xff] %vm5087_vm1, %v5075_v63  ;;  %v4873_v26 = vpop.permute.xlu1 %4872 }
 0x520   : > { %v5076_v35 = vsel %vm5054_vm0, %v4873_v26, %v9098_v8 }
 0x521   : > { %5109 = vst.msk [vmem:[%s9153_s10 + $0xa8] sm:$0xff] %vm5087_vm1, %v5076_v35 }
 0x525   : > { %v4883_v2 = vpop.permute.xlu0 %4882 }
 0x526   : > { %v5081_v7 = vsel %vm5054_vm0, %v4883_v2, %v9107_v29 }
 0x527   : > { %5114 = vst.msk [vmem:[%s9153_s10 + $0xd0] sm:$0xff] %vm5087_vm1, %v5081_v7  ;;  %v4885_v50 = vpop.permute.xlu1 %4884 }
 0x528   : > { %v5082_v51 = vsel %vm5054_vm0, %v4885_v50, %v9110_v30 }
 0x529   : > { %5115 = vst.msk [vmem:[%s9153_s10 + $0xd8] sm:$0xff] %vm5087_vm1, %v5082_v51  ;;  %v4879_v15 = vpop.permute.xlu0 %4878 }
 0x52a   : > { %v5079_v8 = vsel %vm5054_vm0, %v4879_v15, %v9112_v47 }
 0x52b   : > { %5112 = vst.msk [vmem:[%s9153_s10 + $0xc0] sm:$0xff] %vm5087_vm1, %v5079_v8  ;;  %v4881_v36 = vpop.permute.xlu1 %4880 }
 0x52c   : > { %v5080_v29 = vsel %vm5054_vm0, %v4881_v36, %v9114_v59 }
 0x52d   : > { %5113 = vst.msk [vmem:[%s9153_s10 + $0xc8] sm:$0xff] %vm5087_vm1, %v5080_v29  ;;  %v4887_v6 = vpop.permute.xlu0 %4886 }
 0x52e   : > { %v5083_v30 = vsel %vm5054_vm0, %v4887_v6, %v9123_v43 }
 0x52f   : > { %5116 = vst.msk [vmem:[%s9153_s10 + $0xe0] sm:$0xff] %vm5087_vm1, %v5083_v30  ;;  %v4889_v28 = vpop.permute.xlu1 %4888 }
 0x530   : > { %v5084_v13 = vsel %vm5054_vm0, %v4889_v28, %v9126_v24 }
 0x531   : > { %5117 = vst.msk [vmem:[%s9153_s10 + $0xe8] sm:$0xff] %vm5087_vm1, %v5084_v13  ;;  %v4891_v47 = vpop.permute.xlu0 %4890 }
 0x533   : > { %v4893_v5 = vpop.permute.xlu1 %4892 }
 0x535   : > { %v5019_v18 = vpop.permute.xlu0 %5018 }
 0x536   : > { %v5085_v46 = vsel %vm5054_vm0, %v4891_v47, %v5019_v18 }
 0x537   : > { %5118 = vst.msk [vmem:[%s9153_s10 + $0xf0] sm:$0xff] %vm5087_vm1, %v5085_v46  ;;  %v5021_v59 = vpop.permute.xlu1 %5020 }
 0x538   : > { %v5086_v16 = vsel %vm5054_vm0, %v4893_v5, %v5021_v59 }
 0x539   : > { %5119 = vst.msk [vmem:[%s9153_s10 + $0xf8] sm:$0xff] %vm5087_vm1, %v5086_v16 }
 0x53a PF: > { %s9333_s12 = smov %s7530_s15  ;;  %p15_p9 = scmp.ge.s32.totalorder %s7519_s11, 4  }
 0x53b   : > { %s9334_s15 = smov %s7409_s16  ;;  %s9335_s16 = smov %s7413_s17 }
 0x53c   : > { %s9336_s17 = smov %s9333_s12  ;;  %s9337_s18 = smov %s7519_s11 }
 0x53d   :  { %17 = sbr.rel (!%p15_p9) target bundleno = 4 (0x4), region = 87 }
 0x542   :  { %5142 = vsyncpa [#allocation3], 1 }
 0x543   :  { %5144 = vsyncpa [#allocation3 + $0x1], 1 }
 0x544   :  { %5145 = vsyncpa [#allocation5], 1 }

</bundles_post_ra>
